<compile_context>
chip_gen: v5e
topology: v5e:2x2
jax: 0.10.0
libtpu: 0.0.40
codegen_flags: <defaults>
</compile_context>

<pallas_src>
import jax
import jax.numpy as jnp
from jax import lax
from jax.experimental import pallas as pl
from jax.experimental.pallas import tpu as pltpu

# Set to jnp.bfloat16 for ~2x MXU throughput (accumulation stays f32).
MXU_DTYPE = jnp.float32


def _round_up(x, m):
    return (x + m - 1) // m * m


def _pack_taps(w_torch):
    """(C_out, C_in, k, k) torch conv weight -> (k*k*C_in, C_out), row = (dy*k+dx)*C_in + c."""
    c_out, c_in, k, _ = w_torch.shape
    return jnp.transpose(w_torch, (2, 3, 1, 0)).reshape(k * k * c_in, c_out).astype(jnp.float32)


# ---------------------------------------------------------------------------
# Kernels A / C: fused (per-input BN-affine -> add -> ReLU) staging, border-only
# zero padding in VMEM, all k*k taps packed into the contraction dim -> a single
# MXU matmul, multi-split outputs + fused per-image BN statistics.
# ---------------------------------------------------------------------------
def _make_packed_conv_kernel(H, W, C_in, k, pad, n_in, has_aff, relu_in, out_splits):
    HW = H * W
    n_out = len(out_splits)
    col_offs = [0]
    for c in out_splits:
        col_offs.append(col_offs[-1] + c)

    def kernel(*args):
        pos = 0
        x_refs = args[pos:pos + n_in]
        pos += n_in
        aff = []
        for i in range(n_in):
            if has_aff[i]:
                aff.append((args[pos], args[pos + 1]))
                pos += 2
            else:
                aff.append(None)
        w_ref = args[pos]
        pos += 1
        out_refs = args[pos:pos + n_out]
        pos += n_out
        sum_ref, sq_ref = args[pos], args[pos + 1]
        pos += 2
        xp_ref, lhs_ref = args[pos], args[pos + 1]

        # ---- fused per-input BN-affine / two-input add / ReLU staging ----
        staged = None
        for i in range(n_in):
            xi = x_refs[i][0]                                    # (H, W, C_in)
            if aff[i] is not None:
                sa_ref, sb_ref = aff[i]
                xi = xi * sa_ref[0, 0, :] + sb_ref[0, 0, :]
            staged = xi if staged is None else staged + xi
        if relu_in:
            staged = jnp.maximum(staged, 0.0)

        # ---- zero only the padding border (O(H+W)), not the whole buffer ----
        if pad > 0:
            zrow = jnp.zeros((pad, W + 2 * pad, C_in), jnp.float32)
            zcol = jnp.zeros((H + 2 * pad, pad, C_in), jnp.float32)
            xp_ref[0:pad, :, :] = zrow
            xp_ref[H + pad:H + 2 * pad, :, :] = zrow
            xp_ref[:, 0:pad, :] = zcol
            xp_ref[:, W + pad:W + 2 * pad, :] = zcol
        xp_ref[pad:pad + H, pad:pad + W, :] = staged

        # ---- im2col: pack all k*k taps into the contraction dim -> ONE matmul ----
        for t in range(k * k):
            dy, dx = divmod(t, k)
            lhs_ref[:, t * C_in:(t + 1) * C_in] = (
                xp_ref[dy:dy + H, dx:dx + W, :].reshape(HW, C_in))
        res = jnp.dot(lhs_ref[...].astype(MXU_DTYPE),
                      w_ref[...].astype(MXU_DTYPE),
                      preferred_element_type=jnp.float32)        # (HW, sum(splits))

        for o in range(n_out):
            out_refs[o][0] = res[:, col_offs[o]:col_offs[o + 1]].reshape(
                H, W, out_splits[o])
        # fused per-image partial BN statistics (no second HBM pass)
        sum_ref[0] = jnp.sum(res, axis=0, keepdims=True)
        sq_ref[0] = jnp.sum(res * res, axis=0, keepdims=True)

    return kernel


def fused_packed_conv(inputs, affines, relu_in, w_packed, out_splits, k=3):
    """Fused (affine + add + ReLU) -> stride-1 'same' conv (taps packed into K)
    -> conv outputs split along C_out -> per-channel sum / sum-of-squares."""
    N, H, W, C_in = inputs[0].shape
    pad = (k - 1) // 2
    KC = k * k * C_in
    C_tot = int(sum(out_splits))
    assert w_packed.shape == (KC, C_tot)
    n_in = len(inputs)
    has_aff = tuple(a is not None for a in affines)

    ops, in_specs = [], []
    for i in range(n_in):
        ops.append(inputs[i].astype(jnp.float32))
        in_specs.append(pl.BlockSpec((1, H, W, C_in), lambda n: (n, 0, 0, 0)))
    for i in range(n_in):
        if has_aff[i]:
            for v in affines[i]:
                ops.append(v.reshape(1, 1, C_in).astype(jnp.float32))
                in_specs.append(pl.BlockSpec((1, 1, C_in), lambda n: (0, 0, 0)))
    ops.append(w_packed.astype(jnp.float32))
    in_specs.append(pl.BlockSpec((KC, C_tot), lambda n: (0, 0)))

    out_shape = tuple(jax.ShapeDtypeStruct((N, H, W, c), jnp.float32)
                      for c in out_splits)
    out_shape += (jax.ShapeDtypeStruct((N, 1, C_tot), jnp.float32),
                  jax.ShapeDtypeStruct((N, 1, C_tot), jnp.float32))
    out_specs = tuple(pl.BlockSpec((1, H, W, c), lambda n: (n, 0, 0, 0))
                      for c in out_splits)
    out_specs += (pl.BlockSpec((1, 1, C_tot), lambda n: (n, 0, 0)),
                  pl.BlockSpec((1, 1, C_tot), lambda n: (n, 0, 0)))

    kernel = _make_packed_conv_kernel(H, W, C_in, k, pad, n_in, has_aff,
                                      relu_in, tuple(out_splits))

    outs = pl.pallas_call(
        kernel,
        out_shape=out_shape,
        grid_spec=pltpu.PrefetchScalarGridSpec(
            num_scalar_prefetch=0,
            grid=(N,),
            in_specs=in_specs,
            out_specs=out_specs,
            scratch_shapes=[
                pltpu.VMEM((H + 2 * pad, W + 2 * pad, C_in), jnp.float32),
                pltpu.VMEM((H * W, KC), jnp.float32),
            ]),
        compiler_params=pltpu.CompilerParams(
            dimension_semantics=("parallel",)),
    )(*ops)

    conv_outs = outs[:len(out_splits)]
    ch_sum = jnp.sum(outs[-2][:, 0, :], axis=0)
    ch_sumsq = jnp.sum(outs[-1][:, 0, :], axis=0)
    return conv_outs, ch_sum, ch_sumsq


# ---------------------------------------------------------------------------
# Kernel B: fused BN-affine + ReLU + both corner pools (log-doubling suffix max,
# entirely in VMEM) + pool1+pool2 add + p_conv1 (3x3, 128->dim, tap pairs K=256)
# + fused per-image BN statistics.  pool1/pool2 never touch HBM.
# ---------------------------------------------------------------------------
def _make_pool_pconv_kernel(H, W, C_mid, C_out, pool1_axis, pool2_axis):
    HW = H * W
    k, pad = 3, 1

    def suffix_max_inplace(y_ref, axis, lo, hi):
        # Reverse running max (suffix max) via Hillis-Steele log-doubling:
        # ceil(log2(n)) slab-wide passes instead of n-1 serial row RMWs.
        n = H if axis == 0 else W
        s = 1
        while s < n:
            if axis == 0:
                y_ref[0:H - s, :, lo:hi] = jnp.maximum(
                    y_ref[0:H - s, :, lo:hi], y_ref[s:H, :, lo:hi])
            else:
                y_ref[:, 0:W - s, lo:hi] = jnp.maximum(
                    y_ref[:, 0:W - s, lo:hi], y_ref[:, s:W, lo:hi])
            s *= 2

    def kernel(x_ref, sa_ref, sb_ref, w_ref, out_ref, sum_ref, sq_ref,
               y_ref, xp_ref, lhs_ref):
        # Fused BN-affine + ReLU for both branches (p1 = ch[:128], p2 = ch[128:]).
        y_ref[...] = jnp.maximum(x_ref[0] * sa_ref[0, 0, :] + sb_ref[0, 0, :], 0.0)

        # Corner pooling in VMEM (lane slices are 128-aligned channel halves).
        suffix_max_inplace(y_ref, pool1_axis, 0, C_mid)
        suffix_max_inplace(y_ref, pool2_axis, C_mid, 2 * C_mid)

        # pool1 + pool2, staged zero-padded for the 3x3 conv (border-only zero).
        zrow = jnp.zeros((pad, W + 2 * pad, C_mid), jnp.float32)
        zcol = jnp.zeros((H + 2 * pad, pad, C_mid), jnp.float32)
        xp_ref[0:pad, :, :] = zrow
        xp_ref[H + pad:H + 2 * pad, :, :] = zrow
        xp_ref[:, 0:pad, :] = zcol
        xp_ref[:, W + pad:W + 2 * pad, :] = zcol
        xp_ref[pad:pad + H, pad:pad + W, :] = (
            y_ref[:, :, 0:C_mid] + y_ref[:, :, C_mid:2 * C_mid])

        # p_conv1: taps grouped in pairs -> K=256 matmuls (fills v6e/v7x MXU
        # depth); results accumulate in a vreg-resident value, no acc scratch.
        acc = jnp.zeros((HW, C_out), jnp.float32)
        for pr in range(4):
            t0 = 2 * pr
            dy0, dx0 = divmod(t0, k)
            dy1, dx1 = divmod(t0 + 1, k)
            lhs_ref[:, 0:C_mid] = xp_ref[dy0:dy0 + H, dx0:dx0 + W, :].reshape(HW, C_mid)
            lhs_ref[:, C_mid:2 * C_mid] = xp_ref[dy1:dy1 + H, dx1:dx1 + W, :].reshape(HW, C_mid)
            acc = acc + jnp.dot(
                lhs_ref[...].astype(MXU_DTYPE),
                w_ref[t0 * C_mid:(t0 + 2) * C_mid, :].astype(MXU_DTYPE),
                preferred_element_type=jnp.float32)
        dy, dx = divmod(k * k - 1, k)
        acc = acc + jnp.dot(
            xp_ref[dy:dy + H, dx:dx + W, :].reshape(HW, C_mid).astype(MXU_DTYPE),
            w_ref[(k * k - 1) * C_mid:k * k * C_mid, :].astype(MXU_DTYPE),
            preferred_element_type=jnp.float32)

        out_ref[0] = acc.reshape(H, W, C_out)
        sum_ref[0] = jnp.sum(acc, axis=0, keepdims=True)
        sq_ref[0] = jnp.sum(acc * acc, axis=0, keepdims=True)

    return kernel


def pool_and_pconv(c_p12, scale12, shift12, w_pc_torch, pool1_axis, pool2_axis):
    N, H, W, C2 = c_p12.shape
    C_mid = C2 // 2
    C_out = w_pc_torch.shape[0]
    w_packed = _pack_taps(w_pc_torch)                   # (9*128, dim)

    conv_out, sum_out, sq_out = pl.pallas_call(
        _make_pool_pconv_kernel(H, W, C_mid, C_out, pool1_axis, pool2_axis),
        out_shape=(jax.ShapeDtypeStruct((N, H, W, C_out), jnp.float32),
                   jax.ShapeDtypeStruct((N, 1, C_out), jnp.float32),
                   jax.ShapeDtypeStruct((N, 1, C_out), jnp.float32)),
        grid_spec=pltpu.PrefetchScalarGridSpec(
            num_scalar_prefetch=0,
            grid=(N,),
            in_specs=[pl.BlockSpec((1, H, W, C2), lambda n: (n, 0, 0, 0)),
                      pl.BlockSpec((1, 1, C2), lambda n: (0, 0, 0)),
                      pl.BlockSpec((1, 1, C2), lambda n: (0, 0, 0)),
                      pl.BlockSpec((9 * C_mid, C_out), lambda n: (0, 0))],
            out_specs=(pl.BlockSpec((1, H, W, C_out), lambda n: (n, 0, 0, 0)),
                       pl.BlockSpec((1, 1, C_out), lambda n: (n, 0, 0)),
                       pl.BlockSpec((1, 1, C_out), lambda n: (n, 0, 0))),
            scratch_shapes=[
                pltpu.VMEM((H, W, C2), jnp.float32),              # relu'd p1|p2
                pltpu.VMEM((H + 2, W + 2, C_mid), jnp.float32),   # padded pool sum
                pltpu.VMEM((H * W, 2 * C_mid), jnp.float32),      # K=256 tap pairs
            ]),
        compiler_params=pltpu.CompilerParams(
            dimension_semantics=("parallel",)),
    )(c_p12,
      scale12.reshape(1, 1, C2).astype(jnp.float32),
      shift12.reshape(1, 1, C2).astype(jnp.float32),
      w_packed)
    ch_sum = jnp.sum(sum_out[:, 0, :], axis=0)
    ch_sumsq = jnp.sum(sq_out[:, 0, :], axis=0)
    return conv_out, ch_sum, ch_sumsq


# ---------------------------------------------------------------------------
# Kernel D: final BN-affine + ReLU, written directly in NCHW (lane-dense H*W)
# via an aligned (H*W, 128) staging buffer + 2-D transpose.
# ---------------------------------------------------------------------------
def _make_bn_relu_to_nchw_kernel(H, W, C, Cp):
    HW = H * W

    def kernel(x_ref, sa_ref, sb_ref, o_ref, t_ref):
        y = jnp.maximum(x_ref[0].reshape(HW, C) * sa_ref[0, 0, :] + sb_ref[0, 0, :],
                        0.0)
        # Only columns [0:C] are consumed after the transpose (rows [0:C] of yt),
        # so the pad columns never need zeroing.
        t_ref[:, 0:C] = y
        yt = t_ref[...].T                                # (Cp, H*W)
        o_ref[0] = yt[0:C, :]

    return kernel


def bn_relu_to_nchw(x, scale, shift):
    N, H, W, C = x.shape
    Cp = _round_up(C, 128)
    out = pl.pallas_call(
        _make_bn_relu_to_nchw_kernel(H, W, C, Cp),
        out_shape=jax.ShapeDtypeStruct((N, C, H * W), jnp.float32),
        grid_spec=pltpu.PrefetchScalarGridSpec(
            num_scalar_prefetch=0,
            grid=(N,),
            in_specs=[pl.BlockSpec((1, H, W, C), lambda n: (n, 0, 0, 0)),
                      pl.BlockSpec((1, 1, C), lambda n: (0, 0, 0)),
                      pl.BlockSpec((1, 1, C), lambda n: (0, 0, 0))],
            out_specs=pl.BlockSpec((1, C, H * W), lambda n: (n, 0, 0)),
            scratch_shapes=[pltpu.VMEM((H * W, Cp), jnp.float32)]),
        compiler_params=pltpu.CompilerParams(
            dimension_semantics=("parallel",)),
    )(x.astype(jnp.float32),
      scale.reshape(1, 1, C).astype(jnp.float32),
      shift.reshape(1, 1, C).astype(jnp.float32))
    return out.reshape(N, C, H, W)          # free row-major reshape (no transpose)


# ---------------------------------------------------------------------------
# Glue: batch-stat BN scale/shift and the full `pool` forward pass.
# ---------------------------------------------------------------------------
def _bn_scale_shift(ch_sum, ch_sumsq, count, gamma, beta, eps=1e-5):
    mean = ch_sum / count
    var = jnp.maximum(ch_sumsq / count - mean * mean, 0.0)   # biased batch variance
    scale = gamma / jnp.sqrt(var + eps)
    shift = beta - mean * scale
    return scale, shift


def pool_forward(x_nchw, p, *, pool1_axis=0, pool2_axis=1):
    """Forward pass of the PyTorch `pool` module (training-mode BatchNorm stats)."""
    N, dim, H, W = x_nchw.shape
    mid = p["w_p1"].shape[0]
    count = jnp.float32(N * H * W)

    # Single NHWC staging transpose of the input; it is read by exactly one kernel.
    x = jnp.transpose(x_nchw, (0, 2, 3, 1)).astype(jnp.float32)

    # ---- Kernel A: p1_conv1 + p2_conv1 + conv1(1x1) merged into one call ----
    # The 1x1 conv is embedded as the centre tap of an otherwise-zero 3x3 kernel,
    # so the whole head is one (HW, 9*dim) @ (9*dim, 2*mid+dim) MXU matmul.
    w_c1_3x3 = jnp.zeros((dim, dim, 3, 3), jnp.float32).at[:, :, 1, 1].set(
        p["w_c1"][:, :, 0, 0].astype(jnp.float32))
    w_head = jnp.concatenate([p["w_p1"].astype(jnp.float32),
                              p["w_p2"].astype(jnp.float32),
                              w_c1_3x3], axis=0)                    # (2*mid+dim, dim, 3, 3)
    (c_p12, c_c1), s_head, q_head = fused_packed_conv(
        [x], [None], False, _pack_taps(w_head), (2 * mid, dim))

    scale12, shift12 = _bn_scale_shift(
        s_head[:2 * mid], q_head[:2 * mid], count,
        jnp.concatenate([p["g_p1"], p["g_p2"]]),
        jnp.concatenate([p["b_p1"], p["b_p2"]]))
    scale_c1, shift_c1 = _bn_scale_shift(
        s_head[2 * mid:], q_head[2 * mid:], count, p["g_c1"], p["b_c1"])

    # ---- Kernel B: BN+ReLU + corner pools + add + p_conv1, all in VMEM ----
    c_pc, s_pc, q_pc = pool_and_pconv(c_p12, scale12, shift12, p["w_pc"],
                                      pool1_axis, pool2_axis)
    scale_pc, shift_pc = _bn_scale_shift(s_pc, q_pc, count, p["g_pc"], p["b_pc"])

    # ---- Kernel C: conv2 on relu(p_bn1 + bn1); affines/add/ReLU fused in staging ----
    (c_c2,), s_c2, q_c2 = fused_packed_conv(
        [c_pc, c_c1], [(scale_pc, shift_pc), (scale_c1, shift_c1)], True,
        _pack_taps(p["w_c2"]), (dim,))
    scale_c2, shift_c2 = _bn_scale_shift(s_c2, q_c2, count, p["g_c2"], p["b_c2"])

    # ---- Kernel D: final BN + ReLU, emitted directly in NCHW ----
    return bn_relu_to_nchw(c_c2, scale_c2, shift_c2)


# ---------------------------------------------------------------------------
# Pure-JAX reference (self-check only)
# ---------------------------------------------------------------------------
def _conv_ref(x_nchw, w, pad):
    return lax.conv_general_dilated(
        x_nchw, w, window_strides=(1, 1), padding=((pad, pad), (pad, pad)),
        dimension_numbers=("NCHW", "OIHW", "NCHW"),
        precision=lax.Precision.HIGHEST)


def _bn_ref(x, gamma, beta, eps=1e-5):
    mean = jnp.mean(x, axis=(0, 2, 3), keepdims=True)
    var = jnp.var(x, axis=(0, 2, 3), keepdims=True)
    return ((x - mean) / jnp.sqrt(var + eps) * gamma[None, :, None, None]
            + beta[None, :, None, None])


def pool_reference(x, p, *, pool1_axis=0, pool2_axis=1):
    p1 = jnp.maximum(_bn_ref(_conv_ref(x, p["w_p1"], 1), p["g_p1"], p["b_p1"]), 0.0)
    pool1 = lax.cummax(p1, axis=2 + pool1_axis, reverse=True)
    p2 = jnp.maximum(_bn_ref(_conv_ref(x, p["w_p2"], 1), p["g_p2"], p["b_p2"]), 0.0)
    pool2 = lax.cummax(p2, axis=2 + pool2_axis, reverse=True)
    pc = _bn_ref(_conv_ref(pool1 + pool2, p["w_pc"], 1), p["g_pc"], p["b_pc"])
    c1 = _bn_ref(_conv_ref(x, p["w_c1"], 0), p["g_c1"], p["b_c1"])
    r = jnp.maximum(pc + c1, 0.0)
    return jnp.maximum(_bn_ref(_conv_ref(r, p["w_c2"], 1), p["g_c2"], p["b_c2"]), 0.0)


if __name__ == "__main__":
    # Small shapes consistent with the module: dim=8 input channels,
    # 128 intermediate channels (fixed by the module), batch=2, 16x16 spatial.
    N, dim, H, W = 2, 8, 16, 16
    mid = 128

    key = jax.random.PRNGKey(0)
    keys = jax.random.split(key, 11)

    def conv_weight(k_, c_out, c_in, ksz):
        bound = 1.0 / float((c_in * ksz * ksz) ** 0.5)
        return jax.random.uniform(k_, (c_out, c_in, ksz, ksz), jnp.float32,
                                  -bound, bound)

    def bn_param(k_, c):
        kg, kb = jax.random.split(k_)
        gamma = 1.0 + 0.1 * jax.random.normal(kg, (c,), jnp.float32)
        beta = 0.1 * jax.random.normal(kb, (c,), jnp.float32)
        return gamma, beta

    g_p1, b_p1 = bn_param(keys[1], mid)
    g_p2, b_p2 = bn_param(keys[3], mid)
    g_pc, b_pc = bn_param(keys[5], dim)
    g_c1, b_c1 = bn_param(keys[7], dim)
    g_c2, b_c2 = bn_param(keys[9], dim)

    params = dict(
        w_p1=conv_weight(keys[0], mid, dim, 3), g_p1=g_p1, b_p1=b_p1,
        w_p2=conv_weight(keys[2], mid, dim, 3), g_p2=g_p2, b_p2=b_p2,
        w_pc=conv_weight(keys[4], dim, mid, 3), g_pc=g_pc, b_pc=b_pc,
        w_c1=conv_weight(keys[6], dim, dim, 1), g_c1=g_c1, b_c1=b_c1,
        w_c2=conv_weight(keys[8], dim, dim, 3), g_c2=g_c2, b_c2=b_c2,
    )
    x = jax.random.normal(keys[10], (N, dim, H, W), jnp.float32)

    out = jax.block_until_ready(pool_forward(x, params))
    assert out.shape == (N, dim, H, W), out.shape

    ref = jax.block_until_ready(pool_reference(x, params))
    max_err = float(jnp.max(jnp.abs(out - ref)))
    assert jnp.allclose(out, ref, rtol=2e-3, atol=2e-3), max_err

    print("KERNEL_OK")
</pallas_src>

<mosaic_0001>
module attributes {stable_mosaic.version = 11 : i64} {
  func.func @kernel(%arg0: i32, %arg1: memref<1x16x16x8xf32, #tpu.memory_space<vmem>>, %arg2: memref<72x264xf32, #tpu.memory_space<vmem>>, %arg3: memref<1x16x16x256xf32, #tpu.memory_space<vmem>>, %arg4: memref<1x16x16x8xf32, #tpu.memory_space<vmem>>, %arg5: memref<1x1x264xf32, #tpu.memory_space<vmem>>, %arg6: memref<1x1x264xf32, #tpu.memory_space<vmem>>, %arg7: memref<18x18x8xf32, #tpu.memory_space<vmem>>, %arg8: memref<256x72xf32, #tpu.memory_space<vmem>>) attributes {dimension_semantics = [#tpu.dimension_semantics<parallel>], iteration_bounds = array<i64: 2>, scalar_prefetch = 0 : i64, scratch_operands = 2 : i64, tpu.core_type = #tpu.core_type<tc>, window_params = [{transform_indices = @transform_0, window_bounds = array<i64: 1, 16, 16, 8>}, {pipeline_mode = #tpu.pipeline_mode<synchronous>, transform_indices = @transform_1, window_bounds = array<i64: 72, 264>}, {transform_indices = @transform_2, window_bounds = array<i64: 1, 16, 16, 256>}, {transform_indices = @transform_3, window_bounds = array<i64: 1, 16, 16, 8>}, {transform_indices = @transform_4, window_bounds = array<i64: 1, 1, 264>}, {transform_indices = @transform_5, window_bounds = array<i64: 1, 1, 264>}]} {
    %c0 = arith.constant 0 : index
    %c0_0 = arith.constant 0 : index
    %c0_1 = arith.constant 0 : index
    %c0_2 = arith.constant 0 : index
    %0 = vector.load %arg1[%c0, %c0_0, %c0_1, %c0_2] : memref<1x16x16x8xf32, #tpu.memory_space<vmem>>, vector<1x16x16x8xf32>
    %1 = vector.shape_cast %0 : vector<1x16x16x8xf32> to vector<16x16x8xf32>
    %cst = arith.constant 0.000000e+00 : f32
    %2 = vector.broadcast %cst : f32 to vector<1x18x8xf32>
    %cst_3 = arith.constant 0.000000e+00 : f32
    %3 = vector.broadcast %cst_3 : f32 to vector<18x1x8xf32>
    %c0_4 = arith.constant 0 : index
    %c0_5 = arith.constant 0 : index
    %c0_6 = arith.constant 0 : index
    %4 = vector.load %arg7[%c0_4, %c0_5, %c0_6] : memref<18x18x8xf32, #tpu.memory_space<vmem>>, vector<1x18x8xf32>
    tpu.vector_store %arg7[%c0_4, %c0_5, %c0_6], %2 {strides = array<i32>} : memref<18x18x8xf32, #tpu.memory_space<vmem>>, vector<1x18x8xf32>,
    %c17 = arith.constant 17 : index
    %c0_7 = arith.constant 0 : index
    %c0_8 = arith.constant 0 : index
    %5 = vector.load %arg7[%c17, %c0_7, %c0_8] : memref<18x18x8xf32, #tpu.memory_space<vmem>>, vector<1x18x8xf32>
    tpu.vector_store %arg7[%c17, %c0_7, %c0_8], %2 {strides = array<i32>} : memref<18x18x8xf32, #tpu.memory_space<vmem>>, vector<1x18x8xf32>,
    %c0_9 = arith.constant 0 : index
    %c0_10 = arith.constant 0 : index
    %c0_11 = arith.constant 0 : index
    %6 = vector.load %arg7[%c0_9, %c0_10, %c0_11] : memref<18x18x8xf32, #tpu.memory_space<vmem>>, vector<18x1x8xf32>
    tpu.vector_store %arg7[%c0_9, %c0_10, %c0_11], %3 {strides = array<i32>} : memref<18x18x8xf32, #tpu.memory_space<vmem>>, vector<18x1x8xf32>,
    %c0_12 = arith.constant 0 : index
    %c17_13 = arith.constant 17 : index
    %c0_14 = arith.constant 0 : index
    %7 = vector.load %arg7[%c0_12, %c17_13, %c0_14] : memref<18x18x8xf32, #tpu.memory_space<vmem>>, vector<18x1x8xf32>
    tpu.vector_store %arg7[%c0_12, %c17_13, %c0_14], %3 {strides = array<i32>} : memref<18x18x8xf32, #tpu.memory_space<vmem>>, vector<18x1x8xf32>,
    %c1 = arith.constant 1 : index
    %c1_15 = arith.constant 1 : index
    %c0_16 = arith.constant 0 : index
    %8 = vector.load %arg7[%c1, %c1_15, %c0_16] : memref<18x18x8xf32, #tpu.memory_space<vmem>>, vector<16x16x8xf32>
    tpu.vector_store %arg7[%c1, %c1_15, %c0_16], %1 {strides = array<i32>} : memref<18x18x8xf32, #tpu.memory_space<vmem>>, vector<16x16x8xf32>,
    %c0_17 = arith.constant 0 : index
    %c0_18 = arith.constant 0 : index
    %c0_19 = arith.constant 0 : index
    %9 = vector.load %arg7[%c0_17, %c0_18, %c0_19] : memref<18x18x8xf32, #tpu.memory_space<vmem>>, vector<16x16x8xf32>
    %10 = vector.shape_cast %9 : vector<16x16x8xf32> to vector<256x8xf32>
    %c0_20 = arith.constant 0 : index
    %c0_21 = arith.constant 0 : index
    %11 = vector.load %arg8[%c0_20, %c0_21] : memref<256x72xf32, #tpu.memory_space<vmem>>, vector<256x8xf32>
    tpu.vector_store %arg8[%c0_20, %c0_21], %10 {strides = array<i32>} : memref<256x72xf32, #tpu.memory_space<vmem>>, vector<256x8xf32>,
    %c0_22 = arith.constant 0 : index
    %c1_23 = arith.constant 1 : index
    %c0_24 = arith.constant 0 : index
    %12 = vector.load %arg7[%c0_22, %c1_23, %c0_24] : memref<18x18x8xf32, #tpu.memory_space<vmem>>, vector<16x16x8xf32>
    %13 = vector.shape_cast %12 : vector<16x16x8xf32> to vector<256x8xf32>
    %c0_25 = arith.constant 0 : index
    %c8 = arith.constant 8 : index
    %14 = vector.load %arg8[%c0_25, %c8] : memref<256x72xf32, #tpu.memory_space<vmem>>, vector<256x8xf32>
    tpu.vector_store %arg8[%c0_25, %c8], %13 {strides = array<i32>} : memref<256x72xf32, #tpu.memory_space<vmem>>, vector<256x8xf32>,
    %c0_26 = arith.constant 0 : index
    %c2 = arith.constant 2 : index
    %c0_27 = arith.constant 0 : index
    %15 = vector.load %arg7[%c0_26, %c2, %c0_27] : memref<18x18x8xf32, #tpu.memory_space<vmem>>, vector<16x16x8xf32>
    %16 = vector.shape_cast %15 : vector<16x16x8xf32> to vector<256x8xf32>
    %c0_28 = arith.constant 0 : index
    %c16 = arith.constant 16 : index
    %17 = vector.load %arg8[%c0_28, %c16] : memref<256x72xf32, #tpu.memory_space<vmem>>, vector<256x8xf32>
    tpu.vector_store %arg8[%c0_28, %c16], %16 {strides = array<i32>} : memref<256x72xf32, #tpu.memory_space<vmem>>, vector<256x8xf32>,
    %c1_29 = arith.constant 1 : index
    %c0_30 = arith.constant 0 : index
    %c0_31 = arith.constant 0 : index
    %18 = vector.load %arg7[%c1_29, %c0_30, %c0_31] : memref<18x18x8xf32, #tpu.memory_space<vmem>>, vector<16x16x8xf32>
    %19 = vector.shape_cast %18 : vector<16x16x8xf32> to vector<256x8xf32>
    %c0_32 = arith.constant 0 : index
    %c24 = arith.constant 24 : index
    %20 = vector.load %arg8[%c0_32, %c24] : memref<256x72xf32, #tpu.memory_space<vmem>>, vector<256x8xf32>
    tpu.vector_store %arg8[%c0_32, %c24], %19 {strides = array<i32>} : memref<256x72xf32, #tpu.memory_space<vmem>>, vector<256x8xf32>,
    %c1_33 = arith.constant 1 : index
    %c1_34 = arith.constant 1 : index
    %c0_35 = arith.constant 0 : index
    %21 = vector.load %arg7[%c1_33, %c1_34, %c0_35] : memref<18x18x8xf32, #tpu.memory_space<vmem>>, vector<16x16x8xf32>
    %22 = vector.shape_cast %21 : vector<16x16x8xf32> to vector<256x8xf32>
    %c0_36 = arith.constant 0 : index
    %c32 = arith.constant 32 : index
    %23 = vector.load %arg8[%c0_36, %c32] : memref<256x72xf32, #tpu.memory_space<vmem>>, vector<256x8xf32>
    tpu.vector_store %arg8[%c0_36, %c32], %22 {strides = array<i32>} : memref<256x72xf32, #tpu.memory_space<vmem>>, vector<256x8xf32>,
    %c1_37 = arith.constant 1 : index
    %c2_38 = arith.constant 2 : index
    %c0_39 = arith.constant 0 : index
    %24 = vector.load %arg7[%c1_37, %c2_38, %c0_39] : memref<18x18x8xf32, #tpu.memory_space<vmem>>, vector<16x16x8xf32>
    %25 = vector.shape_cast %24 : vector<16x16x8xf32> to vector<256x8xf32>
    %c0_40 = arith.constant 0 : index
    %c40 = arith.constant 40 : index
    %26 = vector.load %arg8[%c0_40, %c40] : memref<256x72xf32, #tpu.memory_space<vmem>>, vector<256x8xf32>
    tpu.vector_store %arg8[%c0_40, %c40], %25 {strides = array<i32>} : memref<256x72xf32, #tpu.memory_space<vmem>>, vector<256x8xf32>,
    %c2_41 = arith.constant 2 : index
    %c0_42 = arith.constant 0 : index
    %c0_43 = arith.constant 0 : index
    %27 = vector.load %arg7[%c2_41, %c0_42, %c0_43] : memref<18x18x8xf32, #tpu.memory_space<vmem>>, vector<16x16x8xf32>
    %28 = vector.shape_cast %27 : vector<16x16x8xf32> to vector<256x8xf32>
    %c0_44 = arith.constant 0 : index
    %c48 = arith.constant 48 : index
    %29 = vector.load %arg8[%c0_44, %c48] : memref<256x72xf32, #tpu.memory_space<vmem>>, vector<256x8xf32>
    tpu.vector_store %arg8[%c0_44, %c48], %28 {strides = array<i32>} : memref<256x72xf32, #tpu.memory_space<vmem>>, vector<256x8xf32>,
    %c2_45 = arith.constant 2 : index
    %c1_46 = arith.constant 1 : index
    %c0_47 = arith.constant 0 : index
    %30 = vector.load %arg7[%c2_45, %c1_46, %c0_47] : memref<18x18x8xf32, #tpu.memory_space<vmem>>, vector<16x16x8xf32>
    %31 = vector.shape_cast %30 : vector<16x16x8xf32> to vector<256x8xf32>
    %c0_48 = arith.constant 0 : index
    %c56 = arith.constant 56 : index
    %32 = vector.load %arg8[%c0_48, %c56] : memref<256x72xf32, #tpu.memory_space<vmem>>, vector<256x8xf32>
    tpu.vector_store %arg8[%c0_48, %c56], %31 {strides = array<i32>} : memref<256x72xf32, #tpu.memory_space<vmem>>, vector<256x8xf32>,
    %c2_49 = arith.constant 2 : index
    %c2_50 = arith.constant 2 : index
    %c0_51 = arith.constant 0 : index
    %33 = vector.load %arg7[%c2_49, %c2_50, %c0_51] : memref<18x18x8xf32, #tpu.memory_space<vmem>>, vector<16x16x8xf32>
    %34 = vector.shape_cast %33 : vector<16x16x8xf32> to vector<256x8xf32>
    %c0_52 = arith.constant 0 : index
    %c64 = arith.constant 64 : index
    %35 = vector.load %arg8[%c0_52, %c64] : memref<256x72xf32, #tpu.memory_space<vmem>>, vector<256x8xf32>
    tpu.vector_store %arg8[%c0_52, %c64], %34 {strides = array<i32>} : memref<256x72xf32, #tpu.memory_space<vmem>>, vector<256x8xf32>,
    %c0_53 = arith.constant 0 : index
    %c0_54 = arith.constant 0 : index
    %36 = vector.load %arg8[%c0_53, %c0_54] : memref<256x72xf32, #tpu.memory_space<vmem>>, vector<256x72xf32>
    %c0_55 = arith.constant 0 : index
    %c0_56 = arith.constant 0 : index
    %37 = vector.load %arg2[%c0_55, %c0_56] : memref<72x264xf32, #tpu.memory_space<vmem>>, vector<72x264xf32>
    %cst_57 = arith.constant dense<0.000000e+00> : vector<256x264xf32>
    %38 = tpu.matmul %36, %37, %cst_57 {dimension_numbers = #tpu.dot_dimension_numbers<[1], [0], [0], [1], [0, 0, 1, 1], [], []>} : vector<256x72xf32>, vector<72x264xf32>, vector<256x264xf32> -> vector<256x264xf32>
    %39 = vector.extract_strided_slice %38 {offsets = [0, 0], sizes = [256, 256], strides = [1, 1]} : vector<256x264xf32> to vector<256x256xf32>
    %40 = vector.shape_cast %39 : vector<256x256xf32> to vector<16x16x256xf32>
    %c0_58 = arith.constant 0 : index
    %c0_59 = arith.constant 0 : index
    %c0_60 = arith.constant 0 : index
    %c0_61 = arith.constant 0 : index
    %41 = vector.load %arg3[%c0_58, %c0_59, %c0_60, %c0_61] : memref<1x16x16x256xf32, #tpu.memory_space<vmem>>, vector<1x16x16x256xf32>
    %42 = vector.shape_cast %41 : vector<1x16x16x256xf32> to vector<16x16x256xf32>
    %43 = vector.shape_cast %40 : vector<16x16x256xf32> to vector<1x16x16x256xf32>
    tpu.vector_store %arg3[%c0_58, %c0_59, %c0_60, %c0_61], %43 {strides = array<i32>} : memref<1x16x16x256xf32, #tpu.memory_space<vmem>>, vector<1x16x16x256xf32>,
    %44 = vector.extract_strided_slice %38 {offsets = [0, 256], sizes = [256, 8], strides = [1, 1]} : vector<256x264xf32> to vector<256x8xf32>
    %45 = vector.shape_cast %44 : vector<256x8xf32> to vector<16x16x8xf32>
    %c0_62 = arith.constant 0 : index
    %c0_63 = arith.constant 0 : index
    %c0_64 = arith.constant 0 : index
    %c0_65 = arith.constant 0 : index
    %46 = vector.load %arg4[%c0_62, %c0_63, %c0_64, %c0_65] : memref<1x16x16x8xf32, #tpu.memory_space<vmem>>, vector<1x16x16x8xf32>
    %47 = vector.shape_cast %46 : vector<1x16x16x8xf32> to vector<16x16x8xf32>
    %48 = vector.shape_cast %45 : vector<16x16x8xf32> to vector<1x16x16x8xf32>
    tpu.vector_store %arg4[%c0_62, %c0_63, %c0_64, %c0_65], %48 {strides = array<i32>} : memref<1x16x16x8xf32, #tpu.memory_space<vmem>>, vector<1x16x16x8xf32>,
    %cst_66 = arith.constant dense<0.000000e+00> : vector<264xf32>
    %49 = vector.multi_reduction <add>, %38, %cst_66 [0] : vector<256x264xf32> to vector<264xf32>
    %50 = vector.shape_cast %49 : vector<264xf32> to vector<1x264xf32>
    %c0_67 = arith.constant 0 : index
    %c0_68 = arith.constant 0 : index
    %c0_69 = arith.constant 0 : index
    %51 = vector.load %arg5[%c0_67, %c0_68, %c0_69] : memref<1x1x264xf32, #tpu.memory_space<vmem>>, vector<1x1x264xf32>
    %52 = vector.shape_cast %51 : vector<1x1x264xf32> to vector<1x264xf32>
    %53 = vector.shape_cast %50 : vector<1x264xf32> to vector<1x1x264xf32>
    tpu.vector_store %arg5[%c0_67, %c0_68, %c0_69], %53 {strides = array<i32>} : memref<1x1x264xf32, #tpu.memory_space<vmem>>, vector<1x1x264xf32>,
    %54 = arith.mulf %38, %38 : vector<256x264xf32>
    %cst_70 = arith.constant dense<0.000000e+00> : vector<264xf32>
    %55 = vector.multi_reduction <add>, %54, %cst_70 [0] : vector<256x264xf32> to vector<264xf32>
    %56 = vector.shape_cast %55 : vector<264xf32> to vector<1x264xf32>
    %c0_71 = arith.constant 0 : index
    %c0_72 = arith.constant 0 : index
    %c0_73 = arith.constant 0 : index
    %57 = vector.load %arg6[%c0_71, %c0_72, %c0_73] : memref<1x1x264xf32, #tpu.memory_space<vmem>>, vector<1x1x264xf32>
    %58 = vector.shape_cast %57 : vector<1x1x264xf32> to vector<1x264xf32>
    %59 = vector.shape_cast %56 : vector<1x264xf32> to vector<1x1x264xf32>
    tpu.vector_store %arg6[%c0_71, %c0_72, %c0_73], %59 {strides = array<i32>} : memref<1x1x264xf32, #tpu.memory_space<vmem>>, vector<1x1x264xf32>,
    return
  }
  func.func @transform_0(%arg0: i32) -> (i32, i32, i32, i32) {
    %c0_i32 = arith.constant 0 : i32
    %c0_i32_0 = arith.constant 0 : i32
    %c0_i32_1 = arith.constant 0 : i32
    %c0_i32_2 = arith.constant 0 : i32
    return %arg0, %c0_i32, %c0_i32_0, %c0_i32_1 : i32, i32, i32, i32
  }
  func.func @transform_1(%arg0: i32) -> (i32, i32) {
    %c0_i32 = arith.constant 0 : i32
    %c0_i32_0 = arith.constant 0 : i32
    %c0_i32_1 = arith.constant 0 : i32
    return %c0_i32, %c0_i32_0 : i32, i32
  }
  func.func @transform_2(%arg0: i32) -> (i32, i32, i32, i32) {
    %c0_i32 = arith.constant 0 : i32
    %c0_i32_0 = arith.constant 0 : i32
    %c0_i32_1 = arith.constant 0 : i32
    %c0_i32_2 = arith.constant 0 : i32
    return %arg0, %c0_i32, %c0_i32_0, %c0_i32_1 : i32, i32, i32, i32
  }
  func.func @transform_3(%arg0: i32) -> (i32, i32, i32, i32) {
    %c0_i32 = arith.constant 0 : i32
    %c0_i32_0 = arith.constant 0 : i32
    %c0_i32_1 = arith.constant 0 : i32
    %c0_i32_2 = arith.constant 0 : i32
    return %arg0, %c0_i32, %c0_i32_0, %c0_i32_1 : i32, i32, i32, i32
  }
  func.func @transform_4(%arg0: i32) -> (i32, i32, i32) {
    %c0_i32 = arith.constant 0 : i32
    %c0_i32_0 = arith.constant 0 : i32
    %c0_i32_1 = arith.constant 0 : i32
    return %arg0, %c0_i32, %c0_i32_0 : i32, i32, i32
  }
  func.func @transform_5(%arg0: i32) -> (i32, i32, i32) {
    %c0_i32 = arith.constant 0 : i32
    %c0_i32_0 = arith.constant 0 : i32
    %c0_i32_1 = arith.constant 0 : i32
    return %arg0, %c0_i32, %c0_i32_0 : i32, i32, i32
  }
}

</mosaic_0001>

<bundles_post_ra>
// kernel: tpu_custom_call.1
= control target key start
LH: loop header
LB: loop body
LE: loop exit
PB: predicated region body
PF: predicated region fallthrough
CT: control target
= control target key end

     0   :  { %11 = vsyncpa [#allocation5], 0  ;;  %s5524_s0 = inlined_call_operand.vmem [shape: f32[2,16,16,8], index: 0, kind: input, shape index: {}]   ;;  %s5525_s1 = inlined_call_operand.vmem [shape: f32[72,264], index: 1, kind: input, shape index: {}]   ;;  %s5526_s2 = inlined_call_operand.hbm [shape: f32[2,16,16,256], index: 2, kind: output, shape index: {0}]   ;;  %s5527_s3 = inlined_call_operand.vmem [shape: f32[2,16,16,8], index: 3, kind: output, shape index: {1}]   ;;  %s5528_s4 = inlined_call_operand.hbm [shape: f32[2,1,264], index: 4, kind: output, shape index: {2}]   ;;  %s5529_s5 = inlined_call_operand.hbm [shape: f32[2,1,264], index: 5, kind: output, shape index: {3}]  }
   0x1   :  { %13 = vsyncpa [#allocation5 + $0x1], 0 }
   0x2   :  { %14 = vsyncpa [#allocation7], 0 }
   0x3   :  { %16 = vsyncpa [#allocation7 + $0x1], 0  ;;  %s3550_s18 = smov 0   ;;  %s3552_s19 = smov 0  }
   0x4   :  { %s3554_s20 = smov 0   ;;  %s3556_s21 = smov 0  }
   0x5 LB: > { %s3571_s22 = sadd.s32 4294967295, %s3508_s21   ;;  %s5545_s23 = sadd.s32 4294967294, %s3508_s21   ;;  %s3508_s21 = sphi %s3556_s21, %s5609_s21   ;;  %s3504_s20 = sphi %s3554_s20, %s5608_s20   ;;  %s3500_s19 = sphi %s3552_s19, %s5607_s19   ;;  %s3496_s18 = sphi %s3550_s18, %s5606_s18  }
   0x6   : > { %s3575_s24 = sadd.s32 1, %s3508_s21   ;;  %s76_s25 = sadd.s32 1, %s3504_s20 }
   0x7   : > { %s73_s26 = ssub.s32 %s3508_s21, %s3575_s24  ;;  %p86_p0 = scmp.ne.s32.totalorder %s3504_s20, %s3500_s19 }
   0x8   : > { %p74_p1 = scmp.eq.s32.totalorder %s73_s26, 0  ;;  %p87_p2 = scmp.eq.s32.totalorder %s3571_s22, 1 }
   0x9   : > { %p92_p3 = scmp.ne.s32.totalorder %s3500_s19, %s3496_s18  ;;  %p93_p4 = scmp.eq.s32.totalorder %s5545_s23, 1 }
   0xa   : > { %s3588_s27 = scalar_select %p74_p1, %s3504_s20, %s76_s25  }
   0xb   : > { %p3590_p5 = por %p87_p2, %p86_p0  ;;  %p3594_p6 = por %p93_p4, %p92_p3 }
   0xc   : > { %p3185_p7 = scmp.ge.s32.totalorder %s3508_s21, 1  ;;  %p200_p8 = scmp.lt.s32.totalorder %s3508_s21, 3 }
   0xe   : > { %p201_p9 = pnand %p3185_p7, %p200_p8 }
  0x10   : > { %204 = sbr.rel (%p201_p9) target bundleno = 1051 (0x41b), region = 28 }
  0x15   : > { %vm285_vm0 = vcmask 64512   ;;  %v3510_v0 = vmov 0.0   ;;  %vm294_vm1 = vcmask 57344   ;;  %s3511_s30 = smov 8   ;;  %p243_p10 = scmp.lt.s32.totalorder %s3571_s22, 1  ;;  %vm288_vm2 = vcmask 58368  }
  0x16   : > { %286 = vst.msk [vmem:[#allocation2] sm:$0xff] %vm285_vm0, %v3510_v0  ;;  %vm588_vm3 = vcmask 130112   ;;  %s3512_s11 = smov 16   ;;  %s3513_s12 = smov 24   ;;  %vm781_vm4 = vcmask 195712   ;;  %vm974_vm5 = vcmask 261312  }
  0x17   : > { %287 = vst.msk [vmem:[#allocation2 + $0x8] sm:$0xff] %vm285_vm0, %v3510_v0  ;;  %s3628_s6 = scalar_select %p243_p10, %s3571_s22, 1  ;;  %vm1167_vm6 = vcmask 326912   ;;  %vm1360_vm7 = vcmask 392512   ;;  %vm1554_vm8 = vcmask 458112   ;;  %vm1747_vm9 = vcmask 523712  }
  0x18   : > { %295 = vst.msk [vmem:[#allocation2] sm:$0x1] %vm294_vm1, %v3510_v0  ;;  %s3514_s13 = smov 32   ;;  %s3515_s14 = smov 48   ;;  %vm1940_vm10 = vcmask 589312   ;;  %vm2032_vm11 = vcmask 588800  }
  0x19   : > { %291 = vst.msk [vmem:[#allocation2 + $0x198] sm:$0xff] %vm285_vm0, %v3510_v0  ;;  %s3292_s7 = sshll.u32 %s3628_s6, 8  ;;  %s3516_s15 = smov 56  }
  0x1a   : > { %292 = vst.msk [vmem:[#allocation2 + $0x1a0] sm:$0xff] %vm285_vm0, %v3510_v0  ;;  %s3643_s10 = scalar_lea.vmem %s5524_s0, %s3292_s7  ;;  %s3517_s16 = smov 40  }
  0x1b   : > { %296 = vst.msk [vmem:[#allocation2 + $0x18] sm:$0x1] %vm294_vm1, %v3510_v0  ;;  %v253_v2 = vld [vmem:[%s3643_s10] sm:$0xff]  ;;  %v254_v3 = vld [vmem:[%s3643_s10 + $0x8] sm:$0xff]  ;;  %v260_v6 = vld [vmem:[%s3643_s10 + $0x38] sm:$0xff]  ;;  %s3518_s17 = smov 64   ;;  %s4687_s23 = scalar_lea.vmem %s5527_s3, %s3292_s7 }
  0x1c   : > { %297 = vst.msk [vmem:[#allocation2 + $0x30] sm:$0x1] %vm294_vm1, %v3510_v0  ;;  %v257_v4 = vld [vmem:[%s3643_s10 + $0x20] sm:$0xff]  ;;  %v258_v5 = vld [vmem:[%s3643_s10 + $0x28] sm:$0xff]  ;;  %v255_v9 = vld [vmem:[%s3643_s10 + $0x10] sm:$0xff]  ;;  %s3294_s6 = sshll.u32 %s3571_s22, 9 }
  0x1d   : > { %298 = vst.msk [vmem:[#allocation2 + $0x48] sm:$0x1] %vm294_vm1, %v3510_v0  ;;  %v261_v8 = vld [vmem:[%s3643_s10 + $0x40] sm:$0xff]  ;;  %v263_v11 = vld [vmem:[%s3643_s10 + $0x50] sm:$0xff]  ;;  %v264_v12 = vld [vmem:[%s3643_s10 + $0x58] sm:$0xff] }
  0x1e   : > { %v428_v1 = vld [vmem:[#allocation2 + $0x1] sm:$0xff]  ;;  %299 = vst.msk [vmem:[#allocation2 + $0x60] sm:$0x1] %vm294_vm1, %v3510_v0  ;;  %v256_v13 = vld [vmem:[%s3643_s10 + $0x18] sm:$0xff]  ;;  %v267_v16 = vld [vmem:[%s3643_s10 + $0x70] sm:$0xff] }
  0x1f   : > { %492 = vrot.lane.b32.xlu0 %v428_v1, %s3511_s30  ;;  %300 = vst.msk [vmem:[#allocation2 + $0x78] sm:$0x1] %vm294_vm1, %v3510_v0  ;;  %v266_v14 = vld [vmem:[%s3643_s10 + $0x68] sm:$0xff]  ;;  %v259_v17 = vld [vmem:[%s3643_s10 + $0x30] sm:$0xff]  ;;  %v269_v19 = vld [vmem:[%s3643_s10 + $0x80] sm:$0xff] }
  0x20   : > { %301 = vst.msk [vmem:[#allocation2 + $0x90] sm:$0x1] %vm294_vm1, %v3510_v0  ;;  %v270_v20 = vld [vmem:[%s3643_s10 + $0x88] sm:$0xff]  ;;  %v272_v23 = vld [vmem:[%s3643_s10 + $0x98] sm:$0xff]  ;;  %v273_v26 = vld [vmem:[%s3643_s10 + $0xa0] sm:$0xff] }
  0x21   : > { %302 = vst.msk [vmem:[#allocation2 + $0xa8] sm:$0x1] %vm294_vm1, %v3510_v0  ;;  %v262_v21 = vld [vmem:[%s3643_s10 + $0x48] sm:$0xff]  ;;  %v265_v28 = vld [vmem:[%s3643_s10 + $0x60] sm:$0xff]  ;;  %v275_v29 = vld [vmem:[%s3643_s10 + $0xb0] sm:$0xff] }
  0x22   : > { %303 = vst.msk [vmem:[#allocation2 + $0xc0] sm:$0x1] %vm294_vm1, %v3510_v0  ;;  %v276_v32 = vld [vmem:[%s3643_s10 + $0xb8] sm:$0xff]  ;;  %v278_v35 = vld [vmem:[%s3643_s10 + $0xc8] sm:$0xff]  ;;  %v279_v38 = vld [vmem:[%s3643_s10 + $0xd0] sm:$0xff] }
  0x23   : > { %304 = vst.msk [vmem:[#allocation2 + $0xd8] sm:$0x1] %vm294_vm1, %v3510_v0  ;;  %v268_v34 = vld [vmem:[%s3643_s10 + $0x78] sm:$0xff]  ;;  %v271_v40 = vld [vmem:[%s3643_s10 + $0x90] sm:$0xff]  ;;  %v281_v41 = vld [vmem:[%s3643_s10 + $0xe0] sm:$0xff] }
  0x24   : > { %305 = vst.msk [vmem:[#allocation2 + $0xf0] sm:$0x1] %vm294_vm1, %v3510_v0  ;;  %v282_v44 = vld [vmem:[%s3643_s10 + $0xe8] sm:$0xff]  ;;  %v277_v50 = vld [vmem:[%s3643_s10 + $0xc0] sm:$0xff]  ;;  %v280_v54 = vld [vmem:[%s3643_s10 + $0xd8] sm:$0xff] }
  0x25   : > { %306 = vst.msk [vmem:[#allocation2 + $0x108] sm:$0x1] %vm294_vm1, %v3510_v0  ;;  %v274_v46 = vld [vmem:[%s3643_s10 + $0xa8] sm:$0xff]  ;;  %v364_v61 = vld [vmem:[#allocation2] sm:$0xff] }
  0x26   : > { %307 = vst.msk [vmem:[#allocation2 + $0x120] sm:$0x1] %vm294_vm1, %v3510_v0 }
  0x27   : > { %308 = vst.msk [vmem:[#allocation2 + $0x138] sm:$0x1] %vm294_vm1, %v3510_v0 }
  0x28   : > { %309 = vst.msk [vmem:[#allocation2 + $0x150] sm:$0x1] %vm294_vm1, %v3510_v0 }
  0x29   : > { %310 = vst.msk [vmem:[#allocation2 + $0x168] sm:$0x1] %vm294_vm1, %v3510_v0 }
  0x2a   : > { %311 = vst.msk [vmem:[#allocation2 + $0x180] sm:$0x1] %vm294_vm1, %v3510_v0 }
  0x2b   : > { %314 = vst.msk [vmem:[#allocation2 + $0x29] sm:$0x1] %vm294_vm1, %v3510_v0 }
  0x2c   : > { %315 = vst.msk [vmem:[#allocation2 + $0x41] sm:$0x1] %vm294_vm1, %v3510_v0 }
  0x2d   : > { %316 = vst.msk [vmem:[#allocation2 + $0x59] sm:$0x1] %vm294_vm1, %v3510_v0 }
  0x2e   : > { %317 = vst.msk [vmem:[#allocation2 + $0x71] sm:$0x1] %vm294_vm1, %v3510_v0 }
  0x2f   : > { %318 = vst.msk [vmem:[#allocation2 + $0x89] sm:$0x1] %vm294_vm1, %v3510_v0 }
  0x30   : > { %319 = vst.msk [vmem:[#allocation2 + $0xa1] sm:$0x1] %vm294_vm1, %v3510_v0 }
  0x31   : > { %320 = vst.msk [vmem:[#allocation2 + $0xb9] sm:$0x1] %vm294_vm1, %v3510_v0 }
  0x32   : > { %321 = vst.msk [vmem:[#allocation2 + $0xd1] sm:$0x1] %vm294_vm1, %v3510_v0 }
  0x33   : > { %322 = vst.msk [vmem:[#allocation2 + $0xe9] sm:$0x1] %vm294_vm1, %v3510_v0 }
  0x34   : > { %323 = vst.msk [vmem:[#allocation2 + $0x101] sm:$0x1] %vm294_vm1, %v3510_v0 }
  0x35   : > { %324 = vst.msk [vmem:[#allocation2 + $0x119] sm:$0x1] %vm294_vm1, %v3510_v0 }
  0x36   : > { %325 = vst.msk [vmem:[#allocation2 + $0x131] sm:$0x1] %vm294_vm1, %v3510_v0 }
  0x37   : > { %326 = vst.msk [vmem:[#allocation2 + $0x149] sm:$0x1] %vm294_vm1, %v3510_v0 }
  0x38   : > { %327 = vst.msk [vmem:[#allocation2 + $0x161] sm:$0x1] %vm294_vm1, %v3510_v0 }
  0x39   : > { %328 = vst.msk [vmem:[#allocation2 + $0x179] sm:$0x1] %vm294_vm1, %v3510_v0 }
  0x3a   : > { %329 = vst.msk [vmem:[#allocation2 + $0x191] sm:$0x1] %vm294_vm1, %v3510_v0 }
  0x3b   : > { %332 = vst.msk [vmem:[#allocation2 + $0x19] sm:$0xff] %vm285_vm0, %v253_v2 }
  0x3c   : > { %312 = vst.msk [vmem:[#allocation2 + $0x198] sm:$0x1] %vm294_vm1, %v3510_v0 }
  0x3d   : > { %289 = vst.msk [vmem:[#allocation2 + $0x10] sm:$0x3] %vm288_vm2, %v3510_v0 }
  0x3e   : > { %293 = vst.msk [vmem:[#allocation2 + $0x1a8] sm:$0x3] %vm288_vm2, %v3510_v0 }
  0x3f   : > { %313 = vst.msk [vmem:[#allocation2 + $0x11] sm:$0x1] %vm294_vm1, %v3510_v0 }
  0x40   : > { %333 = vst.msk [vmem:[#allocation2 + $0x21] sm:$0xff] %vm285_vm0, %v254_v3 }
  0x41   : > { %330 = vst.msk [vmem:[#allocation2 + $0x1a9] sm:$0x1] %vm294_vm1, %v3510_v0 }
  0x42   : > { %v3660_v7 = vld [vmem:[#allocation2 + $0x19] sm:$0xff]  ;;  %336 = vst.msk [vmem:[#allocation2 + $0x49] sm:$0xff] %vm285_vm0, %v257_v4  ;;  %v365_v4 = vld [vmem:[#allocation2 + $0x8] sm:$0xff] }
  0x43   : > { %496 = vrot.lane.b32.xlu1 %v3660_v7, %s3511_s30  ;;  %337 = vst.msk [vmem:[#allocation2 + $0x51] sm:$0xff] %vm285_vm0, %v258_v5  ;;  %v3826_v2 = vld [vmem:[#allocation2 + $0x18] sm:$0xff] }
  0x44   : > { %v429_v10 = vld [vmem:[#allocation2 + $0x9] sm:$0xff]  ;;  %339 = vst.msk [vmem:[#allocation2 + $0x69] sm:$0xff] %vm285_vm0, %v260_v6 }
  0x45   : > { %494 = vrot.lane.b32.xlu0 %v429_v10, %s3511_s30  ;;  %340 = vst.msk [vmem:[#allocation2 + $0x79] sm:$0xff] %vm285_vm0, %v261_v8  ;;  %v621_v8 = vld [vmem:[#allocation2 + $0x2] sm:$0xff] }
  0x46   : > { %334 = vst.msk [vmem:[#allocation2 + $0x31] sm:$0xff] %vm285_vm0, %v255_v9  ;;  %v622_v0 = vld [vmem:[#allocation2 + $0xa] sm:$0xff] }
  0x47   : > { %342 = vst.msk [vmem:[#allocation2 + $0x91] sm:$0xff] %vm285_vm0, %v263_v11  ;;  %v3677_v15 = vld [vmem:[#allocation2 + $0x21] sm:$0xff] }
  0x48   : > { %343 = vst.msk [vmem:[#allocation2 + $0x99] sm:$0xff] %vm285_vm0, %v264_v12  ;;  %v3837_v5 = vld [vmem:[#allocation2 + $0x1a] sm:$0xff] }
  0x49   : > { %335 = vst.msk [vmem:[#allocation2 + $0x39] sm:$0xff] %vm285_vm0, %v256_v13  ;;  %v3683_v18 = vld [vmem:[#allocation2 + $0x49] sm:$0xff]  ;;  %v3843_v9 = vld [vmem:[#allocation2 + $0x20] sm:$0xff] }
  0x4a   : > { %345 = vst.msk [vmem:[#allocation2 + $0xb1] sm:$0xff] %vm285_vm0, %v266_v14  ;;  %v3703_v24 = vld [vmem:[#allocation2 + $0x51] sm:$0xff]  ;;  %v3854_v11 = vld [vmem:[#allocation2 + $0x48] sm:$0xff] }
  0x4b   : > { %498 = vrot.lane.b32.xlu1 %v3677_v15, %s3511_s30  ;;  %346 = vst.msk [vmem:[#allocation2 + $0xc1] sm:$0xff] %vm285_vm0, %v267_v16  ;;  %v3706_v25 = vld [vmem:[#allocation2 + $0x69] sm:$0xff]  ;;  %v3860_v13 = vld [vmem:[#allocation2 + $0x52] sm:$0xff] }
  0x4c   : > { %338 = vst.msk [vmem:[#allocation2 + $0x61] sm:$0xff] %vm285_vm0, %v259_v17  ;;  %v3722_v30 = vld [vmem:[#allocation2 + $0x79] sm:$0xff]  ;;  %v3864_v14 = vld [vmem:[#allocation2 + $0x22] sm:$0xff]  ;;  %v3866_v16 = vld [vmem:[#allocation2 + $0x50] sm:$0xff] }
  0x4d   : > { %504 = vrot.lane.b32.xlu0 %v3683_v18, %s3511_s30  ;;  %v3695_v22 = vld [vmem:[#allocation2 + $0x31] sm:$0xff]  ;;  %348 = vst.msk [vmem:[#allocation2 + $0xd9] sm:$0xff] %vm285_vm0, %v269_v19 }
  0x4e   : > { %500 = vrot.lane.b32.xlu2 %v3695_v22, %s3511_s30  ;;  %349 = vst.msk [vmem:[#allocation2 + $0xe1] sm:$0xff] %vm285_vm0, %v270_v20  ;;  %v3724_v31 = vld [vmem:[#allocation2 + $0x91] sm:$0xff] }
  0x4f   : > { %341 = vst.msk [vmem:[#allocation2 + $0x81] sm:$0xff] %vm285_vm0, %v262_v21  ;;  %v3740_v36 = vld [vmem:[#allocation2 + $0x99] sm:$0xff]  ;;  %v3831_v3 = vld [vmem:[#allocation2 + $0x30] sm:$0xff] }
  0x50   : > { %351 = vst.msk [vmem:[#allocation2 + $0xf9] sm:$0xff] %vm285_vm0, %v272_v23  ;;  %v3711_v27 = vld [vmem:[#allocation2 + $0x39] sm:$0xff] }
  0x51   : > { %352 = vst.msk [vmem:[#allocation2 + $0x109] sm:$0xff] %vm285_vm0, %v273_v26  ;;  %v3742_v37 = vld [vmem:[#allocation2 + $0xb1] sm:$0xff]  ;;  %v3858_v12 = vld [vmem:[#allocation2 + $0x3a] sm:$0xff] }
  0x52   : > { %344 = vst.msk [vmem:[#allocation2 + $0xa9] sm:$0xff] %vm285_vm0, %v265_v28  ;;  %v3758_v42 = vld [vmem:[#allocation2 + $0xc1] sm:$0xff]  ;;  %v3839_v6 = vld [vmem:[#allocation2 + $0x32] sm:$0xff]  ;;  %v3884_v26 = vld [vmem:[#allocation2 + $0x4a] sm:$0xff] }
  0x53   : > { %506 = vrot.lane.b32.xlu1 %v3703_v24, %s3511_s30  ;;  %354 = vst.msk [vmem:[#allocation2 + $0x121] sm:$0xff] %vm285_vm0, %v275_v29  ;;  %v3729_v33 = vld [vmem:[#allocation2 + $0x61] sm:$0xff]  ;;  %v3849_v10 = vld [vmem:[#allocation2 + $0x38] sm:$0xff] }
  0x54   : > { %355 = vst.msk [vmem:[#allocation2 + $0x129] sm:$0xff] %vm285_vm0, %v276_v32  ;;  %v3760_v43 = vld [vmem:[#allocation2 + $0xd9] sm:$0xff]  ;;  %v3878_v19 = vld [vmem:[#allocation2 + $0x68] sm:$0xff]  ;;  %v3897_v32 = vld [vmem:[#allocation2 + $0x90] sm:$0xff] }
  0x55   : > { %510 = vrot.lane.b32.xlu0 %v3706_v25, %s3511_s30  ;;  %347 = vst.msk [vmem:[#allocation2 + $0xc9] sm:$0xff] %vm285_vm0, %v268_v34  ;;  %v3774_v47 = vld [vmem:[#allocation2 + $0xe1] sm:$0xff]  ;;  %v3886_v28 = vld [vmem:[#allocation2 + $0x78] sm:$0xff] }
  0x56   : > { %502 = vrot.lane.b32.xlu2 %v3711_v27, %s3511_s30  ;;  %357 = vst.msk [vmem:[#allocation2 + $0x141] sm:$0xff] %vm285_vm0, %v278_v35  ;;  %v3747_v39 = vld [vmem:[#allocation2 + $0x81] sm:$0xff] }
  0x57   : > { %358 = vst.msk [vmem:[#allocation2 + $0x151] sm:$0xff] %vm285_vm0, %v279_v38  ;;  %v3776_v48 = vld [vmem:[#allocation2 + $0xf9] sm:$0xff]  ;;  %v629_v20 = vld [vmem:[#allocation2 + $0x62] sm:$0xff] }
  0x58   : > { %350 = vst.msk [vmem:[#allocation2 + $0xf1] sm:$0xff] %vm285_vm0, %v271_v40  ;;  %v3788_v51 = vld [vmem:[#allocation2 + $0x109] sm:$0xff]  ;;  %v3872_v17 = vld [vmem:[#allocation2 + $0x60] sm:$0xff] }
  0x59   : > { %360 = vst.msk [vmem:[#allocation2 + $0x169] sm:$0xff] %vm285_vm0, %v281_v41  ;;  %v3765_v45 = vld [vmem:[#allocation2 + $0xa9] sm:$0xff]  ;;  %v631_v23 = vld [vmem:[#allocation2 + $0x7a] sm:$0xff] }
  0x5a   : > { %361 = vst.msk [vmem:[#allocation2 + $0x171] sm:$0xff] %vm285_vm0, %v282_v44  ;;  %v3790_v52 = vld [vmem:[#allocation2 + $0x121] sm:$0xff]  ;;  %v3903_v40 = vld [vmem:[#allocation2 + $0x6a] sm:$0xff]  ;;  %v3905_v41 = vld [vmem:[#allocation2 + $0x98] sm:$0xff] }
  0x5b   : > { %512 = vrot.lane.b32.xlu1 %v3722_v30, %s3511_s30  ;;  %353 = vst.msk [vmem:[#allocation2 + $0x111] sm:$0xff] %vm285_vm0, %v274_v46  ;;  %v3802_v55 = vld [vmem:[#allocation2 + $0x129] sm:$0xff]  ;;  %v3891_v29 = vld [vmem:[#allocation2 + $0x80] sm:$0xff] }
  0x5c   : > { %v3780_v49 = vld [vmem:[#allocation2 + $0xc9] sm:$0xff]  ;;  %356 = vst.msk [vmem:[#allocation2 + $0x139] sm:$0xff] %vm285_vm0, %v277_v50  ;;  %v634_v38 = vld [vmem:[#allocation2 + $0x9a] sm:$0xff] }
  0x5d   : > { %516 = vrot.lane.b32.xlu0 %v3724_v31, %s3511_s30  ;;  %359 = vst.msk [vmem:[#allocation2 + $0x159] sm:$0xff] %vm285_vm0, %v280_v54  ;;  %v3804_v56 = vld [vmem:[#allocation2 + $0x141] sm:$0xff]  ;;  %v3917_v54 = vld [vmem:[#allocation2 + $0xb0] sm:$0xff] }
  0x5e   : > { %508 = vrot.lane.b32.xlu2 %v3729_v33, %s3511_s30  ;;  %v3814_v58 = vld [vmem:[#allocation2 + $0x151] sm:$0xff]  ;;  %396 = vst.msk [vmem:[#allocation3] sm:$0xff] %vm285_vm0, %v364_v61  ;;  %v632_v34 = vld [vmem:[#allocation2 + $0x82] sm:$0xff] }
  0x5f   : > { %v3794_v53 = vld [vmem:[#allocation2 + $0xf1] sm:$0xff]  ;;  %5557 = vst [vmem:[#allocation11_spill] sm:$0xff] %v3814_v58  ;;  %v3910_v46 = vld [vmem:[#allocation2 + $0xa8] sm:$0xff] }
  0x60   : > { %v458_v59 = vld [vmem:[#allocation2 + $0x169] sm:$0xff]  ;;  %398 = vst.msk [vmem:[#allocation3 + $0x10] sm:$0xff] %vm285_vm0, %v3826_v2 }
  0x61   : > { %v459_v62 = vld [vmem:[#allocation2 + $0x171] sm:$0xff]  ;;  %400 = vst.msk [vmem:[#allocation3 + $0x20] sm:$0xff] %vm285_vm0, %v3831_v3 }
  0x62   : > { %v3808_v57 = vld [vmem:[#allocation2 + $0x111] sm:$0xff]  ;;  %397 = vst.msk [vmem:[#allocation3 + $0x8] sm:$0xff] %vm285_vm0, %v365_v4  ;;  %v3929_v4 = vld [vmem:[#allocation2 + $0xc8] sm:$0xff] }
  0x63   : > { %518 = vrot.lane.b32.xlu1 %v3740_v36, %s3511_s30  ;;  %v3818_v60 = vld [vmem:[#allocation2 + $0x139] sm:$0xff]  ;;  %5558 = vst [vmem:[#allocation12_spill] sm:$0xff] %v3839_v6 }
  0x64   : > { %v457_v1 = vld [vmem:[#allocation2 + $0x159] sm:$0xff]  ;;  %399 = vst.msk [vmem:[#allocation3 + $0x18] sm:$0xff] %vm285_vm0, %v3843_v9 }
  0x65   : > { %522 = vrot.lane.b32.xlu0 %v3742_v37, %s3511_s30  ;;  %401 = vst.msk [vmem:[#allocation3 + $0x28] sm:$0xff] %vm285_vm0, %v3849_v10 }
  0x66   : > { %514 = vrot.lane.b32.xlu2 %v3747_v39, %s3511_s30  ;;  %402 = vst.msk [vmem:[#allocation3 + $0x30] sm:$0xff] %vm285_vm0, %v3854_v11 }
  0x67   : > { %5559 = vst [vmem:[#allocation13_spill] sm:$0xff] %v3858_v12 }
  0x68   : > { %5560 = vst [vmem:[#allocation14_spill] sm:$0xff] %v3860_v13 }
  0x69   : > { %403 = vst.msk [vmem:[#allocation3 + $0x38] sm:$0xff] %vm285_vm0, %v3866_v16 }
  0x6a   : > { %404 = vst.msk [vmem:[#allocation3 + $0x40] sm:$0xff] %vm285_vm0, %v3872_v17 }
  0x6b   : > { %524 = vrot.lane.b32.xlu1 %v3758_v42, %s3511_s30  ;;  %405 = vst.msk [vmem:[#allocation3 + $0x48] sm:$0xff] %vm285_vm0, %v3878_v19 }
  0x6c   : > { %5561 = vst [vmem:[#allocation15_spill] sm:$0xff] %v3884_v26 }
  0x6d   : > { %528 = vrot.lane.b32.xlu0 %v3760_v43, %s3511_s30  ;;  %406 = vst.msk [vmem:[#allocation3 + $0x50] sm:$0xff] %vm285_vm0, %v3886_v28 }
  0x6e   : > { %520 = vrot.lane.b32.xlu2 %v3765_v45, %s3511_s30  ;;  %407 = vst.msk [vmem:[#allocation3 + $0x58] sm:$0xff] %vm285_vm0, %v3891_v29 }
  0x6f   : > { %408 = vst.msk [vmem:[#allocation3 + $0x60] sm:$0xff] %vm285_vm0, %v3897_v32 }
  0x70   : > { %5562 = vst [vmem:[#allocation16_spill] sm:$0xff] %v3903_v40 }
  0x71   : > { %409 = vst.msk [vmem:[#allocation3 + $0x68] sm:$0xff] %vm285_vm0, %v3905_v41 }
  0x72   : > { %410 = vst.msk [vmem:[#allocation3 + $0x70] sm:$0xff] %vm285_vm0, %v3910_v46 }
  0x73   : > { %530 = vrot.lane.b32.xlu1 %v3774_v47, %s3511_s30  ;;  %411 = vst.msk [vmem:[#allocation3 + $0x78] sm:$0xff] %vm285_vm0, %v3917_v54 }
  0x74   : > { %413 = vst.msk [vmem:[#allocation3 + $0x88] sm:$0xff] %vm285_vm0, %v3929_v4 }
  0x75   : > { %534 = vrot.lane.b32.xlu0 %v3776_v48, %s3511_s30 }
  0x76   : > { %526 = vrot.lane.b32.xlu2 %v3780_v49, %s3511_s30 }
  0x7b   : > { %536 = vrot.lane.b32.xlu1 %v3788_v51, %s3511_s30 }
  0x7d   : > { %540 = vrot.lane.b32.xlu0 %v3790_v52, %s3511_s30 }
  0x7e   : > { %532 = vrot.lane.b32.xlu2 %v3794_v53, %s3511_s30 }
  0x83   : > { %542 = vrot.lane.b32.xlu1 %v3802_v55, %s3511_s30 }
  0x85   : > { %546 = vrot.lane.b32.xlu0 %v3804_v56, %s3511_s30 }
  0x86   : > { %538 = vrot.lane.b32.xlu2 %v3808_v57, %s3511_s30 }
  0x8b   : > { %548 = vrot.lane.b32.xlu1 %v3814_v58, %s3511_s30  ;;  %v4016_v58 = vld [vmem:[#allocation2 + $0x15a] sm:$0xff] }
  0x8c   : > { %5565 = vst [vmem:[#allocation19_spill] sm:$0xff] %v4016_v58 }
  0x8d   : > { %552 = vrot.lane.b32.xlu0 %v458_v59, %s3511_s30  ;;  %v635_v59 = vld [vmem:[#allocation2 + $0xaa] sm:$0xff] }
  0x8e   : > { %544 = vrot.lane.b32.xlu2 %v3818_v60, %s3511_s30 }
  0x91   : > { %v493_v63 = vpop.permute.xlu0 %492 }
  0x92   : > { %589 = vst.msk [vmem:[#allocation3] sm:$0xff] %vm588_vm3, %v493_v63  ;;  %v633_v63 = vld [vmem:[#allocation2 + $0x92] sm:$0xff] }
  0x93   : > { %554 = vrot.lane.b32.xlu1 %v459_v62, %s3511_s30  ;;  %v637_v62 = vld [vmem:[#allocation2 + $0xc2] sm:$0xff] }
  0x95   : > { %687 = vrot.lane.b32.xlu0 %v622_v0, %s3512_s11  ;;  %v3924_v0 = vld [vmem:[#allocation2 + $0xc0] sm:$0xff] }
  0x96   : > { %550 = vrot.lane.b32.xlu2 %v457_v1, %s3511_s30  ;;  %412 = vst.msk [vmem:[#allocation3 + $0x80] sm:$0xff] %vm285_vm0, %v3924_v0  ;;  %s3406_s30 = scalar_lea.hbm %s5526_s2, 1024 }
  0x9b   : > { %689 = vrot.lane.b32.xlu1 %v3837_v5, %s3512_s11 }
  0x9d   : > { %693 = vrot.lane.b32.xlu0 %v3839_v6, %s3512_s11  ;;  %v4019_v6 = vld [vmem:[#allocation2 + $0x172] sm:$0xff] }
  0x9e   : > { %685 = vrot.lane.b32.xlu2 %v621_v8, %s3512_s11  ;;  %5566 = vst [vmem:[#allocation20_spill] sm:$0xff] %v4019_v6 }
  0xa3   : > { %695 = vrot.lane.b32.xlu1 %v3858_v12, %s3512_s11 }
  0xa5   : > { %699 = vrot.lane.b32.xlu0 %v3860_v13, %s3512_s11  ;;  %v3995_v13 = vld [vmem:[#allocation2 + $0x152] sm:$0xff] }
  0xa6   : > { %691 = vrot.lane.b32.xlu2 %v3864_v14, %s3512_s11  ;;  %5564 = vst [vmem:[#allocation18_spill] sm:$0xff] %v3995_v13 }
  0xa8   : > { %v501_v21 = vpop.permute.xlu2 %500 }
  0xa9   : > { %593 = vst.msk [vmem:[#allocation3 + $0x20] sm:$0xff] %vm588_vm3, %v501_v21  ;;  %v638_v21 = vld [vmem:[#allocation2 + $0xca] sm:$0xff] }
  0xab   : > { %701 = vrot.lane.b32.xlu1 %v629_v20, %s3512_s11  ;;  %v3935_v20 = vld [vmem:[#allocation2 + $0xd8] sm:$0xff] }
  0xac   : > { %414 = vst.msk [vmem:[#allocation3 + $0x90] sm:$0xff] %vm285_vm0, %v3935_v20 }
  0xad   : > { %705 = vrot.lane.b32.xlu0 %v631_v23, %s3512_s11 }
  0xae   : > { %697 = vrot.lane.b32.xlu2 %v3884_v26, %s3512_s11  ;;  %v4007_v26 = vld [vmem:[#allocation2 + $0x158] sm:$0xff] }
  0xaf   : > { %425 = vst.msk [vmem:[#allocation3 + $0xe8] sm:$0xff] %vm285_vm0, %v4007_v26 }
  0xb0   : > { %v503_v35 = vpop.permute.xlu2 %502 }
  0xb1   : > { %594 = vst.msk [vmem:[#allocation3 + $0x28] sm:$0xff] %vm588_vm3, %v503_v35  ;;  %v636_v35 = vld [vmem:[#allocation2 + $0xb2] sm:$0xff] }
  0xb3   : > { %707 = vrot.lane.b32.xlu1 %v632_v34, %s3512_s11  ;;  %v640_v34 = vld [vmem:[#allocation2 + $0xe2] sm:$0xff] }
  0xb5   : > { %711 = vrot.lane.b32.xlu0 %v634_v38, %s3512_s11  ;;  %v497_v44 = vpop.permute.xlu1 %496  ;;  %v3942_v38 = vld [vmem:[#allocation2 + $0xe0] sm:$0xff] }
  0xb6   : > { %591 = vst.msk [vmem:[#allocation3 + $0x10] sm:$0xff] %vm588_vm3, %v497_v44  ;;  %703 = vrot.lane.b32.xlu2 %v3903_v40, %s3512_s11  ;;  %v3992_v40 = vld [vmem:[#allocation2 + $0x13a] sm:$0xff] }
  0xb7   : > { %v495_v50 = vpop.permute.xlu0 %494  ;;  %415 = vst.msk [vmem:[#allocation3 + $0x98] sm:$0xff] %vm285_vm0, %v3942_v38 }
  0xb8   : > { %590 = vst.msk [vmem:[#allocation3 + $0x8] sm:$0xff] %vm588_vm3, %v495_v50  ;;  %v509_v61 = vpop.permute.xlu2 %508  ;;  %v3947_v50 = vld [vmem:[#allocation2 + $0xf0] sm:$0xff] }
  0xb9   : > { %597 = vst.msk [vmem:[#allocation3 + $0x40] sm:$0xff] %vm588_vm3, %v509_v61  ;;  %v3953_v61 = vld [vmem:[#allocation2 + $0xf8] sm:$0xff] }
  0xba   : > { %416 = vst.msk [vmem:[#allocation3 + $0xa0] sm:$0xff] %vm285_vm0, %v3947_v50 }
  0xbb   : > { %713 = vrot.lane.b32.xlu1 %v635_v59, %s3512_s11  ;;  %417 = vst.msk [vmem:[#allocation3 + $0xa8] sm:$0xff] %vm285_vm0, %v3953_v61 }
  0xbc   : > { %5563 = vst [vmem:[#allocation17_spill] sm:$0xff] %v3992_v40 }
  0xbd   : > { %717 = vrot.lane.b32.xlu0 %v637_v62, %s3512_s11  ;;  %v499_v1 = vpop.permute.xlu1 %498  ;;  %v641_v62 = vld [vmem:[#allocation2 + $0xf2] sm:$0xff] }
  0xbe   : > { %592 = vst.msk [vmem:[#allocation3 + $0x18] sm:$0xff] %vm588_vm3, %v499_v1  ;;  %709 = vrot.lane.b32.xlu2 %v633_v63, %s3512_s11  ;;  %v643_v1 = vld [vmem:[#allocation2 + $0x10a] sm:$0xff] }
  0xbf   : > { %v505_v8 = vpop.permute.xlu0 %504 }
  0xc0   : > { %595 = vst.msk [vmem:[#allocation3 + $0x30] sm:$0xff] %vm588_vm3, %v505_v8  ;;  %v515_v23 = vpop.permute.xlu2 %514  ;;  %v639_v8 = vld [vmem:[#allocation2 + $0xda] sm:$0xff] }
  0xc1   : > { %600 = vst.msk [vmem:[#allocation3 + $0x58] sm:$0xff] %vm588_vm3, %v515_v23 }
  0xc3   : > { %719 = vrot.lane.b32.xlu1 %v638_v21, %s3512_s11  ;;  %v3960_v21 = vld [vmem:[#allocation2 + $0x108] sm:$0xff] }
  0xc4   : > { %418 = vst.msk [vmem:[#allocation3 + $0xb0] sm:$0xff] %vm285_vm0, %v3960_v21 }
  0xc5   : > { %723 = vrot.lane.b32.xlu0 %v640_v34, %s3512_s11  ;;  %v507_v44 = vpop.permute.xlu1 %506  ;;  %v3965_v34 = vld [vmem:[#allocation2 + $0x110] sm:$0xff] }
  0xc6   : > { %596 = vst.msk [vmem:[#allocation3 + $0x38] sm:$0xff] %vm588_vm3, %v507_v44  ;;  %715 = vrot.lane.b32.xlu2 %v636_v35, %s3512_s11  ;;  %v3971_v44 = vld [vmem:[#allocation2 + $0x120] sm:$0xff] }
  0xc7   : > { %v511_v59 = vpop.permute.xlu0 %510  ;;  %419 = vst.msk [vmem:[#allocation3 + $0xb8] sm:$0xff] %vm285_vm0, %v3965_v34 }
  0xc8   : > { %598 = vst.msk [vmem:[#allocation3 + $0x48] sm:$0xff] %vm588_vm3, %v511_v59  ;;  %v521_v63 = vpop.permute.xlu2 %520  ;;  %v644_v59 = vld [vmem:[#allocation2 + $0x112] sm:$0xff] }
  0xc9   : > { %603 = vst.msk [vmem:[#allocation3 + $0x70] sm:$0xff] %vm588_vm3, %v521_v63  ;;  %v646_v63 = vld [vmem:[#allocation2 + $0x12a] sm:$0xff] }
  0xca   : > { %420 = vst.msk [vmem:[#allocation3 + $0xc0] sm:$0xff] %vm285_vm0, %v3971_v44 }
  0xcb   : > { %725 = vrot.lane.b32.xlu1 %v641_v62, %s3512_s11 }
  0xcd   : > { %729 = vrot.lane.b32.xlu0 %v643_v1, %s3512_s11  ;;  %v513_v23 = vpop.permute.xlu1 %512  ;;  %v642_v1 = vld [vmem:[#allocation2 + $0xfa] sm:$0xff] }
  0xce   : > { %599 = vst.msk [vmem:[#allocation3 + $0x50] sm:$0xff] %vm588_vm3, %v513_v23  ;;  %721 = vrot.lane.b32.xlu2 %v639_v8, %s3512_s11  ;;  %v3978_v8 = vld [vmem:[#allocation2 + $0x128] sm:$0xff] }
  0xcf   : > { %v517_v35 = vpop.permute.xlu0 %516  ;;  %421 = vst.msk [vmem:[#allocation3 + $0xc8] sm:$0xff] %vm285_vm0, %v3978_v8 }
  0xd0   : > { %601 = vst.msk [vmem:[#allocation3 + $0x60] sm:$0xff] %vm588_vm3, %v517_v35  ;;  %v527_v62 = vpop.permute.xlu2 %526  ;;  %v3983_v35 = vld [vmem:[#allocation2 + $0x138] sm:$0xff] }
  0xd1   : > { %606 = vst.msk [vmem:[#allocation3 + $0x88] sm:$0xff] %vm588_vm3, %v527_v62 }
  0xd2   : > { %422 = vst.msk [vmem:[#allocation3 + $0xd0] sm:$0xff] %vm285_vm0, %v3983_v35 }
  0xd3   : > { %731 = vrot.lane.b32.xlu1 %v644_v59, %s3512_s11  ;;  %v3989_v59 = vld [vmem:[#allocation2 + $0x140] sm:$0xff] }
  0xd4   : > { %423 = vst.msk [vmem:[#allocation3 + $0xd8] sm:$0xff] %vm285_vm0, %v3989_v59 }
  0xd5   : > { %735 = vrot.lane.b32.xlu0 %v646_v63, %s3512_s11  ;;  %v519_v23 = vpop.permute.xlu1 %518 }
  0xd6   : > { %602 = vst.msk [vmem:[#allocation3 + $0x68] sm:$0xff] %vm588_vm3, %v519_v23  ;;  %727 = vrot.lane.b32.xlu2 %v642_v1, %s3512_s11  ;;  %v645_v1 = vld [vmem:[#allocation2 + $0x122] sm:$0xff]  ;;  %v4001_v23 = vld [vmem:[#allocation2 + $0x150] sm:$0xff] }
  0xd7   : > { %v523_v62 = vpop.permute.xlu0 %522  ;;  %424 = vst.msk [vmem:[#allocation3 + $0xe0] sm:$0xff] %vm285_vm0, %v4001_v23 }
  0xd8   : > { %604 = vst.msk [vmem:[#allocation3 + $0x78] sm:$0xff] %vm588_vm3, %v523_v62  ;;  %v533_v63 = vpop.permute.xlu2 %532 }
  0xd9   : > { %609 = vst.msk [vmem:[#allocation3 + $0xa0] sm:$0xff] %vm588_vm3, %v533_v63 }
  0xdb   : > { %737 = vrot.lane.b32.xlu1 %v3992_v40, %s3512_s11  ;;  %v4013_v40 = vld [vmem:[#allocation2 + $0x168] sm:$0xff] }
  0xdc   : > { %426 = vst.msk [vmem:[#allocation3 + $0xf0] sm:$0xff] %vm285_vm0, %v4013_v40 }
  0xdd   : > { %741 = vrot.lane.b32.xlu0 %v3995_v13, %s3512_s11  ;;  %v525_v62 = vpop.permute.xlu1 %524 }
  0xde   : > { %605 = vst.msk [vmem:[#allocation3 + $0x80] sm:$0xff] %vm588_vm3, %v525_v62  ;;  %733 = vrot.lane.b32.xlu2 %v645_v1, %s3512_s11  ;;  %v4025_v1 = vld [vmem:[#allocation2 + $0x142] sm:$0xff]  ;;  %v4027_v62 = vld [vmem:[#allocation2 + $0x170] sm:$0xff] }
  0xdf   : > { %v529_v63 = vpop.permute.xlu0 %528  ;;  %427 = vst.msk [vmem:[#allocation3 + $0xf8] sm:$0xff] %vm285_vm0, %v4027_v62 }
  0xe0   : > { %607 = vst.msk [vmem:[#allocation3 + $0x90] sm:$0xff] %vm588_vm3, %v529_v63  ;;  %v539_v13 = vpop.permute.xlu2 %538 }
  0xe1   : > { %612 = vst.msk [vmem:[#allocation3 + $0xb8] sm:$0xff] %vm588_vm3, %v539_v13 }
  0xe3   : > { %743 = vrot.lane.b32.xlu1 %v4016_v58, %s3512_s11 }
  0xe5   : > { %747 = vrot.lane.b32.xlu0 %v4019_v6, %s3512_s11  ;;  %v531_v63 = vpop.permute.xlu1 %530  ;;  %v4040_v6 = vld [vmem:[#allocation2 + $0x16a] sm:$0xff] }
  0xe6   : > { %608 = vst.msk [vmem:[#allocation3 + $0x98] sm:$0xff] %vm588_vm3, %v531_v63  ;;  %739 = vrot.lane.b32.xlu2 %v4025_v1, %s3512_s11 }
  0xe7   : > { %v535_v13 = vpop.permute.xlu0 %534 }
  0xe8   : > { %610 = vst.msk [vmem:[#allocation3 + $0xa8] sm:$0xff] %vm588_vm3, %v535_v13  ;;  %v545_v58 = vpop.permute.xlu2 %544 }
  0xe9   : > { %615 = vst.msk [vmem:[#allocation3 + $0xd0] sm:$0xff] %vm588_vm3, %v545_v58 }
  0xeb   : > { %878 = vrot.lane.b32.xlu1 %v3826_v2, %s3513_s12 }
  0xed   : > { %882 = vrot.lane.b32.xlu0 %v3831_v3, %s3513_s12  ;;  %v537_v12 = vpop.permute.xlu1 %536 }
  0xee   : > { %611 = vst.msk [vmem:[#allocation3 + $0xb0] sm:$0xff] %vm588_vm3, %v537_v12  ;;  %745 = vrot.lane.b32.xlu2 %v4040_v6, %s3512_s11 }
  0xef   : > { %v541_v63 = vpop.permute.xlu0 %540 }
  0xf0   : > { %613 = vst.msk [vmem:[#allocation3 + $0xc0] sm:$0xff] %vm588_vm3, %v541_v63  ;;  %v551_v13 = vpop.permute.xlu2 %550 }
  0xf1   : > { %618 = vst.msk [vmem:[#allocation3 + $0xe8] sm:$0xff] %vm588_vm3, %v551_v13 }
  0xf3   : > { %884 = vrot.lane.b32.xlu1 %v3849_v10, %s3513_s12 }
  0xf5   : > { %888 = vrot.lane.b32.xlu0 %v3866_v16, %s3513_s12  ;;  %v543_v58 = vpop.permute.xlu1 %542 }
  0xf6   : > { %614 = vst.msk [vmem:[#allocation3 + $0xc8] sm:$0xff] %vm588_vm3, %v543_v58  ;;  %880 = vrot.lane.b32.xlu2 %v3843_v9, %s3513_s12 }
  0xf7   : > { %v547_v2 = vpop.permute.xlu0 %546 }
  0xf8   : > { %616 = vst.msk [vmem:[#allocation3 + $0xd8] sm:$0xff] %vm588_vm3, %v547_v2  ;;  %v686_v12 = vpop.permute.xlu2 %685 }
  0xf9   : > { %782 = vst.msk [vmem:[#allocation3] sm:$0xff] %vm781_vm4, %v686_v12  ;;  %v283_v12 = vld [vmem:[%s3643_s10 + $0xf0] sm:$0xff] }
  0xfa   : > { %362 = vst.msk [vmem:[#allocation2 + $0x181] sm:$0xff] %vm285_vm0, %v283_v12 }
  0xfb   : > { %890 = vrot.lane.b32.xlu1 %v3872_v17, %s3513_s12 }
  0xfd   : > { %894 = vrot.lane.b32.xlu0 %v3886_v28, %s3513_s12  ;;  %v549_v63 = vpop.permute.xlu1 %548 }
  0xfe   : > { %617 = vst.msk [vmem:[#allocation3 + $0xe0] sm:$0xff] %vm588_vm3, %v549_v63  ;;  %886 = vrot.lane.b32.xlu2 %v3854_v11, %s3513_s12  ;;  %v284_v63 = vld [vmem:[%s3643_s10 + $0xf8] sm:$0xff] }
  0xff   : > { %v553_v9 = vpop.permute.xlu0 %552  ;;  %363 = vst.msk [vmem:[#allocation2 + $0x189] sm:$0xff] %vm285_vm0, %v284_v63  ;;  %v5571_v63 = vld [vmem:[#allocation15_spill] sm:$0xff] }
 0x100   : > { %619 = vst.msk [vmem:[#allocation3 + $0xf0] sm:$0xff] %vm588_vm3, %v553_v9  ;;  %v692_v13 = vpop.permute.xlu2 %691 }
 0x101   : > { %785 = vst.msk [vmem:[#allocation3 + $0x18] sm:$0xff] %vm781_vm4, %v692_v13 }
 0x103   : > { %896 = vrot.lane.b32.xlu1 %v3891_v29, %s3513_s12 }
 0x105   : > { %900 = vrot.lane.b32.xlu0 %v3905_v41, %s3513_s12  ;;  %v555_v58 = vpop.permute.xlu1 %554 }
 0x106   : > { %620 = vst.msk [vmem:[#allocation3 + $0xf8] sm:$0xff] %vm588_vm3, %v555_v58  ;;  %892 = vrot.lane.b32.xlu2 %v3878_v19, %s3513_s12 }
 0x107   : > { %v688_v28 = vpop.permute.xlu0 %687 }
 0x108   : > { %783 = vst.msk [vmem:[#allocation3 + $0x8] sm:$0xff] %vm781_vm4, %v688_v28  ;;  %v698_v2 = vpop.permute.xlu2 %697 }
 0x109   : > { %788 = vst.msk [vmem:[#allocation3 + $0x30] sm:$0xff] %vm781_vm4, %v698_v2  ;;  %v4147_v2 = vld [vmem:[#allocation2 + $0x188] sm:$0xff] }
 0x10b   : > { %902 = vrot.lane.b32.xlu1 %v3910_v46, %s3513_s12 }
 0x10d   : > { %906 = vrot.lane.b32.xlu0 %v3924_v0, %s3513_s12  ;;  %v690_v29 = vpop.permute.xlu1 %689 }
 0x10e   : > { %784 = vst.msk [vmem:[#allocation3 + $0x10] sm:$0xff] %vm781_vm4, %v690_v29  ;;  %898 = vrot.lane.b32.xlu2 %v3897_v32, %s3513_s12 }
 0x10f   : > { %v694_v41 = vpop.permute.xlu0 %693 }
 0x110   : > { %786 = vst.msk [vmem:[#allocation3 + $0x20] sm:$0xff] %vm781_vm4, %v694_v41  ;;  %v704_v19 = vpop.permute.xlu2 %703 }
 0x111   : > { %791 = vst.msk [vmem:[#allocation3 + $0x48] sm:$0xff] %vm781_vm4, %v704_v19 }
 0x113   : > { %908 = vrot.lane.b32.xlu1 %v3929_v4, %s3513_s12 }
 0x115   : > { %912 = vrot.lane.b32.xlu0 %v3942_v38, %s3513_s12  ;;  %v696_v46 = vpop.permute.xlu1 %695 }
 0x116   : > { %787 = vst.msk [vmem:[#allocation3 + $0x28] sm:$0xff] %vm781_vm4, %v696_v46  ;;  %904 = vrot.lane.b32.xlu2 %v3917_v54, %s3513_s12  ;;  %v5568_v46 = vld [vmem:[#allocation12_spill] sm:$0xff] }
 0x117   : > { %v700_v32 = vpop.permute.xlu0 %699 }
 0x118   : > { %789 = vst.msk [vmem:[#allocation3 + $0x38] sm:$0xff] %vm781_vm4, %v700_v32  ;;  %v710_v0 = vpop.permute.xlu2 %709 }
 0x119   : > { %794 = vst.msk [vmem:[#allocation3 + $0x60] sm:$0xff] %vm781_vm4, %v710_v0 }
 0x11b   : > { %914 = vrot.lane.b32.xlu1 %v3947_v50, %s3513_s12 }
 0x11d   : > { %918 = vrot.lane.b32.xlu0 %v3960_v21, %s3513_s12  ;;  %v702_v4 = vpop.permute.xlu1 %701 }
 0x11e   : > { %790 = vst.msk [vmem:[#allocation3 + $0x40] sm:$0xff] %vm781_vm4, %v702_v4  ;;  %910 = vrot.lane.b32.xlu2 %v3935_v20, %s3513_s12 }
 0x11f   : > { %v706_v54 = vpop.permute.xlu0 %705 }
 0x120   : > { %792 = vst.msk [vmem:[#allocation3 + $0x50] sm:$0xff] %vm781_vm4, %v706_v54  ;;  %v716_v38 = vpop.permute.xlu2 %715 }
 0x121   : > { %797 = vst.msk [vmem:[#allocation3 + $0x78] sm:$0xff] %vm781_vm4, %v716_v38  ;;  %v5569_v38 = vld [vmem:[#allocation11_spill] sm:$0xff] }
 0x123   : > { %920 = vrot.lane.b32.xlu1 %v3965_v34, %s3513_s12 }
 0x125   : > { %924 = vrot.lane.b32.xlu0 %v3978_v8, %s3513_s12  ;;  %v708_v50 = vpop.permute.xlu1 %707 }
 0x126   : > { %793 = vst.msk [vmem:[#allocation3 + $0x58] sm:$0xff] %vm781_vm4, %v708_v50  ;;  %916 = vrot.lane.b32.xlu2 %v3953_v61, %s3513_s12 }
 0x127   : > { %v712_v21 = vpop.permute.xlu0 %711 }
 0x128   : > { %795 = vst.msk [vmem:[#allocation3 + $0x68] sm:$0xff] %vm781_vm4, %v712_v21  ;;  %v722_v20 = vpop.permute.xlu2 %721 }
 0x129   : > { %800 = vst.msk [vmem:[#allocation3 + $0x90] sm:$0xff] %vm781_vm4, %v722_v20 }
 0x12b   : > { %926 = vrot.lane.b32.xlu1 %v3983_v35, %s3513_s12 }
 0x12d   : > { %930 = vrot.lane.b32.xlu0 %v4001_v23, %s3513_s12  ;;  %v714_v34 = vpop.permute.xlu1 %713 }
 0x12e   : > { %796 = vst.msk [vmem:[#allocation3 + $0x70] sm:$0xff] %vm781_vm4, %v714_v34  ;;  %922 = vrot.lane.b32.xlu2 %v3971_v44, %s3513_s12  ;;  %v4133_v44 = vld [vmem:[#allocation2 + $0x180] sm:$0xff] }
 0x12f   : > { %v718_v61 = vpop.permute.xlu0 %717 }
 0x130   : > { %798 = vst.msk [vmem:[#allocation3 + $0x80] sm:$0xff] %vm781_vm4, %v718_v61  ;;  %v728_v8 = vpop.permute.xlu2 %727 }
 0x131   : > { %803 = vst.msk [vmem:[#allocation3 + $0xa8] sm:$0xff] %vm781_vm4, %v728_v8 }
 0x133   : > { %932 = vrot.lane.b32.xlu1 %v4007_v26, %s3513_s12 }
 0x135   : > { %936 = vrot.lane.b32.xlu0 %v4027_v62, %s3513_s12  ;;  %v720_v35 = vpop.permute.xlu1 %719 }
 0x136   : > { %799 = vst.msk [vmem:[#allocation3 + $0x88] sm:$0xff] %vm781_vm4, %v720_v35  ;;  %928 = vrot.lane.b32.xlu2 %v3989_v59, %s3513_s12 }
 0x137   : > { %v724_v9 = vpop.permute.xlu0 %723 }
 0x138   : > { %801 = vst.msk [vmem:[#allocation3 + $0x98] sm:$0xff] %vm781_vm4, %v724_v9  ;;  %v734_v13 = vpop.permute.xlu2 %733  ;;  %v5572_v9 = vld [vmem:[#allocation18_spill] sm:$0xff] }
 0x139   : > { %806 = vst.msk [vmem:[#allocation3 + $0xc0] sm:$0xff] %vm781_vm4, %v734_v13 }
 0x13b   : > { %938 = vrot.lane.b32.xlu1 %v4133_v44, %s3513_s12 }
 0x13d   : > { %1071 = vrot.lane.b32.xlu0 %v3660_v7, %s3514_s13  ;;  %v726_v58 = vpop.permute.xlu1 %725 }
 0x13e   : > { %802 = vst.msk [vmem:[#allocation3 + $0xa0] sm:$0xff] %vm781_vm4, %v726_v58  ;;  %934 = vrot.lane.b32.xlu2 %v4013_v40, %s3513_s12  ;;  %v1590_v58 = vld [vmem:[#allocation2 + $0x51] sm:$0xff] }
 0x13f   : > { %v730_v59 = vpop.permute.xlu0 %729 }
 0x140   : > { %804 = vst.msk [vmem:[#allocation3 + $0xb0] sm:$0xff] %vm781_vm4, %v730_v59  ;;  %v740_v28 = vpop.permute.xlu2 %739 }
 0x141   : > { %809 = vst.msk [vmem:[#allocation3 + $0xd8] sm:$0xff] %vm781_vm4, %v740_v28 }
 0x143   : > { %1073 = vrot.lane.b32.xlu1 %v3677_v15, %s3514_s13 }
 0x145   : > { %1077 = vrot.lane.b32.xlu0 %v3711_v27, %s3514_s13  ;;  %v732_v7 = vpop.permute.xlu1 %731 }
 0x146   : > { %805 = vst.msk [vmem:[#allocation3 + $0xb8] sm:$0xff] %vm781_vm4, %v732_v7  ;;  %940 = vrot.lane.b32.xlu2 %v4147_v2, %s3513_s12 }
 0x147   : > { %v736_v29 = vpop.permute.xlu0 %735 }
 0x148   : > { %807 = vst.msk [vmem:[#allocation3 + $0xc8] sm:$0xff] %vm781_vm4, %v736_v29  ;;  %v746_v41 = vpop.permute.xlu2 %745  ;;  %v5574_v29 = vld [vmem:[#allocation19_spill] sm:$0xff] }
 0x149   : > { %812 = vst.msk [vmem:[#allocation3 + $0xf0] sm:$0xff] %vm781_vm4, %v746_v41  ;;  %v4290_v41 = vld [vmem:[#allocation2 + $0x159] sm:$0xff] }
 0x14b   : > { %1079 = vrot.lane.b32.xlu1 %v3683_v18, %s3514_s13 }
 0x14d   : > { %1083 = vrot.lane.b32.xlu0 %v3729_v33, %s3514_s13  ;;  %v738_v15 = vpop.permute.xlu1 %737 }
 0x14e   : > { %808 = vst.msk [vmem:[#allocation3 + $0xd0] sm:$0xff] %vm781_vm4, %v738_v15  ;;  %1075 = vrot.lane.b32.xlu2 %v3695_v22, %s3514_s13 }
 0x14f   : > { %v742_v27 = vpop.permute.xlu0 %741 }
 0x150   : > { %810 = vst.msk [vmem:[#allocation3 + $0xe0] sm:$0xff] %vm781_vm4, %v742_v27  ;;  %v881_v19 = vpop.permute.xlu2 %880 }
 0x151   : > { %976 = vst.msk [vmem:[#allocation3 + $0x8] sm:$0xff] %vm974_vm5, %v881_v19  ;;  %v1033_v19 = vld [vmem:[#allocation2 + $0x151] sm:$0xff] }
 0x153   : > { %1085 = vrot.lane.b32.xlu1 %v3706_v25, %s3514_s13 }
 0x155   : > { %1089 = vrot.lane.b32.xlu0 %v3747_v39, %s3514_s13  ;;  %v744_v18 = vpop.permute.xlu1 %743 }
 0x156   : > { %811 = vst.msk [vmem:[#allocation3 + $0xe8] sm:$0xff] %vm781_vm4, %v744_v18  ;;  %1081 = vrot.lane.b32.xlu2 %v3703_v24, %s3514_s13 }
 0x157   : > { %v748_v33 = vpop.permute.xlu0 %747 }
 0x158   : > { %813 = vst.msk [vmem:[#allocation3 + $0xf8] sm:$0xff] %vm781_vm4, %v748_v33  ;;  %v887_v12 = vpop.permute.xlu2 %886 }
 0x159   : > { %979 = vst.msk [vmem:[#allocation3 + $0x20] sm:$0xff] %vm974_vm5, %v887_v12  ;;  %v1591_v12 = vld [vmem:[#allocation2 + $0x61] sm:$0xff] }
 0x15b   : > { %1091 = vrot.lane.b32.xlu1 %v3724_v31, %s3514_s13 }
 0x15d   : > { %1095 = vrot.lane.b32.xlu0 %v3765_v45, %s3514_s13  ;;  %v879_v25 = vpop.permute.xlu1 %878 }
 0x15e   : > { %975 = vst.msk [vmem:[#allocation3] sm:$0xff] %vm974_vm5, %v879_v25  ;;  %1087 = vrot.lane.b32.xlu2 %v3722_v30, %s3514_s13 }
 0x15f   : > { %v883_v39 = vpop.permute.xlu0 %882 }
 0x160   : > { %977 = vst.msk [vmem:[#allocation3 + $0x10] sm:$0xff] %vm974_vm5, %v883_v39  ;;  %v893_v24 = vpop.permute.xlu2 %892  ;;  %v4307_v39 = vld [vmem:[#allocation2 + $0x62] sm:$0xff] }
 0x161   : > { %982 = vst.msk [vmem:[#allocation3 + $0x38] sm:$0xff] %vm974_vm5, %v893_v24  ;;  %v2029_v24 = vld [vmem:[%s5525_s1 + $0xc0] sm:$0xff] }
 0x162   : > { %2136 = vmatpush.msra.mxu0 %v2029_v24  ;;  %3295 = vmatpush.msra.mxu3 %v2029_v24 }
 0x163   : > { %1097 = vrot.lane.b32.xlu1 %v3742_v37, %s3514_s13 }
 0x165   : > { %1101 = vrot.lane.b32.xlu0 %v3780_v49, %s3514_s13  ;;  %v885_v31 = vpop.permute.xlu1 %884 }
 0x166   : > { %978 = vst.msk [vmem:[#allocation3 + $0x18] sm:$0xff] %vm974_vm5, %v885_v31  ;;  %1093 = vrot.lane.b32.xlu2 %v3740_v36, %s3514_s13  ;;  %v4318_v31 = vld [vmem:[%s5525_s1 + $0xc8] sm:$0xff] }
 0x167   : > { %v889_v45 = vpop.permute.xlu0 %888  ;;  %2249 = vmatpush.msra.mxu1 %v4318_v31 }
 0x168   : > { %980 = vst.msk [vmem:[#allocation3 + $0x28] sm:$0xff] %vm974_vm5, %v889_v45  ;;  %v899_v30 = vpop.permute.xlu2 %898  ;;  %v4323_v45 = vld [vmem:[%s5525_s1 + $0xd0] sm:$0xff] }
 0x169   : > { %985 = vst.msk [vmem:[#allocation3 + $0x50] sm:$0xff] %vm974_vm5, %v899_v30  ;;  %2362 = vmatpush.msra.mxu2 %v4323_v45 }
 0x16b   : > { %1103 = vrot.lane.b32.xlu1 %v3760_v43, %s3514_s13 }
 0x16d   : > { %1107 = vrot.lane.b32.xlu0 %v3794_v53, %s3514_s13  ;;  %v891_v37 = vpop.permute.xlu1 %890 }
 0x16e   : > { %981 = vst.msk [vmem:[#allocation3 + $0x30] sm:$0xff] %vm974_vm5, %v891_v37  ;;  %1099 = vrot.lane.b32.xlu2 %v3758_v42, %s3514_s13  ;;  %v2026_v37 = vld [vmem:[%s5525_s1 + $0xa8] sm:$0xff] }
 0x16f   : > { %v895_v49 = vpop.permute.xlu0 %894  ;;  %2137 = vmatpush.msra.mxu0 %v2026_v37  ;;  %3296 = vmatpush.msra.mxu3 %v2026_v37 }
 0x170   : > { %983 = vst.msk [vmem:[#allocation3 + $0x40] sm:$0xff] %vm974_vm5, %v895_v49  ;;  %v905_v36 = vpop.permute.xlu2 %904  ;;  %v4336_v49 = vld [vmem:[%s5525_s1 + $0xb0] sm:$0xff] }
 0x171   : > { %988 = vst.msk [vmem:[#allocation3 + $0x68] sm:$0xff] %vm974_vm5, %v905_v36  ;;  %v4341_v36 = vld [vmem:[%s5525_s1 + $0xb8] sm:$0xff]  ;;  %2250 = vmatpush.msra.mxu1 %v4336_v49 }
 0x172   : > { %2363 = vmatpush.msra.mxu2 %v4341_v36 }
 0x173   : > { %1109 = vrot.lane.b32.xlu1 %v3776_v48, %s3514_s13 }
 0x175   : > { %1113 = vrot.lane.b32.xlu0 %v3808_v57, %s3514_s13  ;;  %v897_v43 = vpop.permute.xlu1 %896 }
 0x176   : > { %984 = vst.msk [vmem:[#allocation3 + $0x48] sm:$0xff] %vm974_vm5, %v897_v43  ;;  %1105 = vrot.lane.b32.xlu2 %v3774_v47, %s3514_s13  ;;  %v2023_v43 = vld [vmem:[%s5525_s1 + $0x90] sm:$0xff] }
 0x177   : > { %v901_v53 = vpop.permute.xlu0 %900  ;;  %2138 = vmatpush.msra.mxu0 %v2023_v43  ;;  %3297 = vmatpush.msra.mxu3 %v2023_v43 }
 0x178   : > { %986 = vst.msk [vmem:[#allocation3 + $0x58] sm:$0xff] %vm974_vm5, %v901_v53  ;;  %v911_v42 = vpop.permute.xlu2 %910  ;;  %v4350_v53 = vld [vmem:[%s5525_s1 + $0x98] sm:$0xff] }
 0x179   : > { %991 = vst.msk [vmem:[#allocation3 + $0x80] sm:$0xff] %vm974_vm5, %v911_v42  ;;  %v4358_v42 = vld [vmem:[%s5525_s1 + $0xa0] sm:$0xff]  ;;  %2251 = vmatpush.msra.mxu1 %v4350_v53 }
 0x17a   : > { %2364 = vmatpush.msra.mxu2 %v4358_v42 }
 0x17b   : > { %1115 = vrot.lane.b32.xlu1 %v3790_v52, %s3514_s13 }
 0x17d   : > { %1119 = vrot.lane.b32.xlu0 %v3818_v60, %s3514_s13  ;;  %v903_v48 = vpop.permute.xlu1 %902 }
 0x17e   : > { %987 = vst.msk [vmem:[#allocation3 + $0x60] sm:$0xff] %vm974_vm5, %v903_v48  ;;  %1111 = vrot.lane.b32.xlu2 %v3788_v51, %s3514_s13  ;;  %v1205_v48 = vld [vmem:[#allocation2 + $0x52] sm:$0xff] }
 0x17f   : > { %v907_v57 = vpop.permute.xlu0 %906 }
 0x180   : > { %989 = vst.msk [vmem:[#allocation3 + $0x70] sm:$0xff] %vm974_vm5, %v907_v57  ;;  %v917_v47 = vpop.permute.xlu2 %916  ;;  %v4360_v57 = vld [vmem:[#allocation2 + $0x169] sm:$0xff] }
 0x181   : > { %994 = vst.msk [vmem:[#allocation3 + $0x98] sm:$0xff] %vm974_vm5, %v917_v47  ;;  %v2020_v47 = vld [vmem:[%s5525_s1 + $0x78] sm:$0xff] }
 0x182   : > { %2139 = vmatpush.msra.mxu0 %v2020_v47  ;;  %3298 = vmatpush.msra.mxu3 %v2020_v47  ;;  %v4535_v47 = vld [vmem:[#allocation2 + $0x18a] sm:$0xff] }
 0x183   : > { %1121 = vrot.lane.b32.xlu1 %v3804_v56, %s3514_s13 }
 0x185   : > { %1458 = vrot.lane.b32.xlu0 %v3831_v3, %s3515_s14  ;;  %v909_v52 = vpop.permute.xlu1 %908 }
 0x186   : > { %990 = vst.msk [vmem:[#allocation3 + $0x78] sm:$0xff] %vm974_vm5, %v909_v52  ;;  %1117 = vrot.lane.b32.xlu2 %v3802_v55, %s3514_s13  ;;  %v4371_v52 = vld [vmem:[%s5525_s1 + $0x80] sm:$0xff] }
 0x187   : > { %v913_v51 = vpop.permute.xlu0 %912  ;;  %2252 = vmatpush.msra.mxu1 %v4371_v52 }
 0x188   : > { %992 = vst.msk [vmem:[#allocation3 + $0x88] sm:$0xff] %vm974_vm5, %v913_v51  ;;  %v923_v60 = vpop.permute.xlu2 %922  ;;  %v4376_v51 = vld [vmem:[%s5525_s1 + $0x88] sm:$0xff] }
 0x189   : > { %997 = vst.msk [vmem:[#allocation3 + $0xb0] sm:$0xff] %vm974_vm5, %v923_v60  ;;  %2365 = vmatpush.msra.mxu2 %v4376_v51 }
 0x18b   : > { %1651 = vrot.lane.b32.xlu1 %v3695_v22, %s3516_s15  ;;  %v5567_v22 = vld [vmem:[#allocation13_spill] sm:$0xff] }
 0x18d   : > { %1266 = vrot.lane.b32.xlu0 %v3864_v14, %s3517_s16  ;;  %v915_v56 = vpop.permute.xlu1 %914 }
 0x18e   : > { %993 = vst.msk [vmem:[#allocation3 + $0x90] sm:$0xff] %vm974_vm5, %v915_v56  ;;  %1264 = vrot.lane.b32.xlu2 %v3837_v5, %s3517_s16  ;;  %v2017_v56 = vld [vmem:[%s5525_s1 + $0x60] sm:$0xff] }
 0x18f   : > { %v919_v55 = vpop.permute.xlu0 %918  ;;  %2140 = vmatpush.msra.mxu0 %v2017_v56  ;;  %3299 = vmatpush.msra.mxu3 %v2017_v56  ;;  %v4545_v56 = vld [vmem:[#allocation2 + $0x189] sm:$0xff] }
 0x190   : > { %995 = vst.msk [vmem:[#allocation3 + $0xa0] sm:$0xff] %vm974_vm5, %v919_v55  ;;  %v929_v3 = vpop.permute.xlu2 %928  ;;  %v4387_v55 = vld [vmem:[%s5525_s1 + $0x68] sm:$0xff] }
 0x191   : > { %1000 = vst.msk [vmem:[#allocation3 + $0xc8] sm:$0xff] %vm974_vm5, %v929_v3  ;;  %v4392_v3 = vld [vmem:[%s5525_s1 + $0x70] sm:$0xff]  ;;  %2253 = vmatpush.msra.mxu1 %v4387_v55 }
 0x192   : > { %2366 = vmatpush.msra.mxu2 %v4392_v3 }
 0x193   : > { %1460 = vrot.lane.b32.xlu1 %v3849_v10, %s3515_s14  ;;  %v1588_v10 = vld [vmem:[#allocation2 + $0x39] sm:$0xff] }
 0x195   : > { %1846 = vrot.lane.b32.xlu0 %v5567_v22, %s3518_s17  ;;  %v921_v14 = vpop.permute.xlu1 %920 }
 0x196   : > { %996 = vst.msk [vmem:[#allocation3 + $0xa8] sm:$0xff] %vm974_vm5, %v921_v14  ;;  %1844 = vrot.lane.b32.xlu2 %v5568_v46, %s3518_s17  ;;  %v2014_v14 = vld [vmem:[%s5525_s1 + $0x48] sm:$0xff] }
 0x197   : > { %v925_v5 = vpop.permute.xlu0 %924  ;;  %2141 = vmatpush.msra.mxu0 %v2014_v14  ;;  %3300 = vmatpush.msra.mxu3 %v2014_v14 }
 0x198   : > { %998 = vst.msk [vmem:[#allocation3 + $0xb8] sm:$0xff] %vm974_vm5, %v925_v5  ;;  %v935_v32 = vpop.permute.xlu2 %934  ;;  %v4410_v5 = vld [vmem:[%s5525_s1 + $0x58] sm:$0xff] }
 0x199   : > { %1003 = vst.msk [vmem:[#allocation3 + $0xe0] sm:$0xff] %vm974_vm5, %v935_v32  ;;  %2367 = vmatpush.msra.mxu2 %v4410_v5 }
 0x19b   : > { %1268 = vrot.lane.b32.xlu1 %v5568_v46, %s3517_s16  ;;  %v4405_v46 = vld [vmem:[%s5525_s1 + $0x50] sm:$0xff] }
 0x19c   : > { %2254 = vmatpush.msra.mxu1 %v4405_v46 }
 0x19d   : > { %1462 = vrot.lane.b32.xlu0 %v3854_v11, %s3515_s14  ;;  %v927_v0 = vpop.permute.xlu1 %926  ;;  %v5570_v11 = vld [vmem:[#allocation17_spill] sm:$0xff] }
 0x19e   : > { %999 = vst.msk [vmem:[#allocation3 + $0xc0] sm:$0xff] %vm974_vm5, %v927_v0  ;;  %1653 = vrot.lane.b32.xlu2 %v1588_v10, %s3516_s15  ;;  %v2011_v10 = vld [vmem:[%s5525_s1 + $0x30] sm:$0xff]  ;;  %v4422_v0 = vld [vmem:[%s5525_s1 + $0x38] sm:$0xff] }
 0x19f   : > { %v931_v4 = vpop.permute.xlu0 %930  ;;  %2142 = vmatpush.msra.mxu0 %v2011_v10  ;;  %2255 = vmatpush.msra.mxu1 %v4422_v0 }
 0x1a0   : > { %1001 = vst.msk [vmem:[#allocation3 + $0xd0] sm:$0xff] %vm974_vm5, %v931_v4  ;;  %v941_v54 = vpop.permute.xlu2 %940  ;;  %v4427_v4 = vld [vmem:[%s5525_s1 + $0x40] sm:$0xff]  ;;  %3301 = vmatpush.msra.mxu3 %v2011_v10 }
 0x1a1   : > { %1006 = vst.msk [vmem:[#allocation3 + $0xf8] sm:$0xff] %vm974_vm5, %v941_v54  ;;  %v2008_v54 = vld [vmem:[%s5525_s1 + $0x18] sm:$0xff]  ;;  %2368 = vmatpush.msra.mxu2 %v4427_v4 }
 0x1a2   : > { %2143 = vmatpush.msra.mxu0 %v2008_v54  ;;  %3302 = vmatpush.msra.mxu3 %v2008_v54 }
 0x1a3   : > { %1506 = vrot.lane.b32.xlu1 %v4001_v23, %s3515_s14  ;;  %v1589_v23 = vld [vmem:[#allocation2 + $0x49] sm:$0xff] }
 0x1a5   : > { %1699 = vrot.lane.b32.xlu0 %v5569_v38, %s3516_s15  ;;  %v933_v50 = vpop.permute.xlu1 %932  ;;  %v2009_v38 = vld [vmem:[%s5525_s1 + $0x20] sm:$0xff] }
 0x1a6   : > { %1002 = vst.msk [vmem:[#allocation3 + $0xd8] sm:$0xff] %vm974_vm5, %v933_v50  ;;  %1312 = vrot.lane.b32.xlu2 %v5570_v11, %s3517_s16  ;;  %v4443_v50 = vld [vmem:[%s5525_s1 + $0x28] sm:$0xff]  ;;  %2256 = vmatpush.msra.mxu1 %v2009_v38 }
 0x1a7   : > { %v937_v21 = vpop.permute.xlu0 %936  ;;  %2369 = vmatpush.msra.mxu2 %v4443_v50 }
 0x1a8   : > { %1004 = vst.msk [vmem:[#allocation3 + $0xe8] sm:$0xff] %vm974_vm5, %v937_v21  ;;  %v1076_v20 = vpop.permute.xlu2 %1075  ;;  %v2005_v21 = vld [vmem:[%s5525_s1] sm:$0xff] }
 0x1a9   : > { %1170 = vst.msk [vmem:[#allocation3 + $0x10] sm:$0xff] %vm1167_vm6, %v1076_v20  ;;  %v2006_v20 = vld [vmem:[%s5525_s1 + $0x8] sm:$0xff]  ;;  %2144 = vmatpush.msra.mxu0 %v2005_v21  ;;  %3303 = vmatpush.msra.mxu3 %v2005_v21 }
 0x1aa   : > { %2257 = vmatpush.msra.mxu1 %v2006_v20 }
 0x1ab   : > { %1848 = vrot.lane.b32.xlu1 %v5571_v63, %s3518_s17  ;;  %3304 = vmatpush.msrb.mxu3 %v4318_v31  ;;  %v1229_v31 = vld [vmem:[#allocation2 + $0x172] sm:$0xff] }
 0x1ad   : > { %1270 = vrot.lane.b32.xlu0 %v5567_v22, %s3517_s16  ;;  %v939_v34 = vpop.permute.xlu1 %938  ;;  %3305 = vmatpush.msrb.mxu3 %v4336_v49 }
 0x1ae   : > { %1005 = vst.msk [vmem:[#allocation3 + $0xf0] sm:$0xff] %vm974_vm5, %v939_v34  ;;  %1655 = vrot.lane.b32.xlu2 %v1589_v23, %s3516_s15  ;;  %v1592_v23 = vld [vmem:[#allocation2 + $0x69] sm:$0xff] }
 0x1af   : > { %v1072_v61 = vpop.permute.xlu0 %1071  ;;  %3306 = vmatpush.msrb.mxu3 %v4350_v53  ;;  %v4527_v53 = vld [vmem:[#allocation2 + $0x82] sm:$0xff] }
 0x1b0   : > { %1168 = vst.msk [vmem:[#allocation3] sm:$0xff] %vm1167_vm6, %v1072_v61  ;;  %v1082_v8 = vpop.permute.xlu2 %1081  ;;  %v1399_v61 = vld [vmem:[#allocation2 + $0x68] sm:$0xff] }
 0x1b1   : > { %1173 = vst.msk [vmem:[#allocation3 + $0x28] sm:$0xff] %vm1167_vm6, %v1082_v8  ;;  %v5575_v8 = vld [vmem:[#allocation16_spill] sm:$0xff]  ;;  %3307 = vmatpush.msrb.mxu3 %v4371_v52 }
 0x1b3   : > { %1314 = vrot.lane.b32.xlu1 %v4025_v1, %s3517_s16  ;;  %v5573_v1 = vld [vmem:[#allocation14_spill] sm:$0xff]  ;;  %3308 = vmatpush.msrb.mxu3 %v4387_v55 }
 0x1b5   : > { %1508 = vrot.lane.b32.xlu0 %v4007_v26, %s3515_s14  ;;  %v1074_v35 = vpop.permute.xlu1 %1073  ;;  %3309 = vmatpush.msrb.mxu3 %v4405_v46 }
 0x1b6   : > { %1169 = vst.msk [vmem:[#allocation3 + $0x8] sm:$0xff] %vm1167_vm6, %v1074_v35  ;;  %1892 = vrot.lane.b32.xlu2 %v5572_v9, %s3518_s17 }
 0x1b7   : > { %v1078_v13 = vpop.permute.xlu0 %1077  ;;  %3310 = vmatpush.msrb.mxu3 %v4422_v0 }
 0x1b8   : > { %1171 = vst.msk [vmem:[#allocation3 + $0x18] sm:$0xff] %vm1167_vm6, %v1078_v13  ;;  %v1088_v59 = vpop.permute.xlu2 %1087 }
 0x1b9   : > { %1176 = vst.msk [vmem:[#allocation3 + $0x40] sm:$0xff] %vm1167_vm6, %v1088_v59  ;;  %v4474_v59 = vld [vmem:[#allocation2 + $0x171] sm:$0xff]  ;;  %3311 = vmatpush.msrb.mxu3 %v2009_v38 }
 0x1bb   : > { %1657 = vrot.lane.b32.xlu1 %v1590_v58, %s3516_s15  ;;  %v5576_v58 = vld [vmem:[#allocation20_spill] sm:$0xff]  ;;  %3312 = vmatpush.msrb.mxu3 %v2006_v20 }
 0x1bd   : > { %1850 = vrot.lane.b32.xlu0 %v5573_v1, %s3518_s17  ;;  %v1080_v28 = vpop.permute.xlu1 %1079 }
 0x1be   : > { %1172 = vst.msk [vmem:[#allocation3 + $0x20] sm:$0xff] %vm1167_vm6, %v1080_v28  ;;  %1464 = vrot.lane.b32.xlu2 %v3866_v16, %s3515_s14 }
 0x1bf   : > { %v1084_v26 = vpop.permute.xlu0 %1083 }
 0x1c0   : > { %1174 = vst.msk [vmem:[#allocation3 + $0x30] sm:$0xff] %vm1167_vm6, %v1084_v26  ;;  %v1094_v7 = vpop.permute.xlu2 %1093 }
 0x1c1   : > { %1179 = vst.msk [vmem:[#allocation3 + $0x58] sm:$0xff] %vm1167_vm6, %v1094_v7 }
 0x1c3   : > { %1894 = vrot.lane.b32.xlu1 %v5574_v29, %s3518_s17 }
 0x1c5   : > { %1272 = vrot.lane.b32.xlu0 %v5571_v63, %s3517_s16  ;;  %v1086_v15 = vpop.permute.xlu1 %1085 }
 0x1c6   : > { %1175 = vst.msk [vmem:[#allocation3 + $0x38] sm:$0xff] %vm1167_vm6, %v1086_v15  ;;  %1701 = vrot.lane.b32.xlu2 %v4290_v41, %s3516_s15  ;;  %v1400_v15 = vld [vmem:[#allocation2 + $0x78] sm:$0xff] }
 0x1c7   : > { %v1090_v16 = vpop.permute.xlu0 %1089 }
 0x1c8   : > { %1177 = vst.msk [vmem:[#allocation3 + $0x48] sm:$0xff] %vm1167_vm6, %v1090_v16  ;;  %v1100_v27 = vpop.permute.xlu2 %1099 }
 0x1c9   : > { %1182 = vst.msk [vmem:[#allocation3 + $0x70] sm:$0xff] %vm1167_vm6, %v1100_v27 }
 0x1cb   : > { %1316 = vrot.lane.b32.xlu1 %v5572_v9, %s3517_s16 }
 0x1cd   : > { %1510 = vrot.lane.b32.xlu0 %v4013_v40, %s3515_s14  ;;  %v1092_v18 = vpop.permute.xlu1 %1091 }
 0x1ce   : > { %1178 = vst.msk [vmem:[#allocation3 + $0x50] sm:$0xff] %vm1167_vm6, %v1092_v18  ;;  %1123 = vrot.lane.b32.xlu2 %v1033_v19, %s3514_s13  ;;  %v1808_v18 = vld [vmem:[#allocation2 + $0x182] sm:$0xff] }
 0x1cf   : > { %v1096_v33 = vpop.permute.xlu0 %1095 }
 0x1d0   : > { %1180 = vst.msk [vmem:[#allocation3 + $0x60] sm:$0xff] %vm1167_vm6, %v1096_v33  ;;  %v1106_v25 = vpop.permute.xlu2 %1105 }
 0x1d1   : > { %1185 = vst.msk [vmem:[#allocation3 + $0x88] sm:$0xff] %vm1167_vm6, %v1106_v25  ;;  %v4508_v25 = vld [vmem:[#allocation2 + $0x181] sm:$0xff] }
 0x1d3   : > { %1659 = vrot.lane.b32.xlu1 %v1591_v12, %s3516_s15  ;;  %v1207_v12 = vld [vmem:[#allocation2 + $0x6a] sm:$0xff] }
 0x1d5   : > { %1852 = vrot.lane.b32.xlu0 %v4307_v39, %s3518_s17  ;;  %v1098_v40 = vpop.permute.xlu1 %1097 }
 0x1d6   : > { %1181 = vst.msk [vmem:[#allocation3 + $0x68] sm:$0xff] %vm1167_vm6, %v1098_v40  ;;  %1466 = vrot.lane.b32.xlu2 %v3872_v17, %s3515_s14 }
 0x1d7   : > { %v1102_v30 = vpop.permute.xlu0 %1101 }
 0x1d8   : > { %1183 = vst.msk [vmem:[#allocation3 + $0x78] sm:$0xff] %vm1167_vm6, %v1102_v30  ;;  %v1112_v17 = vpop.permute.xlu2 %1111 }
 0x1d9   : > { %1188 = vst.msk [vmem:[#allocation3 + $0xa0] sm:$0xff] %vm1167_vm6, %v1112_v17  ;;  %v1594_v17 = vld [vmem:[#allocation2 + $0x81] sm:$0xff] }
 0x1db   : > { %1896 = vrot.lane.b32.xlu1 %v4040_v6, %s3518_s17 }
 0x1dd   : > { %1274 = vrot.lane.b32.xlu0 %v1205_v48, %s3517_s16  ;;  %v1104_v60 = vpop.permute.xlu1 %1103  ;;  %v1401_v48 = vld [vmem:[#allocation2 + $0x80] sm:$0xff] }
 0x1de   : > { %1184 = vst.msk [vmem:[#allocation3 + $0x80] sm:$0xff] %vm1167_vm6, %v1104_v60  ;;  %1703 = vrot.lane.b32.xlu2 %v4360_v57, %s3516_s15 }
 0x1df   : > { %v1108_v22 = vpop.permute.xlu0 %1107 }
 0x1e0   : > { %1186 = vst.msk [vmem:[#allocation3 + $0x90] sm:$0xff] %vm1167_vm6, %v1108_v22  ;;  %v1118_v32 = vpop.permute.xlu2 %1117 }
 0x1e1   : > { %1191 = vst.msk [vmem:[#allocation3 + $0xb8] sm:$0xff] %vm1167_vm6, %v1118_v32 }
 0x1e3   : > { %1318 = vrot.lane.b32.xlu1 %v5574_v29, %s3517_s16 }
 0x1e5   : > { %1512 = vrot.lane.b32.xlu0 %v4027_v62, %s3515_s14  ;;  %v1110_v11 = vpop.permute.xlu1 %1109  ;;  %v4459_v62 = vld [vmem:[%s5525_s1 + $0x10] sm:$0xff] }
 0x1e6   : > { %1187 = vst.msk [vmem:[#allocation3 + $0x98] sm:$0xff] %vm1167_vm6, %v1110_v11  ;;  %1125 = vrot.lane.b32.xlu2 %v4290_v41, %s3514_s13  ;;  %2370 = vmatpush.msra.mxu2 %v4459_v62 }
 0x1e7   : > { %v1114_v63 = vpop.permute.xlu0 %1113 }
 0x1e8   : > { %1189 = vst.msk [vmem:[#allocation3 + $0xa8] sm:$0xff] %vm1167_vm6, %v1114_v63  ;;  %v1265_v34 = vpop.permute.xlu2 %1264  ;;  %v1425_v63 = vld [vmem:[#allocation2 + $0x1a0] sm:$0xff] }
 0x1e9   : > { %1361 = vst.msk [vmem:[#allocation3] sm:$0xff] %vm1360_vm7, %v1265_v34 }
 0x1eb   : > { %1661 = vrot.lane.b32.xlu1 %v1592_v23, %s3516_s15 }
 0x1ed   : > { %1854 = vrot.lane.b32.xlu0 %v5575_v8, %s3518_s17  ;;  %v1116_v35 = vpop.permute.xlu1 %1115 }
 0x1ee   : > { %1190 = vst.msk [vmem:[#allocation3 + $0xb0] sm:$0xff] %vm1167_vm6, %v1116_v35  ;;  %1468 = vrot.lane.b32.xlu2 %v1399_v61, %s3515_s14  ;;  %v1596_v61 = vld [vmem:[#allocation2 + $0x99] sm:$0xff] }
 0x1ef   : > { %v1120_v9 = vpop.permute.xlu0 %1119  ;;  %v1789_v35 = vld [vmem:[#allocation2 + $0x9a] sm:$0xff] }
 0x1f0   : > { %1192 = vst.msk [vmem:[#allocation3 + $0xc0] sm:$0xff] %vm1167_vm6, %v1120_v9  ;;  %v1845_v13 = vpop.permute.xlu2 %1844  ;;  %v1403_v9 = vld [vmem:[#allocation2 + $0x98] sm:$0xff] }
 0x1f3   : > { %1898 = vrot.lane.b32.xlu1 %v5576_v58, %s3518_s17 }
 0x1f5   : > { %1276 = vrot.lane.b32.xlu0 %v4307_v39, %s3517_s16  ;;  %v1122_v1 = vpop.permute.xlu1 %1121 }
 0x1f6   : > { %1193 = vst.msk [vmem:[#allocation3 + $0xc8] sm:$0xff] %vm1167_vm6, %v1122_v1  ;;  %1705 = vrot.lane.b32.xlu2 %v4474_v59, %s3516_s15  ;;  %v1811_v1 = vld [vmem:[#allocation2 + $0x1a2] sm:$0xff] }
 0x1f7   : > { %v1459_v28 = vpop.permute.xlu0 %1458 }
 0x1f8   : > { %1555 = vst.msk [vmem:[#allocation3] sm:$0xff] %vm1554_vm8, %v1459_v28  ;;  %v1654_v26 = vpop.permute.xlu2 %1653 }
 0x1fb   : > { %1320 = vrot.lane.b32.xlu1 %v4040_v6, %s3517_s16  ;;  %v1593_v6 = vld [vmem:[#allocation2 + $0x79] sm:$0xff] }
 0x1fd   : > { %1514 = vrot.lane.b32.xlu0 %v4133_v44, %s3515_s14  ;;  %v1652_v7 = vpop.permute.xlu1 %1651  ;;  %v1786_v44 = vld [vmem:[#allocation2 + $0x7a] sm:$0xff] }
 0x1fe   : > { %1748 = vst.msk [vmem:[#allocation3] sm:$0xff] %vm1747_vm9, %v1652_v7  ;;  %1127 = vrot.lane.b32.xlu2 %v4360_v57, %s3514_s13  ;;  %v1618_v7 = vld [vmem:[#allocation2 + $0x1a1] sm:$0xff] }
 0x1ff   : > { %1941 = vst.msk [vmem:[#allocation3] sm:$0xff] %vm1940_vm10, %v1845_v13  ;;  %v1267_v29 = vpop.permute.xlu0 %1266 }
 0x200   : > { %1362 = vst.msk [vmem:[#allocation3 + $0x8] sm:$0xff] %vm1360_vm7, %v1267_v29  ;;  %v1313_v41 = vpop.permute.xlu2 %1312 }
 0x201   : > { %1385 = vst.msk [vmem:[#allocation3 + $0xc0] sm:$0xff] %vm1360_vm7, %v1313_v41 }
 0x203   : > { %1663 = vrot.lane.b32.xlu1 %v1593_v6, %s3516_s15 }
 0x205   : > { %1856 = vrot.lane.b32.xlu0 %v1786_v44, %s3518_s17  ;;  %v1461_v16 = vpop.permute.xlu1 %1460 }
 0x206   : > { %1556 = vst.msk [vmem:[#allocation3 + $0x8] sm:$0xff] %vm1554_vm8, %v1461_v16  ;;  %v1973_v27 = vld [vmem:[#allocation3] sm:$0xff]  ;;  %1470 = vrot.lane.b32.xlu2 %v1400_v15, %s3515_s14 }
 0x207   : > { %1749 = vst.msk [vmem:[#allocation3 + $0x8] sm:$0xff] %vm1747_vm9, %v1654_v26  ;;  %v1847_v19 = vpop.permute.xlu0 %1846  ;;  %3191 = vmatmul.msk.f32.vlgmr.msra.gmra.mxu0 %vm2032_vm11, %v1973_v27  ;;  %3223 = vmatmul.msk.f32.vlgmr.msra.gmra.mxu1 %vm2032_vm11, %v1973_v27  ;;  %v1404_v26 = vld [vmem:[#allocation2 + $0xa8] sm:$0xff] }
 0x208   : > { %1942 = vst.msk [vmem:[#allocation3 + $0x8] sm:$0xff] %vm1940_vm10, %v1847_v19  ;;  %3255 = vmatmul.msk.f32.vlgmr.msra.gmra.mxu2 %vm2032_vm11, %v1973_v27  ;;  %v1656_v33 = vpop.permute.xlu2 %1655  ;;  %v1405_v19 = vld [vmem:[#allocation2 + $0xb0] sm:$0xff] }
 0x20b   : > { %1900 = vrot.lane.b32.xlu1 %v1808_v18, %s3518_s17 }
 0x20d   : > { %1278 = vrot.lane.b32.xlu0 %v1207_v12, %s3517_s16  ;;  %v1269_v39 = vpop.permute.xlu1 %1268 }
 0x20e   : > { %1363 = vst.msk [vmem:[#allocation3 + $0x10] sm:$0xff] %vm1360_vm7, %v1269_v39  ;;  %1707 = vrot.lane.b32.xlu2 %v4508_v25, %s3516_s15 }
 0x20f   : > { %v1463_v40 = vpop.permute.xlu0 %1462  ;;  %v1974_v24 = vld [vmem:[#allocation3 + $0x8] sm:$0xff] }
 0x210   : > { %1557 = vst.msk [vmem:[#allocation3 + $0x10] sm:$0xff] %vm1554_vm8, %v1463_v40  ;;  %3192 = vmatmul.msk.f32.gmra.mxu0 %vm2032_vm11, %v1974_v24  ;;  %3224 = vmatmul.msk.f32.gmra.mxu1 %vm2032_vm11, %v1974_v24  ;;  %v1893_v30 = vpop.permute.xlu2 %1892 }
 0x211   : > { %3256 = vmatmul.msk.f32.gmra.mxu2 %vm2032_vm11, %v1974_v24  ;;  %1750 = vst.msk [vmem:[#allocation3 + $0x10] sm:$0xff] %vm1747_vm9, %v1656_v33  ;;  %v1791_v33 = vld [vmem:[#allocation2 + $0xb2] sm:$0xff] }
 0x213   : > { %1322 = vrot.lane.b32.xlu1 %v1229_v31, %s3517_s16  ;;  %v1599_v31 = vld [vmem:[#allocation2 + $0xc1] sm:$0xff] }
 0x215   : > { %1516 = vrot.lane.b32.xlu0 %v4147_v2, %s3515_s14  ;;  %v1507_v37 = vpop.permute.xlu1 %1506 }
 0x216   : > { %1579 = vst.msk [vmem:[#allocation3 + $0xc0] sm:$0xff] %vm1554_vm8, %v1507_v37  ;;  %1129 = vrot.lane.b32.xlu2 %v4474_v59, %s3514_s13 }
 0x217   : > { %v1700_v49 = vpop.permute.xlu0 %1699 }
 0x218   : > { %1772 = vst.msk [vmem:[#allocation3 + $0xc0] sm:$0xff] %vm1747_vm9, %v1700_v49  ;;  %v1465_v43 = vpop.permute.xlu2 %1464 }
 0x219   : > { %1965 = vst.msk [vmem:[#allocation3 + $0xc0] sm:$0xff] %vm1940_vm10, %v1893_v30  ;;  %v1598_v30 = vld [vmem:[#allocation2 + $0xb1] sm:$0xff] }
 0x21b   : > { %1665 = vrot.lane.b32.xlu1 %v1594_v17, %s3516_s15 }
 0x21d   : > { %1858 = vrot.lane.b32.xlu0 %v4527_v53, %s3518_s17  ;;  %v1849_v2 = vpop.permute.xlu1 %1848 }
 0x21e   : > { %1943 = vst.msk [vmem:[#allocation3 + $0x10] sm:$0xff] %vm1940_vm10, %v1849_v2  ;;  %1472 = vrot.lane.b32.xlu2 %v1401_v48, %s3515_s14  ;;  %v1407_v48 = vld [vmem:[#allocation2 + $0xc8] sm:$0xff]  ;;  %v1406_v2 = vld [vmem:[#allocation2 + $0xc0] sm:$0xff] }
 0x21f   : > { %v1271_v57 = vpop.permute.xlu0 %1270 }
 0x220   : > { %1364 = vst.msk [vmem:[#allocation3 + $0x18] sm:$0xff] %vm1360_vm7, %v1271_v57  ;;  %v4537_v52 = vld [vmem:[#allocation3 + $0xc0] sm:$0xff]  ;;  %v1702_v60 = vpop.permute.xlu2 %1701 }
 0x221   : > { %1558 = vst.msk [vmem:[#allocation3 + $0x18] sm:$0xff] %vm1554_vm8, %v1465_v43  ;;  %3215 = vmatmul.msk.f32.vlgmr.msra.gmra.mxu3 %vm2032_vm11, %v4537_v52  ;;  %v1792_v43 = vld [vmem:[#allocation2 + $0xc2] sm:$0xff] }
 0x222   : > { %3313 = vmatpush.msra.mxu3 %v4323_v45 }
 0x223   : > { %1902 = vrot.lane.b32.xlu1 %v4535_v47, %s3518_s17 }
 0x224   : > { %3314 = vmatpush.msra.mxu3 %v4341_v36  ;;  %v1424_v36 = vld [vmem:[#allocation2 + $0x198] sm:$0xff] }
 0x225   : > { %1280 = vrot.lane.b32.xlu0 %v1786_v44, %s3517_s16  ;;  %v1315_v55 = vpop.permute.xlu1 %1314  ;;  %v1975_v22 = vld [vmem:[#allocation3 + $0x10] sm:$0xff]  ;;  %v1597_v44 = vld [vmem:[#allocation2 + $0xa9] sm:$0xff] }
 0x226   : > { %1386 = vst.msk [vmem:[#allocation3 + $0xc8] sm:$0xff] %vm1360_vm7, %v1315_v55  ;;  %3193 = vmatmul.msk.f32.gmra.mxu0 %vm2032_vm11, %v1975_v22  ;;  %3225 = vmatmul.msk.f32.gmra.mxu1 %vm2032_vm11, %v1975_v22 }
 0x227   : > { %3257 = vmatmul.msk.f32.gmra.mxu2 %vm2032_vm11, %v1975_v22  ;;  %v1509_v45 = vpop.permute.xlu0 %1508  ;;  %1709 = vrot.lane.b32.xlu2 %v4545_v56, %s3516_s15 }
 0x228   : > { %1580 = vst.msk [vmem:[#allocation3 + $0xc8] sm:$0xff] %vm1554_vm8, %v1509_v45  ;;  %v1124_v14 = vpop.permute.xlu2 %1123  ;;  %3315 = vmatpush.msra.mxu3 %v4358_v42  ;;  %v1595_v42 = vld [vmem:[#allocation2 + $0x91] sm:$0xff] }
 0x229   : > { %1773 = vst.msk [vmem:[#allocation3 + $0xc8] sm:$0xff] %vm1747_vm9, %v1702_v60  ;;  %v1600_v60 = vld [vmem:[#allocation2 + $0xc9] sm:$0xff] }
 0x22a   : > { %1194 = vst.msk [vmem:[#allocation3 + $0xd0] sm:$0xff] %vm1167_vm6, %v1124_v14  ;;  %3316 = vmatpush.msra.mxu3 %v4376_v51  ;;  %v4569_v51 = vld [vmem:[#allocation2 + $0x92] sm:$0xff] }
 0x22b   : > { %1324 = vrot.lane.b32.xlu1 %v1808_v18, %s3517_s16  ;;  %v1408_v14 = vld [vmem:[#allocation2 + $0xd8] sm:$0xff] }
 0x22c   : > { %3317 = vmatpush.msra.mxu3 %v4392_v3  ;;  %v1402_v3 = vld [vmem:[#allocation2 + $0x90] sm:$0xff] }
 0x22d   : > { %1518 = vrot.lane.b32.xlu0 %v1424_v36, %s3515_s14  ;;  %v1658_v46 = vpop.permute.xlu1 %1657 }
 0x22e   : > { %1751 = vst.msk [vmem:[#allocation3 + $0x18] sm:$0xff] %vm1747_vm9, %v1658_v46  ;;  %3318 = vmatpush.msra.mxu3 %v4410_v5  ;;  %v4666_v46 = vld [vmem:[#allocation2 + $0xda] sm:$0xff] }
 0x22f   : > { %v1851_v32 = vpop.permute.xlu0 %1850  ;;  %1131 = vrot.lane.b32.xlu2 %v4508_v25, %s3514_s13  ;;  %v1212_v25 = vld [vmem:[#allocation2 + $0xaa] sm:$0xff] }
 0x230   : > { %1944 = vst.msk [vmem:[#allocation3 + $0x18] sm:$0xff] %vm1940_vm10, %v1851_v32  ;;  %v1467_v10 = vpop.permute.xlu2 %1466  ;;  %3319 = vmatpush.msra.mxu3 %v4427_v4  ;;  %v1810_v4 = vld [vmem:[#allocation2 + $0x19a] sm:$0xff] }
 0x232   : > { %3320 = vmatpush.msra.mxu3 %v4443_v50  ;;  %v1617_v50 = vld [vmem:[#allocation2 + $0x199] sm:$0xff] }
 0x233   : > { %1667 = vrot.lane.b32.xlu1 %v1595_v42, %s3516_s15 }
 0x234   : > { %3321 = vmatpush.msra.mxu3 %v4459_v62 }
 0x235   : > { %1860 = vrot.lane.b32.xlu0 %v4569_v51, %s3518_s17  ;;  %v1895_v5 = vpop.permute.xlu1 %1894 }
 0x236   : > { %1966 = vst.msk [vmem:[#allocation3 + $0xc8] sm:$0xff] %vm1940_vm10, %v1895_v5 }
 0x237   : > { %v1273_v0 = vpop.permute.xlu0 %1272  ;;  %v1976_v54 = vld [vmem:[#allocation3 + $0x18] sm:$0xff]  ;;  %1474 = vrot.lane.b32.xlu2 %v1402_v3, %s3515_s14 }
 0x238   : > { %1365 = vst.msk [vmem:[#allocation3 + $0x20] sm:$0xff] %vm1360_vm7, %v1273_v0  ;;  %3194 = vmatmul.msk.f32.gmra.mxu0 %vm2032_vm11, %v1976_v54  ;;  %3226 = vmatmul.msk.f32.gmra.mxu1 %vm2032_vm11, %v1976_v54  ;;  %v1704_v38 = vpop.permute.xlu2 %1703  ;;  %v1215_v3 = vld [vmem:[#allocation2 + $0xca] sm:$0xff] }
 0x239   : > { %3258 = vmatmul.msk.f32.gmra.mxu2 %vm2032_vm11, %v1976_v54  ;;  %1559 = vst.msk [vmem:[#allocation3 + $0x20] sm:$0xff] %vm1554_vm8, %v1467_v10  ;;  %v1602_v54 = vld [vmem:[#allocation2 + $0xe1] sm:$0xff] }
 0x23b   : > { %1904 = vrot.lane.b32.xlu1 %v1810_v4, %s3518_s17 }
 0x23d   : > { %1282 = vrot.lane.b32.xlu0 %v4527_v53, %s3517_s16  ;;  %v1317_v11 = vpop.permute.xlu1 %1316  ;;  %v4586_v21 = vld [vmem:[#allocation3 + $0xc8] sm:$0xff] }
 0x23e   : > { %1387 = vst.msk [vmem:[#allocation3 + $0xd0] sm:$0xff] %vm1360_vm7, %v1317_v11  ;;  %3216 = vmatmul.msk.f32.gmra.mxu3 %vm2032_vm11, %v4586_v21 }
 0x23f   : > { %v1511_v20 = vpop.permute.xlu0 %1510  ;;  %1711 = vrot.lane.b32.xlu2 %v1617_v50, %s3516_s15 }
 0x240   : > { %1581 = vst.msk [vmem:[#allocation3 + $0xd0] sm:$0xff] %vm1554_vm8, %v1511_v20  ;;  %v1126_v62 = vpop.permute.xlu2 %1125 }
 0x241   : > { %1774 = vst.msk [vmem:[#allocation3 + $0xd0] sm:$0xff] %vm1747_vm9, %v1704_v38  ;;  %v1601_v38 = vld [vmem:[#allocation2 + $0xd9] sm:$0xff] }
 0x242   : > { %1195 = vst.msk [vmem:[#allocation3 + $0xd8] sm:$0xff] %vm1167_vm6, %v1126_v62 }
 0x243   : > { %1326 = vrot.lane.b32.xlu1 %v4535_v47, %s3517_s16 }
 0x245   : > { %1520 = vrot.lane.b32.xlu0 %v1425_v63, %s3515_s14  ;;  %v1660_v23 = vpop.permute.xlu1 %1659 }
 0x246   : > { %1752 = vst.msk [vmem:[#allocation3 + $0x20] sm:$0xff] %vm1747_vm9, %v1660_v23 }
 0x247   : > { %v1853_v34 = vpop.permute.xlu0 %1852  ;;  %1133 = vrot.lane.b32.xlu2 %v4545_v56, %s3514_s13  ;;  %s4655_s13 = sand.u32 1, %s3500_s19  }
 0x248   : > { %1945 = vst.msk [vmem:[#allocation3 + $0x20] sm:$0xff] %vm1940_vm10, %v1853_v34  ;;  %v1469_v8 = vpop.permute.xlu2 %1468  ;;  %s3186_s12 = sshll.u32 %s4655_s13, 9  ;;  %s2971_s8 = scalar_lea.sflag [#allocation5], %s4655_s13 }
 0x249   : > { %s4669_s25 = scalar_lea.vmem [#allocation4], %s3186_s12 }
 0x24b   : > { %1669 = vrot.lane.b32.xlu1 %v1596_v61, %s3516_s15 }
 0x24d   : > { %1862 = vrot.lane.b32.xlu0 %v1789_v35, %s3518_s17  ;;  %v1897_v13 = vpop.permute.xlu1 %1896 }
 0x24e   : > { %1967 = vst.msk [vmem:[#allocation3 + $0xd0] sm:$0xff] %vm1940_vm10, %v1897_v13  ;;  %v1795_v13 = vld [vmem:[#allocation2 + $0xe2] sm:$0xff] }
 0x24f   : > { %v1275_v58 = vpop.permute.xlu0 %1274  ;;  %v1977_v59 = vld [vmem:[#allocation3 + $0x20] sm:$0xff]  ;;  %1476 = vrot.lane.b32.xlu2 %v1403_v9, %s3515_s14 }
 0x250   : > { %1366 = vst.msk [vmem:[#allocation3 + $0x28] sm:$0xff] %vm1360_vm7, %v1275_v58  ;;  %3195 = vmatmul.msk.f32.gmra.mxu0 %vm2032_vm11, %v1977_v59  ;;  %3227 = vmatmul.msk.f32.gmra.mxu1 %vm2032_vm11, %v1977_v59  ;;  %v1706_v28 = vpop.permute.xlu2 %1705 }
 0x251   : > { %3259 = vmatmul.msk.f32.gmra.mxu2 %vm2032_vm11, %v1977_v59  ;;  %1560 = vst.msk [vmem:[#allocation3 + $0x28] sm:$0xff] %vm1554_vm8, %v1469_v8 }
 0x253   : > { %1906 = vrot.lane.b32.xlu1 %v1811_v1, %s3518_s17  ;;  %v1410_v1 = vld [vmem:[#allocation2 + $0xf0] sm:$0xff] }
 0x255   : > { %1478 = vrot.lane.b32.xlu0 %v1404_v26, %s3515_s14  ;;  %v1319_v29 = vpop.permute.xlu1 %1318  ;;  %v4613_v6 = vld [vmem:[#allocation3 + $0xd0] sm:$0xff] }
 0x256   : > { %1388 = vst.msk [vmem:[#allocation3 + $0xd8] sm:$0xff] %vm1360_vm7, %v1319_v29  ;;  %3217 = vmatmul.msk.f32.gmra.mxu3 %vm2032_vm11, %v4613_v6 }
 0x257   : > { %v1513_v41 = vpop.permute.xlu0 %1512  ;;  %1713 = vrot.lane.b32.xlu2 %v1618_v7, %s3516_s15  ;;  %v1409_v7 = vld [vmem:[#allocation2 + $0xe0] sm:$0xff] }
 0x258   : > { %1582 = vst.msk [vmem:[#allocation3 + $0xd8] sm:$0xff] %vm1554_vm8, %v1513_v41  ;;  %v1128_v15 = vpop.permute.xlu2 %1127 }
 0x259   : > { %1775 = vst.msk [vmem:[#allocation3 + $0xd8] sm:$0xff] %vm1747_vm9, %v1706_v28 }
 0x25a   : > { %1196 = vst.msk [vmem:[#allocation3 + $0xe0] sm:$0xff] %vm1167_vm6, %v1128_v15 }
 0x25b   : > { %1671 = vrot.lane.b32.xlu1 %v1597_v44, %s3516_s15 }
 0x25d   : > { %1286 = vrot.lane.b32.xlu0 %v1789_v35, %s3517_s16  ;;  %v1662_v16 = vpop.permute.xlu1 %1661 }
 0x25e   : > { %1753 = vst.msk [vmem:[#allocation3 + $0x28] sm:$0xff] %vm1747_vm9, %v1662_v16 }
 0x25f   : > { %v1855_v27 = vpop.permute.xlu0 %1854  ;;  %1284 = vrot.lane.b32.xlu2 %v4569_v51, %s3517_s16 }
 0x260   : > { %1946 = vst.msk [vmem:[#allocation3 + $0x28] sm:$0xff] %vm1940_vm10, %v1855_v27  ;;  %v1471_v18 = vpop.permute.xlu2 %1470 }
 0x263   : > { %1480 = vrot.lane.b32.xlu1 %v1405_v19, %s3515_s14 }
 0x265   : > { %1866 = vrot.lane.b32.xlu0 %v1791_v33, %s3518_s17  ;;  %v1899_v12 = vpop.permute.xlu1 %1898 }
 0x266   : > { %1968 = vst.msk [vmem:[#allocation3 + $0xd8] sm:$0xff] %vm1940_vm10, %v1899_v12 }
 0x267   : > { %v1277_v39 = vpop.permute.xlu0 %1276  ;;  %v1978_v40 = vld [vmem:[#allocation3 + $0x28] sm:$0xff]  ;;  %1864 = vrot.lane.b32.xlu2 %v1212_v25, %s3518_s17 }
 0x268   : > { %1367 = vst.msk [vmem:[#allocation3 + $0x30] sm:$0xff] %vm1360_vm7, %v1277_v39  ;;  %3196 = vmatmul.msk.f32.gmra.mxu0 %vm2032_vm11, %v1978_v40  ;;  %3228 = vmatmul.msk.f32.gmra.mxu1 %vm2032_vm11, %v1978_v40  ;;  %v1708_v24 = vpop.permute.xlu2 %1707 }
 0x269   : > { %3260 = vmatmul.msk.f32.gmra.mxu2 %vm2032_vm11, %v1978_v40  ;;  %1561 = vst.msk [vmem:[#allocation3 + $0x30] sm:$0xff] %vm1554_vm8, %v1471_v18 }
 0x26b   : > { %1288 = vrot.lane.b32.xlu1 %v1212_v25, %s3517_s16  ;;  %v1603_v25 = vld [vmem:[#allocation2 + $0xf1] sm:$0xff] }
 0x26d   : > { %1675 = vrot.lane.b32.xlu0 %v1599_v31, %s3516_s15  ;;  %v1321_v37 = vpop.permute.xlu1 %1320  ;;  %v4639_v49 = vld [vmem:[#allocation3 + $0xd8] sm:$0xff] }
 0x26e   : > { %1389 = vst.msk [vmem:[#allocation3 + $0xe0] sm:$0xff] %vm1360_vm7, %v1321_v37  ;;  %3218 = vmatmul.msk.f32.gmra.mxu3 %vm2032_vm11, %v4639_v49 }
 0x26f   : > { %v1515_v17 = vpop.permute.xlu0 %1514  ;;  %1673 = vrot.lane.b32.xlu2 %v1598_v30, %s3516_s15  ;;  %v1411_v30 = vld [vmem:[#allocation2 + $0xf8] sm:$0xff] }
 0x270   : > { %1583 = vst.msk [vmem:[#allocation3 + $0xe0] sm:$0xff] %vm1554_vm8, %v1515_v17  ;;  %v1130_v53 = vpop.permute.xlu2 %1129  ;;  %v4726_v17 = vld [vmem:[#allocation2 + $0xfa] sm:$0xff] }
 0x271   : > { %1776 = vst.msk [vmem:[#allocation3 + $0xe0] sm:$0xff] %vm1747_vm9, %v1708_v24 }
 0x272   : > { %1197 = vst.msk [vmem:[#allocation3 + $0xe8] sm:$0xff] %vm1167_vm6, %v1130_v53 }
 0x273   : > { %1868 = vrot.lane.b32.xlu1 %v1792_v43, %s3518_s17 }
 0x275   : > { %1484 = vrot.lane.b32.xlu0 %v1407_v48, %s3515_s14  ;;  %v1664_v57 = vpop.permute.xlu1 %1663 }
 0x276   : > { %1754 = vst.msk [vmem:[#allocation3 + $0x30] sm:$0xff] %vm1747_vm9, %v1664_v57 }
 0x277   : > { %v1857_v47 = vpop.permute.xlu0 %1856  ;;  %1482 = vrot.lane.b32.xlu2 %v1406_v2, %s3515_s14 }
 0x278   : > { %1947 = vst.msk [vmem:[#allocation3 + $0x30] sm:$0xff] %vm1940_vm10, %v1857_v47  ;;  %v1473_v56 = vpop.permute.xlu2 %1472 }
 0x27b   : > { %1677 = vrot.lane.b32.xlu1 %v1600_v60, %s3516_s15 }
 0x27d   : > { %1292 = vrot.lane.b32.xlu0 %v1792_v43, %s3517_s16  ;;  %v1901_v55 = vpop.permute.xlu1 %1900 }
 0x27e   : > { %1969 = vst.msk [vmem:[#allocation3 + $0xe0] sm:$0xff] %vm1940_vm10, %v1901_v55 }
 0x27f   : > { %v1279_v22 = vpop.permute.xlu0 %1278  ;;  %v1979_v45 = vld [vmem:[#allocation3 + $0x30] sm:$0xff]  ;;  %1290 = vrot.lane.b32.xlu2 %v1791_v33, %s3517_s16 }
 0x280   : > { %1368 = vst.msk [vmem:[#allocation3 + $0x38] sm:$0xff] %vm1360_vm7, %v1279_v22  ;;  %3197 = vmatmul.msk.f32.gmra.mxu0 %vm2032_vm11, %v1979_v45  ;;  %3229 = vmatmul.msk.f32.gmra.mxu1 %vm2032_vm11, %v1979_v45 }
 0x281   : > { %3261 = vmatmul.msk.f32.gmra.mxu2 %vm2032_vm11, %v1979_v45  ;;  %1562 = vst.msk [vmem:[#allocation3 + $0x38] sm:$0xff] %vm1554_vm8, %v1473_v56  ;;  %v1710_v36 = vpop.permute.xlu2 %1709  ;;  %v1218_v45 = vld [vmem:[#allocation2 + $0xf2] sm:$0xff] }
 0x283   : > { %1486 = vrot.lane.b32.xlu1 %v1408_v14, %s3515_s14 }
 0x284   : > { %v2146_v32 = vpop.f32.mrf.mxu0  ;;  %v2259_v42 = vpop.f32.mrf.mxu1 }
 0x285   : > { %2468 = vst [vmem:[%s4669_s25] sm:$0xff] %v2146_v32  ;;  %1872 = vrot.lane.b32.xlu0 %v4666_v46, %s3518_s17  ;;  %v1323_v10 = vpop.permute.xlu1 %1322  ;;  %v4674_v51 = vld [vmem:[#allocation3 + $0xe0] sm:$0xff]  ;;  %v2722_v20 = vmul.f32 %v2146_v32, %v2146_v32  ;;  %v2723_v61 = vmul.f32 %v2259_v42, %v2259_v42 }
 0x286   : > { %2469 = vst [vmem:[%s4669_s25 + $0x8] sm:$0xff] %v2259_v42  ;;  %3219 = vmatmul.msk.f32.gmra.mxu3 %vm2032_vm11, %v4674_v51 }
 0x287   : > { %1390 = vst.msk [vmem:[#allocation3 + $0xe8] sm:$0xff] %vm1360_vm7, %v1323_v10  ;;  %v1517_v5 = vpop.permute.xlu0 %1516  ;;  %1870 = vrot.lane.b32.xlu2 %v1215_v3, %s3518_s17 }
 0x288   : > { %1584 = vst.msk [vmem:[#allocation3 + $0xe8] sm:$0xff] %vm1554_vm8, %v1517_v5  ;;  %v1604_v5 = vld [vmem:[#allocation2 + $0xf9] sm:$0xff] }
 0x289   : > { %1777 = vst.msk [vmem:[#allocation3 + $0xe8] sm:$0xff] %vm1747_vm9, %v1710_v36  ;;  %v1132_v0 = vpop.permute.xlu2 %1131 }
 0x28a   : > { %1198 = vst.msk [vmem:[#allocation3 + $0xf0] sm:$0xff] %vm1167_vm6, %v1132_v0 }
 0x28b   : > { %v2372_v4 = vpop.f32.mrf.mxu2  ;;  %1294 = vrot.lane.b32.xlu1 %v1215_v3, %s3517_s16 }
 0x28c   : > { %2532 = vst.msk [vmem:[%s4687_s23] sm:$0xff] %vm285_vm0, %v2372_v4  ;;  %v2724_v28 = vmul.f32 %v2372_v4, %v2372_v4  ;;  %v2638_v29 = vsel %vm285_vm0, %v2372_v4, 0.0 }
 0x28d   : > { %1681 = vrot.lane.b32.xlu0 %v1602_v54, %s3516_s15  ;;  %v2149_v50 = vpop.f32.mrf.mxu0  ;;  %v2262_v11 = vpop.f32.mrf.mxu1 }
 0x28e   : > { %2470 = vst [vmem:[%s4669_s25 + $0x10] sm:$0xff] %v2149_v50  ;;  %v2564_v62 = vadd.f32 %v2149_v50, %v2146_v32  ;;  %v2725_v63 = vmul.f32 %v2149_v50, %v2149_v50  ;;  %v2601_v23 = vadd.f32 %v2262_v11, %v2259_v42  ;;  %v1666_v34 = vpop.permute.xlu1 %1665  ;;  %v2726_v8 = vmul.f32 %v2262_v11, %v2262_v11  ;;  %v1605_v32 = vld [vmem:[#allocation2 + $0x109] sm:$0xff] }
 0x28f   : > { %2471 = vst [vmem:[%s4669_s25 + $0x18] sm:$0xff] %v2262_v11  ;;  %v1859_v35 = vpop.permute.xlu0 %1858  ;;  %1679 = vrot.lane.b32.xlu2 %v1601_v38, %s3516_s15  ;;  %v2892_v27 = vsel %vm285_vm0, %v2724_v28, 0.0  ;;  %v1798_v11 = vld [vmem:[#allocation2 + $0x10a] sm:$0xff] }
 0x290   : > { %v2818_v9 = vadd.f32 %v2725_v63, %v2722_v20  ;;  %1755 = vst.msk [vmem:[#allocation3 + $0x38] sm:$0xff] %vm1747_vm9, %v1666_v34  ;;  %v2855_v58 = vadd.f32 %v2726_v8, %v2723_v61  ;;  %v1412_v63 = vld [vmem:[#allocation2 + $0x108] sm:$0xff] }
 0x291   : > { %1948 = vst.msk [vmem:[#allocation3 + $0x38] sm:$0xff] %vm1940_vm10, %v1859_v35  ;;  %v1475_v59 = vpop.permute.xlu2 %1474 }
 0x293   : > { %1874 = vrot.lane.b32.xlu1 %v1795_v13, %s3518_s17 }
 0x294   : > { %v2375_v26 = vpop.f32.mrf.mxu2 }
 0x295   : > { %2533 = vst.msk [vmem:[%s4687_s23 + $0x8] sm:$0xff] %vm285_vm0, %v2375_v26  ;;  %v2639_v41 = vsel %vm285_vm0, %v2375_v26, 0.0  ;;  %v2727_v44 = vmul.f32 %v2375_v26, %v2375_v26  ;;  %1490 = vrot.lane.b32.xlu0 %v1410_v1, %s3515_s14  ;;  %v1606_v26 = vld [vmem:[#allocation2 + $0x111] sm:$0xff] }
 0x296   : > { %v2640_v15 = vadd.f32 %v2639_v41, %v2638_v29  ;;  %v1903_v16 = vpop.permute.xlu1 %1902 }
 0x297   : > { %v2893_v19 = vsel %vm285_vm0, %v2727_v44, 0.0  ;;  %1970 = vst.msk [vmem:[#allocation3 + $0xe8] sm:$0xff] %vm1940_vm10, %v1903_v16  ;;  %v1281_v18 = vpop.permute.xlu0 %1280  ;;  %1488 = vrot.lane.b32.xlu2 %v1409_v7, %s3515_s14 }
 0x298   : > { %v2894_v33 = vadd.f32 %v2893_v19, %v2892_v27  ;;  %1369 = vst.msk [vmem:[#allocation3 + $0x40] sm:$0xff] %vm1360_vm7, %v1281_v18  ;;  %v1980_v12 = vld [vmem:[#allocation3 + $0x38] sm:$0xff] }
 0x299   : > { %3198 = vmatmul.msk.f32.gmra.mxu0 %vm2032_vm11, %v1980_v12  ;;  %3230 = vmatmul.msk.f32.gmra.mxu1 %vm2032_vm11, %v1980_v12  ;;  %1563 = vst.msk [vmem:[#allocation3 + $0x40] sm:$0xff] %vm1554_vm8, %v1475_v59  ;;  %v1712_v39 = vpop.permute.xlu2 %1711 }
 0x29a   : > { %3262 = vmatmul.msk.f32.gmra.mxu2 %vm2032_vm11, %v1980_v12 }
 0x29b   : > { %1683 = vrot.lane.b32.xlu1 %v1603_v25, %s3516_s15 }
 0x29d   : > { %1298 = vrot.lane.b32.xlu0 %v1795_v13, %s3517_s16 }
 0x29e   : > { %v1325_v40 = vpop.permute.xlu1 %1324  ;;  %v4717_v24 = vld [vmem:[#allocation3 + $0xe8] sm:$0xff] }
 0x29f   : > { %1391 = vst.msk [vmem:[#allocation3 + $0xf0] sm:$0xff] %vm1360_vm7, %v1325_v40  ;;  %3220 = vmatmul.msk.f32.gmra.mxu3 %vm2032_vm11, %v4717_v24  ;;  %v1519_v31 = vpop.permute.xlu0 %1518  ;;  %1296 = vrot.lane.b32.xlu2 %v4666_v46, %s3517_s16 }
 0x2a0   : > { %1585 = vst.msk [vmem:[#allocation3 + $0xf0] sm:$0xff] %vm1554_vm8, %v1519_v31  ;;  %v1221_v31 = vld [vmem:[#allocation2 + $0x112] sm:$0xff] }
 0x2a1   : > { %1778 = vst.msk [vmem:[#allocation3 + $0xf0] sm:$0xff] %vm1747_vm9, %v1712_v39  ;;  %v1134_v37 = vpop.permute.xlu2 %1133  ;;  %v4778_v39 = vld [vmem:[#allocation2 + $0x122] sm:$0xff] }
 0x2a2   : > { %1199 = vst.msk [vmem:[#allocation3 + $0xf8] sm:$0xff] %vm1167_vm6, %v1134_v37 }
 0x2a3   : > { %1492 = vrot.lane.b32.xlu1 %v1411_v30, %s3515_s14  ;;  %v2152_v43 = vpop.f32.mrf.mxu0  ;;  %v2265_v53 = vpop.f32.mrf.mxu1 }
 0x2a4   : > { %2472 = vst [vmem:[%s4669_s25 + $0x20] sm:$0xff] %v2152_v43  ;;  %v2565_v48 = vadd.f32 %v2564_v62, %v2152_v43  ;;  %v2728_v2 = vmul.f32 %v2152_v43, %v2152_v43  ;;  %v2602_v57 = vadd.f32 %v2601_v23, %v2265_v53  ;;  %v2729_v47 = vmul.f32 %v2265_v53, %v2265_v53  ;;  %v2218_v60 = vpop.f32.mrf.mxu3  ;;  %v1413_v62 = vld [vmem:[#allocation2 + $0x110] sm:$0xff] }
 0x2a5   : > { %2473 = vst [vmem:[%s4669_s25 + $0x28] sm:$0xff] %v2265_v53  ;;  %1878 = vrot.lane.b32.xlu0 %v4726_v17, %s3518_s17  ;;  %v1608_v43 = vld [vmem:[#allocation2 + $0x129] sm:$0xff]  ;;  %v1607_v53 = vld [vmem:[#allocation2 + $0x121] sm:$0xff] }
 0x2a6   : > { %v2819_v56 = vadd.f32 %v2818_v9, %v2728_v2  ;;  %v2856_v55 = vadd.f32 %v2855_v58, %v2729_v47  ;;  %v1668_v22 = vpop.permute.xlu1 %1667  ;;  %2516 = vst [vmem:[%s4669_s25 + $0x180] sm:$0xff] %v2218_v60 }
 0x2a7   : > { %1756 = vst.msk [vmem:[#allocation3 + $0x40] sm:$0xff] %vm1747_vm9, %v1668_v22  ;;  %v1861_v14 = vpop.permute.xlu0 %1860  ;;  %1876 = vrot.lane.b32.xlu2 %v1218_v45, %s3518_s17 }
 0x2a8   : > { %1949 = vst.msk [vmem:[#allocation3 + $0x40] sm:$0xff] %vm1940_vm10, %v1861_v14 }
 0x2a9   : > { %v1477_v36 = vpop.permute.xlu2 %1476 }
 0x2aa   : > { %v2378_v46 = vpop.f32.mrf.mxu2 }
 0x2ab   : > { %2534 = vst.msk [vmem:[%s4687_s23 + $0x10] sm:$0xff] %vm285_vm0, %v2378_v46  ;;  %v2641_v42 = vsel %vm285_vm0, %v2378_v46, 0.0  ;;  %v2730_v10 = vmul.f32 %v2378_v46, %v2378_v46  ;;  %1300 = vrot.lane.b32.xlu1 %v1218_v45, %s3517_s16  ;;  %v1801_v46 = vld [vmem:[#allocation2 + $0x12a] sm:$0xff] }
 0x2ac   : > { %v2642_v3 = vadd.f32 %v2641_v42, %v2640_v15  ;;  %v1416_v42 = vld [vmem:[#allocation2 + $0x138] sm:$0xff] }
 0x2ad   : > { %v2895_v0 = vsel %vm285_vm0, %v2730_v10, 0.0  ;;  %1687 = vrot.lane.b32.xlu0 %v1605_v32, %s3516_s15 }
 0x2ae   : > { %v2896_v54 = vadd.f32 %v2895_v0, %v2894_v33  ;;  %v1905_v4 = vpop.permute.xlu1 %1904  ;;  %v1414_v33 = vld [vmem:[#allocation2 + $0x120] sm:$0xff] }
 0x2af   : > { %1971 = vst.msk [vmem:[#allocation3 + $0xf0] sm:$0xff] %vm1940_vm10, %v1905_v4  ;;  %v1283_v38 = vpop.permute.xlu0 %1282  ;;  %v1981_v50 = vld [vmem:[#allocation3 + $0x40] sm:$0xff]  ;;  %1685 = vrot.lane.b32.xlu2 %v1604_v5, %s3516_s15 }
 0x2b0   : > { %1370 = vst.msk [vmem:[#allocation3 + $0x48] sm:$0xff] %vm1360_vm7, %v1283_v38  ;;  %3199 = vmatmul.msk.f32.gmra.mxu0 %vm2032_vm11, %v1981_v50  ;;  %3231 = vmatmul.msk.f32.gmra.mxu1 %vm2032_vm11, %v1981_v50 }
 0x2b1   : > { %3263 = vmatmul.msk.f32.gmra.mxu2 %vm2032_vm11, %v1981_v50  ;;  %1564 = vst.msk [vmem:[#allocation3 + $0x48] sm:$0xff] %vm1554_vm8, %v1477_v36  ;;  %v1714_v20 = vpop.permute.xlu2 %1713 }
 0x2b3   : > { %1880 = vrot.lane.b32.xlu1 %v1798_v11, %s3518_s17 }
 0x2b5   : > { %1496 = vrot.lane.b32.xlu0 %v1413_v62, %s3515_s14  ;;  %v2155_v23 = vpop.f32.mrf.mxu0  ;;  %v2268_v34 = vpop.f32.mrf.mxu1  ;;  %v1609_v62 = vld [vmem:[#allocation2 + $0x139] sm:$0xff] }
 0x2b6   : > { %v1327_v61 = vpop.permute.xlu1 %1326  ;;  %2474 = vst [vmem:[%s4669_s25 + $0x30] sm:$0xff] %v2155_v23  ;;  %v2566_v8 = vadd.f32 %v2565_v48, %v2155_v23  ;;  %v2731_v35 = vmul.f32 %v2155_v23, %v2155_v23  ;;  %v2603_v9 = vadd.f32 %v2602_v57, %v2268_v34  ;;  %v2732_v13 = vmul.f32 %v2268_v34, %v2268_v34  ;;  %v4754_v58 = vld [vmem:[#allocation3 + $0xf0] sm:$0xff] }
 0x2b7   : > { %1392 = vst.msk [vmem:[#allocation3 + $0xf8] sm:$0xff] %vm1360_vm7, %v1327_v61  ;;  %3221 = vmatmul.msk.f32.gmra.mxu3 %vm2032_vm11, %v4754_v58  ;;  %v1521_v59 = vpop.permute.xlu0 %1520  ;;  %1494 = vrot.lane.b32.xlu2 %v1412_v63, %s3515_s14 }
 0x2b8   : > { %v2820_v1 = vadd.f32 %v2819_v56, %v2731_v35  ;;  %2475 = vst [vmem:[%s4669_s25 + $0x38] sm:$0xff] %v2268_v34  ;;  %v2857_v28 = vadd.f32 %v2856_v55, %v2732_v13  ;;  %v1802_v13 = vld [vmem:[#allocation2 + $0x13a] sm:$0xff] }
 0x2b9   : > { %1586 = vst.msk [vmem:[#allocation3 + $0xf8] sm:$0xff] %vm1554_vm8, %v1521_v59  ;;  %v1285_v7 = vpop.permute.xlu2 %1284 }
 0x2ba   : > { %1779 = vst.msk [vmem:[#allocation3 + $0xf8] sm:$0xff] %vm1747_vm9, %v1714_v20 }
 0x2bb   : > { %1689 = vrot.lane.b32.xlu1 %v1606_v26, %s3516_s15  ;;  %1371 = vst.msk [vmem:[#allocation3 + $0x50] sm:$0xff] %vm1360_vm7, %v1285_v7 }
 0x2bc   : > { %v2381_v29 = vpop.f32.mrf.mxu2 }
 0x2bd   : > { %2535 = vst.msk [vmem:[%s4687_s23 + $0x18] sm:$0xff] %vm285_vm0, %v2381_v29  ;;  %v2643_v41 = vsel %vm285_vm0, %v2381_v29, 0.0  ;;  %v2733_v44 = vmul.f32 %v2381_v29, %v2381_v29  ;;  %1304 = vrot.lane.b32.xlu0 %v1798_v11, %s3517_s16 }
 0x2be   : > { %v2644_v15 = vadd.f32 %v2643_v41, %v2642_v3  ;;  %v1670_v16 = vpop.permute.xlu1 %1669  ;;  %v1415_v3 = vld [vmem:[#allocation2 + $0x128] sm:$0xff] }
 0x2bf   : > { %v2897_v27 = vsel %vm285_vm0, %v2733_v44, 0.0  ;;  %1757 = vst.msk [vmem:[#allocation3 + $0x48] sm:$0xff] %vm1747_vm9, %v1670_v16  ;;  %v1863_v19 = vpop.permute.xlu0 %1862  ;;  %1302 = vrot.lane.b32.xlu2 %v4726_v17, %s3517_s16 }
 0x2c0   : > { %v2898_v18 = vadd.f32 %v2897_v27, %v2896_v54  ;;  %1950 = vst.msk [vmem:[#allocation3 + $0x48] sm:$0xff] %vm1940_vm10, %v1863_v19 }
 0x2c1   : > { %v4774_v12 = vpop.f32.mrf.mxu3  ;;  %v1865_v25 = vpop.permute.xlu2 %1864 }
 0x2c2   : > { %2518 = vst [vmem:[%s4669_s25 + $0x190] sm:$0xff] %v4774_v12 }
 0x2c3   : > { %1498 = vrot.lane.b32.xlu1 %v1414_v33, %s3515_s14 }
 0x2c5   : > { %1884 = vrot.lane.b32.xlu0 %v4778_v39, %s3518_s17 }
 0x2c6   : > { %v1907_v40 = vpop.permute.xlu1 %1906 }
 0x2c7   : > { %1972 = vst.msk [vmem:[#allocation3 + $0xf8] sm:$0xff] %vm1940_vm10, %v1907_v40  ;;  %v1479_v30 = vpop.permute.xlu0 %1478  ;;  %v1982_v37 = vld [vmem:[#allocation3 + $0x48] sm:$0xff]  ;;  %1882 = vrot.lane.b32.xlu2 %v1221_v31, %s3518_s17 }
 0x2c8   : > { %1565 = vst.msk [vmem:[#allocation3 + $0x50] sm:$0xff] %vm1554_vm8, %v1479_v30  ;;  %3200 = vmatmul.msk.f32.gmra.mxu0 %vm2032_vm11, %v1982_v37  ;;  %3232 = vmatmul.msk.f32.gmra.mxu1 %vm2032_vm11, %v1982_v37 }
 0x2c9   : > { %3264 = vmatmul.msk.f32.gmra.mxu2 %vm2032_vm11, %v1982_v37  ;;  %v1674_v17 = vpop.permute.xlu2 %1673 }
 0x2cb   : > { %1306 = vrot.lane.b32.xlu1 %v1221_v31, %s3517_s16  ;;  %v1610_v31 = vld [vmem:[#allocation2 + $0x141] sm:$0xff] }
 0x2cd   : > { %1693 = vrot.lane.b32.xlu0 %v1608_v43, %s3516_s15  ;;  %v2158_v48 = vpop.f32.mrf.mxu0  ;;  %v2271_v2 = vpop.f32.mrf.mxu1 }
 0x2ce   : > { %v1672_v57 = vpop.permute.xlu1 %1671  ;;  %2476 = vst [vmem:[%s4669_s25 + $0x40] sm:$0xff] %v2158_v48  ;;  %v4792_v47 = vadd.f32 %v2566_v8, %v2158_v48  ;;  %v2734_v60 = vmul.f32 %v2158_v48, %v2158_v48  ;;  %v4794_v56 = vadd.f32 %v2603_v9, %v2271_v2  ;;  %v2735_v55 = vmul.f32 %v2271_v2, %v2271_v2  ;;  %v4796_v22 = vld [vmem:[#allocation3 + $0xf8] sm:$0xff]  ;;  %v1417_v8 = vld [vmem:[#allocation2 + $0x140] sm:$0xff] }
 0x2cf   : > { %1758 = vst.msk [vmem:[#allocation3 + $0x50] sm:$0xff] %vm1747_vm9, %v1672_v57  ;;  %3222 = vmatmul.msk.f32.gmra.mxu3 %vm2032_vm11, %v4796_v22  ;;  %v1287_v45 = vpop.permute.xlu0 %1286  ;;  %1691 = vrot.lane.b32.xlu2 %v1607_v53, %s3516_s15  ;;  %v1803_v9 = vld [vmem:[#allocation2 + $0x142] sm:$0xff] }
 0x2d0   : > { %v4802_v14 = vadd.f32 %v2820_v1, %v2734_v60  ;;  %2477 = vst [vmem:[%s4669_s25 + $0x48] sm:$0xff] %v2271_v2  ;;  %v4805_v36 = vadd.f32 %v2857_v28, %v2735_v55 }
 0x2d1   : > { %1951 = vst.msk [vmem:[#allocation3 + $0x50] sm:$0xff] %vm1940_vm10, %v1865_v25  ;;  %v1483_v32 = vpop.permute.xlu2 %1482 }
 0x2d2   : > { %1372 = vst.msk [vmem:[#allocation3 + $0x58] sm:$0xff] %vm1360_vm7, %v1287_v45 }
 0x2d3   : > { %1886 = vrot.lane.b32.xlu1 %v1801_v46, %s3518_s17 }
 0x2d4   : > { %v2384_v10 = vpop.f32.mrf.mxu2 }
 0x2d5   : > { %2536 = vst.msk [vmem:[%s4687_s23 + $0x20] sm:$0xff] %vm285_vm0, %v2384_v10  ;;  %v2645_v5 = vsel %vm285_vm0, %v2384_v10, 0.0  ;;  %v2736_v0 = vmul.f32 %v2384_v10, %v2384_v10  ;;  %1502 = vrot.lane.b32.xlu0 %v1416_v42, %s3515_s14 }
 0x2d6   : > { %v2646_v54 = vadd.f32 %v2645_v5, %v2644_v15  ;;  %v1481_v4 = vpop.permute.xlu1 %1480 }
 0x2d7   : > { %v2899_v38 = vsel %vm285_vm0, %v2736_v0, 0.0  ;;  %1566 = vst.msk [vmem:[#allocation3 + $0x58] sm:$0xff] %vm1554_vm8, %v1481_v4  ;;  %3247 = vmatmul.msk.f32.vlgmr.msrb.gmra.mxu3 %vm2032_vm11, %v4537_v52  ;;  %v1867_v50 = vpop.permute.xlu0 %1866  ;;  %1500 = vrot.lane.b32.xlu2 %v1415_v3, %s3515_s14 }
 0x2d8   : > { %v2900_v11 = vadd.f32 %v2899_v38, %v2898_v18  ;;  %1759 = vst.msk [vmem:[#allocation3 + $0x58] sm:$0xff] %vm1747_vm9, %v1674_v17  ;;  %v1983_v20 = vld [vmem:[#allocation3 + $0x50] sm:$0xff] }
 0x2d9   : > { %1952 = vst.msk [vmem:[#allocation3 + $0x58] sm:$0xff] %vm1940_vm10, %v1867_v50  ;;  %3201 = vmatmul.msk.f32.gmra.mxu0 %vm2032_vm11, %v1983_v20  ;;  %3233 = vmatmul.msk.f32.gmra.mxu1 %vm2032_vm11, %v1983_v20  ;;  %v4823_v63 = vpop.f32.mrf.mxu3  ;;  %v1291_v23 = vpop.permute.xlu2 %1290 }
 0x2da   : > { %3265 = vmatmul.msk.f32.gmra.mxu2 %vm2032_vm11, %v1983_v20  ;;  %2520 = vst [vmem:[%s4669_s25 + $0x1a0] sm:$0xff] %v4823_v63 }
 0x2db   : > { %1695 = vrot.lane.b32.xlu1 %v1609_v62, %s3516_s15  ;;  %1374 = vst.msk [vmem:[#allocation3 + $0x68] sm:$0xff] %vm1360_vm7, %v1291_v23 }
 0x2dd   : > { %1310 = vrot.lane.b32.xlu0 %v1801_v46, %s3517_s16 }
 0x2de   : > { %v1289_v52 = vpop.permute.xlu1 %1288 }
 0x2df   : > { %1373 = vst.msk [vmem:[#allocation3 + $0x60] sm:$0xff] %vm1360_vm7, %v1289_v52  ;;  %3248 = vmatmul.msk.f32.gmra.mxu3 %vm2032_vm11, %v4586_v21  ;;  %v1676_v34 = vpop.permute.xlu0 %1675  ;;  %1308 = vrot.lane.b32.xlu2 %v4778_v39, %s3517_s16  ;;  %s2998_s16 = sshll.u32 %s4669_s25, 4  ;;  %s5351_s16 = int_to_ptr.vmem [resolvable:$true] %s2998_s16 }
 0x2e0   : > { %1567 = vst.msk [vmem:[#allocation3 + $0x60] sm:$0xff] %vm1554_vm8, %v1483_v32  ;;  %v1984_v61 = vld [vmem:[#allocation3 + $0x58] sm:$0xff] }
 0x2e1   : > { %1760 = vst.msk [vmem:[#allocation3 + $0x60] sm:$0xff] %vm1747_vm9, %v1676_v34  ;;  %3202 = vmatmul.msk.f32.gmra.mxu0 %vm2032_vm11, %v1984_v61  ;;  %3234 = vmatmul.msk.f32.gmra.mxu1 %vm2032_vm11, %v1984_v61  ;;  %v1871_v35 = vpop.permute.xlu2 %1870 }
 0x2e2   : > { %3266 = vmatmul.msk.f32.gmra.mxu2 %vm2032_vm11, %v1984_v61 }
 0x2e3   : > { %1504 = vrot.lane.b32.xlu1 %v1417_v8, %s3515_s14 }
 0x2e5   : > { %1890 = vrot.lane.b32.xlu0 %v1803_v9, %s3518_s17  ;;  %v2161_v59 = vpop.f32.mrf.mxu0  ;;  %v2274_v1 = vpop.f32.mrf.mxu1 }
 0x2e6   : > { %v1869_v28 = vpop.permute.xlu1 %1868  ;;  %2478 = vst [vmem:[%s4669_s25 + $0x50] sm:$0xff] %v2161_v59  ;;  %v2568_v26 = vadd.f32 %v4792_v47, %v2161_v59  ;;  %v2737_v7 = vmul.f32 %v2161_v59, %v2161_v59  ;;  %v2605_v29 = vadd.f32 %v4794_v56, %v2274_v1  ;;  %v2738_v41 = vmul.f32 %v2274_v1, %v2274_v1 }
 0x2e7   : > { %1953 = vst.msk [vmem:[#allocation3 + $0x60] sm:$0xff] %vm1940_vm10, %v1869_v28  ;;  %3249 = vmatmul.msk.f32.gmra.mxu3 %vm2032_vm11, %v4613_v6  ;;  %v1485_v44 = vpop.permute.xlu0 %1484  ;;  %1888 = vrot.lane.b32.xlu2 %v1802_v13, %s3518_s17 }
 0x2e8   : > { %v2822_v15 = vadd.f32 %v4802_v14, %v2737_v7  ;;  %2479 = vst [vmem:[%s4669_s25 + $0x58] sm:$0xff] %v2274_v1  ;;  %v2859_v16 = vadd.f32 %v4805_v36, %v2738_v41 }
 0x2e9   : > { %1568 = vst.msk [vmem:[#allocation3 + $0x68] sm:$0xff] %vm1554_vm8, %v1485_v44  ;;  %v1680_v27 = vpop.permute.xlu2 %1679  ;;  %v3384_v44 = vld [vmem:[#allocation3 + $0xc0] sm:$0xff] }
 0x2ec   : > { %v2387_v19 = vpop.f32.mrf.mxu2 }
 0x2ed   : > { %2537 = vst.msk [vmem:[%s4687_s23 + $0x28] sm:$0xff] %vm285_vm0, %v2387_v19  ;;  %v2647_v18 = vsel %vm285_vm0, %v2387_v19, 0.0  ;;  %v2739_v33 = vmul.f32 %v2387_v19, %v2387_v19 }
 0x2ee   : > { %v2648_v25 = vadd.f32 %v2647_v18, %v2646_v54  ;;  %v1678_v39 = vpop.permute.xlu1 %1677  ;;  %v1985_v40 = vld [vmem:[#allocation3 + $0x60] sm:$0xff] }
 0x2ef   : > { %v2901_v30 = vsel %vm285_vm0, %v2739_v33, 0.0  ;;  %1761 = vst.msk [vmem:[#allocation3 + $0x68] sm:$0xff] %vm1747_vm9, %v1678_v39  ;;  %3203 = vmatmul.msk.f32.gmra.mxu0 %vm2032_vm11, %v1985_v40  ;;  %3235 = vmatmul.msk.f32.gmra.mxu1 %vm2032_vm11, %v1985_v40  ;;  %v1293_v37 = vpop.permute.xlu0 %1292 }
 0x2f0   : > { %v2902_v17 = vadd.f32 %v2901_v30, %v2900_v11  ;;  %1954 = vst.msk [vmem:[#allocation3 + $0x68] sm:$0xff] %vm1940_vm10, %v1871_v35  ;;  %3250 = vmatmul.msk.f32.gmra.mxu3 %vm2032_vm11, %v4639_v49  ;;  %3267 = vmatmul.msk.f32.gmra.mxu2 %vm2032_vm11, %v1985_v40 }
 0x2f1   : > { %1375 = vst.msk [vmem:[#allocation3 + $0x70] sm:$0xff] %vm1360_vm7, %v1293_v37  ;;  %v4866_v43 = vpop.f32.mrf.mxu3  ;;  %1697 = vrot.lane.b32.xlu2 %v1610_v31, %s3516_s15  ;;  %v1489_v53 = vpop.permute.xlu2 %1488  ;;  %s5329_s15 = scalar_lea.hbm %s5526_s2, %s3294_s6 }
 0x2f2   : > { %2522 = vst [vmem:[%s4669_s25 + $0x1b0] sm:$0xff] %v4866_v43  ;;  %s3000_s17 = sshll.u32 %s5329_s15, 4  ;;  %s5357_s17 = int_to_ptr.hbm [resolvable:$true] %s3000_s17 }
 0x2f3   : > { %s3400_s9 = sshra.s32 %s5357_s17, 4  ;;  %s3401_s9 = int_to_ptr.hbm [resolvable:$true] %s3400_s9 }
 0x2f4   : > { %s3402_s10 = scalar_lea.hbm %s3401_s9, 512  ;;  %p3407_p0 = scmp.lt.s32.totalorder %s3401_s9, %s5526_s2 }
 0x2f5   : > { %p3403_p11 = scmp.ne.s32.totalorder %s3401_s9, %s3402_s10  ;;  %p3408_p1 = scmp.lt.s32.totalorder %s3406_s30, %s3402_s10 }
 0x2f6   : > { %v1487_v48 = vpop.permute.xlu1 %1486 }
 0x2f7   : > { %1569 = vst.msk [vmem:[#allocation3 + $0x70] sm:$0xff] %vm1554_vm8, %v1487_v48  ;;  %v1873_v2 = vpop.permute.xlu0 %1872  ;;  %v1986_v57 = vld [vmem:[#allocation3 + $0x68] sm:$0xff]  ;;  %p3404_p12 = pnand %p3403_p11, %p3590_p5  ;;  %p3409_p2 = por %p3408_p1, %p3407_p0 }
 0x2f8   : > { %1762 = vst.msk [vmem:[#allocation3 + $0x70] sm:$0xff] %vm1747_vm9, %v1680_v27  ;;  %3251 = vmatmul.msk.f32.gmra.mxu3 %vm2032_vm11, %v4674_v51  ;;  %3204 = vmatmul.msk.f32.gmra.mxu0 %vm2032_vm11, %v1986_v57 }
 0x2f9   : > { %1955 = vst.msk [vmem:[#allocation3 + $0x70] sm:$0xff] %vm1940_vm10, %v1873_v2  ;;  %3236 = vmatmul.msk.f32.gmra.mxu1 %vm2032_vm11, %v1986_v57  ;;  %3268 = vmatmul.msk.f32.gmra.mxu2 %vm2032_vm11, %v1986_v57  ;;  %v1297_v47 = vpop.permute.xlu2 %1296  ;;  %p3405_p13 = pneg %p3404_p12 }
 0x2fa   : > { %1377 = vst.msk [vmem:[#allocation3 + $0x80] sm:$0xff] %vm1360_vm7, %v1297_v47 }
 0x2fb   : > { %p3410_p3 = pnand %p3409_p2, %p3405_p13 }
 0x2fd   : > { %v2164_v60 = vpop.f32.mrf.mxu0  ;;  %v2277_v56 = vpop.f32.mrf.mxu1 }
 0x2fe   : > { %v1295_v55 = vpop.permute.xlu1 %1294  ;;  %2480 = vst [vmem:[%s4669_s25 + $0x60] sm:$0xff] %v2164_v60  ;;  %v2569_v45 = vadd.f32 %v2568_v26, %v2164_v60  ;;  %v2740_v14 = vmul.f32 %v2164_v60, %v2164_v60  ;;  %v2606_v36 = vadd.f32 %v2605_v29, %v2277_v56  ;;  %v2741_v46 = vmul.f32 %v2277_v56, %v2277_v56 }
 0x2ff   : > { %1376 = vst.msk [vmem:[#allocation3 + $0x78] sm:$0xff] %vm1360_vm7, %v1295_v55  ;;  %v1682_v32 = vpop.permute.xlu0 %1681 }
 0x300   : > { %v2823_v42 = vadd.f32 %v2822_v15, %v2740_v14  ;;  %2481 = vst [vmem:[%s4669_s25 + $0x68] sm:$0xff] %v2277_v56  ;;  %v2860_v10 = vadd.f32 %v2859_v16, %v2741_v46  ;;  %3252 = vmatmul.msk.f32.gmra.mxu3 %vm2032_vm11, %v4717_v24  ;;  %v1987_v3 = vld [vmem:[#allocation3 + $0x70] sm:$0xff] }
 0x301   : > { %1570 = vst.msk [vmem:[#allocation3 + $0x78] sm:$0xff] %vm1554_vm8, %v1489_v53  ;;  %3205 = vmatmul.msk.f32.gmra.mxu0 %vm2032_vm11, %v1987_v3  ;;  %3237 = vmatmul.msk.f32.gmra.mxu1 %vm2032_vm11, %v1987_v3  ;;  %v1877_v5 = vpop.permute.xlu2 %1876 }
 0x302   : > { %1763 = vst.msk [vmem:[#allocation3 + $0x78] sm:$0xff] %vm1747_vm9, %v1682_v32  ;;  %3269 = vmatmul.msk.f32.gmra.mxu2 %vm2032_vm11, %v1987_v3 }
 0x304   : > { %v2390_v0 = vpop.f32.mrf.mxu2 }
 0x305   : > { %2538 = vst.msk [vmem:[%s4687_s23 + $0x30] sm:$0xff] %vm285_vm0, %v2390_v0  ;;  %v2649_v54 = vsel %vm285_vm0, %v2390_v0, 0.0  ;;  %v2742_v4 = vmul.f32 %v2390_v0, %v2390_v0 }
 0x306   : > { %v2650_v38 = vadd.f32 %v2649_v54, %v2648_v25  ;;  %v1875_v50 = vpop.permute.xlu1 %1874 }
 0x307   : > { %v2903_v11 = vsel %vm285_vm0, %v2742_v4, 0.0  ;;  %1956 = vst.msk [vmem:[#allocation3 + $0x78] sm:$0xff] %vm1940_vm10, %v1875_v50  ;;  %v1491_v20 = vpop.permute.xlu0 %1490 }
 0x308   : > { %v2904_v62 = vadd.f32 %v2903_v11, %v2902_v17  ;;  %3253 = vmatmul.msk.f32.gmra.mxu3 %vm2032_vm11, %v4754_v58  ;;  %1571 = vst.msk [vmem:[#allocation3 + $0x80] sm:$0xff] %vm1554_vm8, %v1491_v20 }
 0x309   : > { %v4898_v23 = vpop.f32.mrf.mxu3  ;;  %v1686_v52 = vpop.permute.xlu2 %1685 }
 0x30a   : > { %2524 = vst [vmem:[%s4669_s25 + $0x1c0] sm:$0xff] %v4898_v23 }
 0x30e   : > { %v1684_v34 = vpop.permute.xlu1 %1683  ;;  %v1988_v61 = vld [vmem:[#allocation3 + $0x78] sm:$0xff] }
 0x30f   : > { %1764 = vst.msk [vmem:[#allocation3 + $0x80] sm:$0xff] %vm1747_vm9, %v1684_v34  ;;  %3206 = vmatmul.msk.f32.gmra.mxu0 %vm2032_vm11, %v1988_v61  ;;  %3238 = vmatmul.msk.f32.gmra.mxu1 %vm2032_vm11, %v1988_v61  ;;  %v1299_v8 = vpop.permute.xlu0 %1298 }
 0x310   : > { %1957 = vst.msk [vmem:[#allocation3 + $0x80] sm:$0xff] %vm1940_vm10, %v1877_v5  ;;  %3254 = vmatmul.msk.f32.gmra.mxu3 %vm2032_vm11, %v4796_v22  ;;  %3270 = vmatmul.msk.f32.gmra.mxu2 %vm2032_vm11, %v1988_v61 }
 0x311   : > { %1378 = vst.msk [vmem:[#allocation3 + $0x88] sm:$0xff] %vm1360_vm7, %v1299_v8  ;;  %v1495_v35 = vpop.permute.xlu2 %1494 }
 0x316   : > { %v1493_v9 = vpop.permute.xlu1 %1492  ;;  %v2167_v13 = vpop.f32.mrf.mxu0 }
 0x317   : > { %1572 = vst.msk [vmem:[#allocation3 + $0x88] sm:$0xff] %vm1554_vm8, %v1493_v9  ;;  %v2570_v59 = vadd.f32 %v2569_v45, %v2167_v13  ;;  %v2743_v1 = vmul.f32 %v2167_v13, %v2167_v13  ;;  %v2280_v28 = vpop.f32.mrf.mxu1  ;;  %v1879_v26 = vpop.permute.xlu0 %1878  ;;  %v1989_v7 = vld [vmem:[#allocation3 + $0x80] sm:$0xff] }
 0x318   : > { %2482 = vst [vmem:[%s4669_s25 + $0x70] sm:$0xff] %v2167_v13  ;;  %v2607_v29 = vadd.f32 %v2606_v36, %v2280_v28  ;;  %v2744_v41 = vmul.f32 %v2280_v28, %v2280_v28  ;;  %3279 = vmatmul.msk.f32.vlgmr.msra.gmra.mxu3 %vm2032_vm11, %v3384_v44  ;;  %3207 = vmatmul.msk.f32.gmra.mxu0 %vm2032_vm11, %v1989_v7 }
 0x319   : > { %v2824_v15 = vadd.f32 %v2823_v42, %v2743_v1  ;;  %2483 = vst [vmem:[%s4669_s25 + $0x78] sm:$0xff] %v2280_v28  ;;  %3239 = vmatmul.msk.f32.gmra.mxu1 %vm2032_vm11, %v1989_v7  ;;  %3271 = vmatmul.msk.f32.gmra.mxu2 %vm2032_vm11, %v1989_v7  ;;  %v1303_v16 = vpop.permute.xlu2 %1302 }
 0x31a   : > { %v2861_v27 = vadd.f32 %v2860_v10, %v2744_v41  ;;  %1765 = vst.msk [vmem:[#allocation3 + $0x88] sm:$0xff] %vm1747_vm9, %v1686_v52 }
 0x31b   : > { %1958 = vst.msk [vmem:[#allocation3 + $0x88] sm:$0xff] %vm1940_vm10, %v1879_v26 }
 0x31c   : > { %1380 = vst.msk [vmem:[#allocation3 + $0x98] sm:$0xff] %vm1360_vm7, %v1303_v16 }
 0x31d   : > { %v2393_v19 = vpop.f32.mrf.mxu2 }
 0x31e   : > { %2539 = vst.msk [vmem:[%s4687_s23 + $0x38] sm:$0xff] %vm285_vm0, %v2393_v19  ;;  %v2651_v18 = vsel %vm285_vm0, %v2393_v19, 0.0  ;;  %v2745_v33 = vmul.f32 %v2393_v19, %v2393_v19  ;;  %v1301_v25 = vpop.permute.xlu1 %1300 }
 0x31f   : > { %v2652_v39 = vadd.f32 %v2651_v18, %v2650_v38  ;;  %1379 = vst.msk [vmem:[#allocation3 + $0x90] sm:$0xff] %vm1360_vm7, %v1301_v25  ;;  %v1688_v40 = vpop.permute.xlu0 %1687 }
 0x320   : > { %v2905_v31 = vsel %vm285_vm0, %v2745_v33, 0.0  ;;  %1573 = vst.msk [vmem:[#allocation3 + $0x90] sm:$0xff] %vm1554_vm8, %v1495_v35  ;;  %3280 = vmatmul.msk.f32.gmra.mxu3 %vm2032_vm11, %v4586_v21 }
 0x321   : > { %v2906_v30 = vadd.f32 %v2905_v31, %v2904_v62  ;;  %1766 = vst.msk [vmem:[#allocation3 + $0x90] sm:$0xff] %vm1747_vm9, %v1688_v40  ;;  %v1883_v37 = vpop.permute.xlu2 %1882 }
 0x322   : > { %v1990_v17 = vld [vmem:[#allocation3 + $0x88] sm:$0xff]  ;;  %v4929_v53 = vpop.f32.mrf.mxu3 }
 0x323   : > { %3208 = vmatmul.msk.f32.gmra.mxu0 %vm2032_vm11, %v1990_v17  ;;  %3240 = vmatmul.msk.f32.gmra.mxu1 %vm2032_vm11, %v1990_v17  ;;  %2526 = vst [vmem:[%s4669_s25 + $0x1d0] sm:$0xff] %v4929_v53 }
 0x324   : > { %3272 = vmatmul.msk.f32.gmra.mxu2 %vm2032_vm11, %v1990_v17 }
 0x326   : > { %v1881_v48 = vpop.permute.xlu1 %1880 }
 0x327   : > { %1959 = vst.msk [vmem:[#allocation3 + $0x90] sm:$0xff] %vm1940_vm10, %v1881_v48  ;;  %v1497_v21 = vpop.permute.xlu0 %1496 }
 0x328   : > { %3281 = vmatmul.msk.f32.gmra.mxu3 %vm2032_vm11, %v4613_v6  ;;  %1574 = vst.msk [vmem:[#allocation3 + $0x98] sm:$0xff] %vm1554_vm8, %v1497_v21 }
 0x329   : > { %v1692_v2 = vpop.permute.xlu2 %1691 }
 0x32d   : > { %v2170_v57 = vpop.f32.mrf.mxu0  ;;  %v2283_v47 = vpop.f32.mrf.mxu1 }
 0x32e   : > { %v1690_v60 = vpop.permute.xlu1 %1689  ;;  %2484 = vst [vmem:[%s4669_s25 + $0x80] sm:$0xff] %v2170_v57  ;;  %v2571_v56 = vadd.f32 %v2570_v59, %v2170_v57  ;;  %v2746_v55 = vmul.f32 %v2170_v57, %v2170_v57  ;;  %v2608_v45 = vadd.f32 %v2607_v29, %v2283_v47  ;;  %v2747_v14 = vmul.f32 %v2283_v47, %v2283_v47  ;;  %v1991_v36 = vld [vmem:[#allocation3 + $0x90] sm:$0xff] }
 0x32f   : > { %1767 = vst.msk [vmem:[#allocation3 + $0x98] sm:$0xff] %vm1747_vm9, %v1690_v60  ;;  %3209 = vmatmul.msk.f32.gmra.mxu0 %vm2032_vm11, %v1991_v36  ;;  %3241 = vmatmul.msk.f32.gmra.mxu1 %vm2032_vm11, %v1991_v36  ;;  %v1305_v6 = vpop.permute.xlu0 %1304 }
 0x330   : > { %v2825_v46 = vadd.f32 %v2824_v15, %v2746_v55  ;;  %2485 = vst [vmem:[%s4669_s25 + $0x88] sm:$0xff] %v2283_v47  ;;  %v2862_v32 = vadd.f32 %v2861_v27, %v2747_v14  ;;  %3273 = vmatmul.msk.f32.gmra.mxu2 %vm2032_vm11, %v1991_v36  ;;  %3282 = vmatmul.msk.f32.gmra.mxu3 %vm2032_vm11, %v4639_v49 }
 0x331   : > { %1960 = vst.msk [vmem:[#allocation3 + $0x98] sm:$0xff] %vm1940_vm10, %v1883_v37  ;;  %v1501_v42 = vpop.permute.xlu2 %1500 }
 0x332   : > { %1381 = vst.msk [vmem:[#allocation3 + $0xa0] sm:$0xff] %vm1360_vm7, %v1305_v6 }
 0x334   : > { %v2396_v10 = vpop.f32.mrf.mxu2 }
 0x335   : > { %2540 = vst.msk [vmem:[%s4687_s23 + $0x40] sm:$0xff] %vm285_vm0, %v2396_v10  ;;  %v2653_v3 = vsel %vm285_vm0, %v2396_v10, 0.0  ;;  %v2748_v5 = vmul.f32 %v2396_v10, %v2396_v10 }
 0x336   : > { %v2654_v0 = vadd.f32 %v2653_v3, %v2652_v39  ;;  %v1499_v54 = vpop.permute.xlu1 %1498 }
 0x337   : > { %v2907_v4 = vsel %vm285_vm0, %v2748_v5, 0.0  ;;  %1575 = vst.msk [vmem:[#allocation3 + $0xa0] sm:$0xff] %vm1554_vm8, %v1499_v54  ;;  %v1885_v38 = vpop.permute.xlu0 %1884 }
 0x338   : > { %v2908_v49 = vadd.f32 %v2907_v4, %v2906_v30  ;;  %1768 = vst.msk [vmem:[#allocation3 + $0xa0] sm:$0xff] %vm1747_vm9, %v1692_v2  ;;  %3283 = vmatmul.msk.f32.gmra.mxu3 %vm2032_vm11, %v4674_v51  ;;  %v1992_v50 = vld [vmem:[#allocation3 + $0x98] sm:$0xff] }
 0x339   : > { %1961 = vst.msk [vmem:[#allocation3 + $0xa0] sm:$0xff] %vm1940_vm10, %v1885_v38  ;;  %3210 = vmatmul.msk.f32.gmra.mxu0 %vm2032_vm11, %v1992_v50  ;;  %3242 = vmatmul.msk.f32.gmra.mxu1 %vm2032_vm11, %v1992_v50  ;;  %v1309_v11 = vpop.permute.xlu2 %1308 }
 0x33a   : > { %3274 = vmatmul.msk.f32.gmra.mxu2 %vm2032_vm11, %v1992_v50  ;;  %v4962_v20 = vpop.f32.mrf.mxu3  ;;  %1383 = vst.msk [vmem:[#allocation3 + $0xb0] sm:$0xff] %vm1360_vm7, %v1309_v11 }
 0x33b   : > { %2528 = vst [vmem:[%s4669_s25 + $0x1e0] sm:$0xff] %v4962_v20 }
 0x33e   : > { %v1307_v62 = vpop.permute.xlu1 %1306 }
 0x33f   : > { %1382 = vst.msk [vmem:[#allocation3 + $0xa8] sm:$0xff] %vm1360_vm7, %v1307_v62  ;;  %v1694_v51 = vpop.permute.xlu0 %1693 }
 0x340   : > { %1576 = vst.msk [vmem:[#allocation3 + $0xa8] sm:$0xff] %vm1554_vm8, %v1501_v42  ;;  %3284 = vmatmul.msk.f32.gmra.mxu3 %vm2032_vm11, %v4717_v24  ;;  %v1993_v52 = vld [vmem:[#allocation3 + $0xa0] sm:$0xff] }
 0x341   : > { %1769 = vst.msk [vmem:[#allocation3 + $0xa8] sm:$0xff] %vm1747_vm9, %v1694_v51  ;;  %3211 = vmatmul.msk.f32.gmra.mxu0 %vm2032_vm11, %v1993_v52  ;;  %3243 = vmatmul.msk.f32.gmra.mxu1 %vm2032_vm11, %v1993_v52  ;;  %v1889_v41 = vpop.permute.xlu2 %1888 }
 0x342   : > { %3275 = vmatmul.msk.f32.gmra.mxu2 %vm2032_vm11, %v1993_v52 }
 0x345   : > { %v2173_v34 = vpop.f32.mrf.mxu0  ;;  %v2286_v61 = vpop.f32.mrf.mxu1 }
 0x346   : > { %v1887_v8 = vpop.permute.xlu1 %1886  ;;  %2486 = vst [vmem:[%s4669_s25 + $0x90] sm:$0xff] %v2173_v34  ;;  %v2572_v35 = vadd.f32 %v2571_v56, %v2173_v34  ;;  %v2749_v9 = vmul.f32 %v2173_v34, %v2173_v34  ;;  %v2609_v13 = vadd.f32 %v2608_v45, %v2286_v61  ;;  %v2750_v59 = vmul.f32 %v2286_v61, %v2286_v61 }
 0x347   : > { %1962 = vst.msk [vmem:[#allocation3 + $0xa8] sm:$0xff] %vm1940_vm10, %v1887_v8  ;;  %v1503_v24 = vpop.permute.xlu0 %1502 }
 0x348   : > { %v2826_v1 = vadd.f32 %v2825_v46, %v2749_v9  ;;  %2487 = vst [vmem:[%s4669_s25 + $0x98] sm:$0xff] %v2286_v61  ;;  %v2863_v28 = vadd.f32 %v2862_v32, %v2750_v59  ;;  %3285 = vmatmul.msk.f32.gmra.mxu3 %vm2032_vm11, %v4754_v58 }
 0x349   : > { %1577 = vst.msk [vmem:[#allocation3 + $0xb0] sm:$0xff] %vm1554_vm8, %v1503_v24 }
 0x34b   : > { %v1698_v17 = vpop.permute.xlu2 %1697 }
 0x34c   : > { %v2399_v26 = vpop.f32.mrf.mxu2 }
 0x34d   : > { %2541 = vst.msk [vmem:[%s4687_s23 + $0x48] sm:$0xff] %vm285_vm0, %v2399_v26  ;;  %v2655_v7 = vsel %vm285_vm0, %v2399_v26, 0.0  ;;  %v2751_v29 = vmul.f32 %v2399_v26, %v2399_v26 }
 0x34e   : > { %v2656_v44 = vadd.f32 %v2655_v7, %v2654_v0  ;;  %v1696_v15 = vpop.permute.xlu1 %1695  ;;  %v1994_v16 = vld [vmem:[#allocation3 + $0xa8] sm:$0xff] }
 0x34f   : > { %v2909_v27 = vsel %vm285_vm0, %v2751_v29, 0.0  ;;  %1770 = vst.msk [vmem:[#allocation3 + $0xb0] sm:$0xff] %vm1747_vm9, %v1696_v15  ;;  %3212 = vmatmul.msk.f32.gmra.mxu0 %vm2032_vm11, %v1994_v16  ;;  %3244 = vmatmul.msk.f32.gmra.mxu1 %vm2032_vm11, %v1994_v16  ;;  %v1311_v58 = vpop.permute.xlu0 %1310 }
 0x350   : > { %v2910_v19 = vadd.f32 %v2909_v27, %v2908_v49  ;;  %1963 = vst.msk [vmem:[#allocation3 + $0xb0] sm:$0xff] %vm1940_vm10, %v1889_v41  ;;  %3276 = vmatmul.msk.f32.gmra.mxu2 %vm2032_vm11, %v1994_v16  ;;  %3286 = vmatmul.msk.f32.gmra.mxu3 %vm2032_vm11, %v4796_v22 }
 0x351   : > { %1384 = vst.msk [vmem:[#allocation3 + $0xb8] sm:$0xff] %vm1360_vm7, %v1311_v58 }
 0x352   : > { %v4993_v18 = vpop.f32.mrf.mxu3 }
 0x353   : > { %5577 = vst [vmem:[#allocation13_spill] sm:$0xff] %v4993_v18 }
 0x354   : > { %2530 = vst [vmem:[%s4669_s25 + $0x1f0] sm:$0xff] %v4993_v18 }
 0x356   : > { %v2176_v33 = vpop.f32.mrf.mxu0  ;;  %v2289_v25 = vpop.f32.mrf.mxu1 }
 0x357   : > { %2488 = vst [vmem:[%s4669_s25 + $0xa0] sm:$0xff] %v2176_v33  ;;  %v2573_v39 = vadd.f32 %v2572_v35, %v2176_v33  ;;  %v2752_v40 = vmul.f32 %v2176_v33, %v2176_v33  ;;  %v2610_v31 = vadd.f32 %v2609_v13, %v2289_v25  ;;  %v2753_v30 = vmul.f32 %v2289_v25, %v2289_v25  ;;  %v1505_v37 = vpop.permute.xlu1 %1504  ;;  %v1995_v48 = vld [vmem:[#allocation3 + $0xb0] sm:$0xff]  ;;  %v1891_v22 = vpop.permute.xlu0 %1890 }
 0x358   : > { %2489 = vst [vmem:[%s4669_s25 + $0xa8] sm:$0xff] %v2289_v25  ;;  %3213 = vmatmul.msk.f32.gmra.mxu0 %vm2032_vm11, %v1995_v48  ;;  %3245 = vmatmul.msk.f32.gmra.mxu1 %vm2032_vm11, %v1995_v48 }
 0x359   : > { %v2827_v21 = vadd.f32 %v2826_v1, %v2752_v40  ;;  %v2864_v2 = vadd.f32 %v2863_v28, %v2753_v30  ;;  %1578 = vst.msk [vmem:[#allocation3 + $0xb8] sm:$0xff] %vm1554_vm8, %v1505_v37  ;;  %3277 = vmatmul.msk.f32.gmra.mxu2 %vm2032_vm11, %v1995_v48 }
 0x35a   : > { %1771 = vst.msk [vmem:[#allocation3 + $0xb8] sm:$0xff] %vm1747_vm9, %v1698_v17  ;;  %v5004_v57 = vpop.f32.mrf.mxu3 }
 0x35b   : > { %1964 = vst.msk [vmem:[#allocation3 + $0xb8] sm:$0xff] %vm1940_vm10, %v1891_v22 }
 0x35c   : > { %2517 = vst [vmem:[%s4669_s25 + $0x188] sm:$0xff] %v5004_v57 }
 0x35d   : > { %v2402_v47 = vpop.f32.mrf.mxu2 }
 0x35e   : > { %2542 = vst.msk [vmem:[%s4687_s23 + $0x50] sm:$0xff] %vm285_vm0, %v2402_v47  ;;  %v2657_v60 = vsel %vm285_vm0, %v2402_v47, 0.0  ;;  %v2754_v56 = vmul.f32 %v2402_v47, %v2402_v47  ;;  %v2179_v55 = vpop.f32.mrf.mxu0  ;;  %v2292_v45 = vpop.f32.mrf.mxu1 }
 0x35f   : > { %v2658_v14 = vadd.f32 %v2657_v60, %v2656_v44  ;;  %2490 = vst [vmem:[%s4669_s25 + $0xb0] sm:$0xff] %v2179_v55  ;;  %v2574_v36 = vadd.f32 %v2573_v39, %v2179_v55  ;;  %v2755_v6 = vmul.f32 %v2179_v55, %v2179_v55  ;;  %v2611_v46 = vadd.f32 %v2610_v31, %v2292_v45 }
 0x360   : > { %v2911_v32 = vsel %vm285_vm0, %v2754_v56, 0.0  ;;  %2491 = vst [vmem:[%s4669_s25 + $0xb8] sm:$0xff] %v2292_v45  ;;  %v2756_v42 = vmul.f32 %v2292_v45, %v2292_v45 }
 0x361   : > { %v2912_v10 = vadd.f32 %v2911_v32, %v2910_v19  ;;  %v2828_v3 = vadd.f32 %v2827_v21, %v2755_v6 }
 0x362   : > { %v2865_v5 = vadd.f32 %v2864_v2, %v2756_v42  ;;  %v1996_v0 = vld [vmem:[#allocation3 + $0xb8] sm:$0xff]  ;;  %v5015_v54 = vpop.f32.mrf.mxu3 }
 0x363   : > { %3214 = vmatmul.msk.f32.gmra.mxu0 %vm2032_vm11, %v1996_v0  ;;  %3246 = vmatmul.msk.f32.gmra.mxu1 %vm2032_vm11, %v1996_v0  ;;  %2519 = vst [vmem:[%s4669_s25 + $0x198] sm:$0xff] %v5015_v54 }
 0x364   : > { %3278 = vmatmul.msk.f32.gmra.mxu2 %vm2032_vm11, %v1996_v0 }
 0x365   : > { %v2405_v4 = vpop.f32.mrf.mxu2 }
 0x366   : > { %2543 = vst.msk [vmem:[%s4687_s23 + $0x58] sm:$0xff] %vm285_vm0, %v2405_v4  ;;  %v2659_v38 = vsel %vm285_vm0, %v2405_v4, 0.0  ;;  %v2757_v49 = vmul.f32 %v2405_v4, %v2405_v4 }
 0x367   : > { %v2660_v50 = vadd.f32 %v2659_v38, %v2658_v14 }
 0x368   : > { %v2913_v11 = vsel %vm285_vm0, %v2757_v49, 0.0 }
 0x369   : > { %v2914_v62 = vadd.f32 %v2913_v11, %v2912_v10 }
 0x36a   : > { %v5026_v51 = vpop.f32.mrf.mxu3 }
 0x36b   : > { %2521 = vst [vmem:[%s4669_s25 + $0x1a8] sm:$0xff] %v5026_v51 }
 0x36c   : > { %v2182_v52 = vpop.f32.mrf.mxu0  ;;  %v2295_v34 = vpop.f32.mrf.mxu1 }
 0x36d   : > { %2492 = vst [vmem:[%s4669_s25 + $0xc0] sm:$0xff] %v2182_v52  ;;  %v2575_v61 = vadd.f32 %v2574_v36, %v2182_v52  ;;  %v2758_v8 = vmul.f32 %v2182_v52, %v2182_v52  ;;  %v2612_v35 = vadd.f32 %v2611_v46, %v2295_v34  ;;  %v2759_v9 = vmul.f32 %v2295_v34, %v2295_v34 }
 0x36e   : > { %2493 = vst [vmem:[%s4669_s25 + $0xc8] sm:$0xff] %v2295_v34 }
 0x36f   : > { %v2829_v13 = vadd.f32 %v2828_v3, %v2758_v8  ;;  %v2866_v59 = vadd.f32 %v2865_v5, %v2759_v9 }
 0x373   : > { %v5032_v24 = vpop.f32.mrf.mxu3  ;;  %v2408_v1 = vpop.f32.mrf.mxu2 }
 0x374   : > { %2523 = vst [vmem:[%s4669_s25 + $0x1b8] sm:$0xff] %v5032_v24  ;;  %v2661_v28 = vsel %vm285_vm0, %v2408_v1, 0.0  ;;  %v2760_v26 = vmul.f32 %v2408_v1, %v2408_v1 }
 0x375   : > { %2544 = vst.msk [vmem:[%s4687_s23 + $0x60] sm:$0xff] %vm285_vm0, %v2408_v1  ;;  %v2662_v7 = vadd.f32 %v2661_v28, %v2660_v50  ;;  %v2185_v29 = vpop.f32.mrf.mxu0 }
 0x376   : > { %v2915_v41 = vsel %vm285_vm0, %v2760_v26, 0.0  ;;  %2494 = vst [vmem:[%s4669_s25 + $0xd0] sm:$0xff] %v2185_v29  ;;  %v2576_v44 = vadd.f32 %v2575_v61, %v2185_v29  ;;  %v2761_v15 = vmul.f32 %v2185_v29, %v2185_v29  ;;  %v2298_v16 = vpop.f32.mrf.mxu1 }
 0x377   : > { %v2916_v27 = vadd.f32 %v2915_v41, %v2914_v62  ;;  %2495 = vst [vmem:[%s4669_s25 + $0xd8] sm:$0xff] %v2298_v16  ;;  %v2613_v58 = vadd.f32 %v2612_v35, %v2298_v16  ;;  %v2762_v19 = vmul.f32 %v2298_v16, %v2298_v16 }
 0x378   : > { %v2830_v33 = vadd.f32 %v2829_v13, %v2761_v15 }
 0x379   : > { %v2867_v25 = vadd.f32 %v2866_v59, %v2762_v19 }
 0x37b   : > { %v5042_v39 = vpop.f32.mrf.mxu3 }
 0x37c   : > { %2525 = vst [vmem:[%s4669_s25 + $0x1c8] sm:$0xff] %v5042_v39  ;;  %v2411_v40 = vpop.f32.mrf.mxu2 }
 0x37d   : > { %2545 = vst.msk [vmem:[%s4687_s23 + $0x68] sm:$0xff] %vm285_vm0, %v2411_v40  ;;  %v2663_v31 = vsel %vm285_vm0, %v2411_v40, 0.0  ;;  %v2763_v30 = vmul.f32 %v2411_v40, %v2411_v40 }
 0x37e   : > { %v2664_v37 = vadd.f32 %v2663_v31, %v2662_v7  ;;  %v2188_v17 = vpop.f32.mrf.mxu0  ;;  %v2301_v48 = vpop.f32.mrf.mxu1 }
 0x37f   : > { %v2917_v22 = vsel %vm285_vm0, %v2763_v30, 0.0  ;;  %2496 = vst [vmem:[%s4669_s25 + $0xe0] sm:$0xff] %v2188_v17  ;;  %v2577_v21 = vadd.f32 %v2576_v44, %v2188_v17  ;;  %v2764_v2 = vmul.f32 %v2188_v17, %v2188_v17  ;;  %v2614_v47 = vadd.f32 %v2613_v58, %v2301_v48 }
 0x380   : > { %v2918_v60 = vadd.f32 %v2917_v22, %v2916_v27  ;;  %2497 = vst [vmem:[%s4669_s25 + $0xe8] sm:$0xff] %v2301_v48  ;;  %v2765_v56 = vmul.f32 %v2301_v48, %v2301_v48 }
 0x381   : > { %v2831_v55 = vadd.f32 %v2830_v33, %v2764_v2 }
 0x382   : > { %v2868_v45 = vadd.f32 %v2867_v25, %v2765_v56 }
 0x383   : > { %v5052_v14 = vpop.f32.mrf.mxu3 }
 0x384   : > { %2527 = vst [vmem:[%s4669_s25 + $0x1d8] sm:$0xff] %v5052_v14 }
 0x385   : > { %v2414_v36 = vpop.f32.mrf.mxu2 }
 0x386   : > { %2546 = vst.msk [vmem:[%s4687_s23 + $0x70] sm:$0xff] %vm285_vm0, %v2414_v36  ;;  %v2665_v6 = vsel %vm285_vm0, %v2414_v36, 0.0  ;;  %v2766_v46 = vmul.f32 %v2414_v36, %v2414_v36 }
 0x387   : > { %v2666_v32 = vadd.f32 %v2665_v6, %v2664_v37 }
 0x388   : > { %v2919_v42 = vsel %vm285_vm0, %v2766_v46, 0.0  ;;  %v5182_v46 = vld [vmem:[%s4669_s25 + $0x180] sm:$0xff] }
 0x389   : > { %v2920_v10 = vadd.f32 %v2919_v42, %v2918_v60  ;;  %v5190_v42 = vmul.f32 %v4774_v12, %v4774_v12 }
 0x38b   : > { %v5060_v3 = vpop.f32.mrf.mxu3 }
 0x38c   : > { %5578 = vst [vmem:[#allocation12_spill] sm:$0xff] %v5060_v3  ;;  %v2191_v5 = vpop.f32.mrf.mxu0  ;;  %v2304_v0 = vpop.f32.mrf.mxu1 }
 0x38d   : > { %2529 = vst [vmem:[%s4669_s25 + $0x1e8] sm:$0xff] %v5060_v3  ;;  %v2578_v4 = vadd.f32 %v2577_v21, %v2191_v5  ;;  %v2767_v38 = vmul.f32 %v2191_v5, %v2191_v5  ;;  %v2615_v49 = vadd.f32 %v2614_v47, %v2304_v0  ;;  %v2768_v50 = vmul.f32 %v2304_v0, %v2304_v0 }
 0x38e   : > { %2498 = vst [vmem:[%s4669_s25 + $0xf0] sm:$0xff] %v2191_v5  ;;  %v5200_v5 = vmul.f32 %v4866_v43, %v4866_v43 }
 0x38f   : > { %2499 = vst [vmem:[%s4669_s25 + $0xf8] sm:$0xff] %v2304_v0  ;;  %v2832_v11 = vadd.f32 %v2831_v55, %v2767_v38  ;;  %v2869_v62 = vadd.f32 %v2868_v45, %v2768_v50  ;;  %v5204_v0 = vmul.f32 %v4898_v23, %v4898_v23  ;;  %v5212_v38 = vmul.f32 %v4962_v20, %v4962_v20 }
 0x390   : > { %v5222_v50 = vmul.f32 %v5004_v57, %v5004_v57 }
 0x391   : > { %5583 = vst [vmem:[#allocation14_spill] sm:$0xff] %v5212_v38 }
 0x393   : > { %v5066_v52 = vpop.f32.mrf.mxu3  ;;  %v2417_v34 = vpop.f32.mrf.mxu2 }
 0x394   : > { %5579 = vst [vmem:[#allocation11_spill] sm:$0xff] %v5066_v52  ;;  %v2667_v61 = vsel %vm285_vm0, %v2417_v34, 0.0  ;;  %v2769_v8 = vmul.f32 %v2417_v34, %v2417_v34 }
 0x395   : > { %2531 = vst [vmem:[%s4669_s25 + $0x1f8] sm:$0xff] %v5066_v52  ;;  %v5073_v35 = vadd.f32 %v2667_v61, %v2666_v32  ;;  %v2194_v9 = vpop.f32.mrf.mxu0  ;;  %v5186_v32 = vmul.f32 %v5182_v46, %v5182_v46  ;;  %v5236_v61 = vmul.f32 %v5032_v24, %v5032_v24 }
 0x396   : > { %2547 = vst.msk [vmem:[%s4687_s23 + $0x78] sm:$0xff] %vm285_vm0, %v2417_v34  ;;  %v2921_v13 = vsel %vm285_vm0, %v2769_v8, 0.0  ;;  %v5077_v59 = vadd.f32 %v2578_v4, %v2194_v9  ;;  %v2770_v1 = vmul.f32 %v2194_v9, %v2194_v9  ;;  %v2307_v28 = vpop.f32.mrf.mxu1  ;;  %v5208_v4 = vmul.f32 %v4929_v53, %v4929_v53 }
 0x397   : > { %2500 = vst [vmem:[%s4669_s25 + $0x100] sm:$0xff] %v2194_v9  ;;  %v5079_v26 = vadd.f32 %v2921_v13, %v2920_v10  ;;  %v5082_v7 = vadd.f32 %v2615_v49, %v2307_v28  ;;  %v2771_v29 = vmul.f32 %v2307_v28, %v2307_v28  ;;  %v5194_v10 = vmul.f32 %v4823_v63, %v4823_v63 }
 0x398   : > { %2501 = vst [vmem:[%s4669_s25 + $0x108] sm:$0xff] %v2307_v28  ;;  %v5084_v41 = vadd.f32 %v2832_v11, %v2770_v1  ;;  %v5218_v49 = vmul.f32 %v4993_v18, %v4993_v18  ;;  %v5226_v11 = vmul.f32 %v5015_v54, %v5015_v54  ;;  %v5232_v34 = vmul.f32 %v5026_v51, %v5026_v51 }
 0x399   : > { %v5086_v44 = vadd.f32 %v2869_v62, %v2771_v29  ;;  %5582 = vst [vmem:[#allocation18_spill] sm:$0xff] %v5208_v4  ;;  %v5242_v13 = vmul.f32 %v5042_v39, %v5042_v39  ;;  %v5246_v1 = vmul.f32 %v5052_v14, %v5052_v14 }
 0x39a   : > { %5584 = vst [vmem:[#allocation19_spill] sm:$0xff] %v5218_v49 }
 0x39b   : > { %v5088_v15 = vpop.f32.mrf.mxu3  ;;  %5585 = vst [vmem:[#allocation16_spill] sm:$0xff] %v5246_v1 }
 0x39c   : > { %2556 = vst.msk [vmem:[%s4687_s23 + $0xc0] sm:$0xff] %vm285_vm0, %v5088_v15  ;;  %v2420_v16 = vpop.f32.mrf.mxu2  ;;  %v2796_v62 = vmul.f32 %v5088_v15, %v5088_v15  ;;  %v5266_v38 = vsel %vm285_vm0, %v5088_v15, 0.0 }
 0x39d   : > { %2548 = vst.msk [vmem:[%s4687_s23 + $0x80] sm:$0xff] %vm285_vm0, %v2420_v16  ;;  %v2772_v45 = vmul.f32 %v2420_v16, %v2420_v16  ;;  %v2669_v8 = vsel %vm285_vm0, %v2420_v16, 0.0  ;;  %v5254_v16 = vmul.f32 %v5060_v3, %v5060_v3 }
 0x39e   : > { %v5269_v18 = vsel %vm285_vm0, %v2796_v62, 0.0 }
 0x39f   : > { %v2923_v9 = vsel %vm285_vm0, %v2772_v45, 0.0  ;;  %5586 = vst [vmem:[#allocation20_spill] sm:$0xff] %v5254_v16  ;;  %v5258_v45 = vmul.f32 %v5066_v52, %v5066_v52  ;;  %v2670_v16 = vadd.f32 %v2669_v8, %v5073_v35 }
 0x3a0   : > { %v5095_v27 = vpop.f32.mrf.mxu0  ;;  %v5097_v58 = vpop.f32.mrf.mxu1 }
 0x3a1   : > { %2502 = vst [vmem:[%s4669_s25 + $0x110] sm:$0xff] %v5095_v27  ;;  %v2773_v28 = vmul.f32 %v5095_v27, %v5095_v27  ;;  %v2774_v29 = vmul.f32 %v5097_v58, %v5097_v58  ;;  %v2580_v1 = vadd.f32 %v5077_v59, %v5095_v27 }
 0x3a2   : > { %2503 = vst [vmem:[%s4669_s25 + $0x118] sm:$0xff] %v5097_v58 }
 0x3a3   : > { %v5103_v19 = vpop.f32.mrf.mxu3  ;;  %5587 = vst [vmem:[#allocation21_spill] sm:$0xff] %v5258_v45  ;;  %v2834_v35 = vadd.f32 %v5084_v41, %v2773_v28  ;;  %v2871_v59 = vadd.f32 %v5086_v44, %v2774_v29 }
 0x3a4   : > { %2557 = vst.msk [vmem:[%s4687_s23 + $0xc8] sm:$0xff] %vm285_vm0, %v5103_v19  ;;  %v5294_v27 = vsel %vm285_vm0, %v5103_v19, 0.0 }
 0x3a7   : > { %v5108_v33 = vpop.f32.mrf.mxu2 }
 0x3a8   : > { %2549 = vst.msk [vmem:[%s4687_s23 + $0x88] sm:$0xff] %vm285_vm0, %v5108_v33  ;;  %v2775_v49 = vmul.f32 %v5108_v33, %v5108_v33  ;;  %v2671_v3 = vsel %vm285_vm0, %v5108_v33, 0.0 }
 0x3aa   : > { %v2925_v41 = vsel %vm285_vm0, %v2775_v49, 0.0 }
 0x3ab   : > { %v5113_v25 = vpop.f32.mrf.mxu3 }
 0x3ac   : > { %2558 = vst.msk [vmem:[%s4687_s23 + $0xd0] sm:$0xff] %vm285_vm0, %v5113_v25  ;;  %v5118_v40 = vpop.f32.mrf.mxu0  ;;  %v5120_v31 = vpop.f32.mrf.mxu1 }
 0x3ad   : > { %2504 = vst [vmem:[%s4669_s25 + $0x120] sm:$0xff] %v5118_v40  ;;  %v2776_v15 = vmul.f32 %v5118_v40, %v5118_v40  ;;  %v2777_v62 = vmul.f32 %v5120_v31, %v5120_v31 }
 0x3ae   : > { %2505 = vst [vmem:[%s4669_s25 + $0x128] sm:$0xff] %v5120_v31 }
 0x3b3   : > { %v5126_v30 = vpop.f32.mrf.mxu2  ;;  %v5128_v37 = vpop.f32.mrf.mxu3 }
 0x3b4   : > { %2550 = vst.msk [vmem:[%s4687_s23 + $0x90] sm:$0xff] %vm285_vm0, %v5126_v30  ;;  %v2778_v29 = vmul.f32 %v5126_v30, %v5126_v30 }
 0x3b5   : > { %2559 = vst.msk [vmem:[%s4687_s23 + $0xd8] sm:$0xff] %vm285_vm0, %v5128_v37 }
 0x3b6   : > { %v5136_v17 = vpop.f32.mrf.mxu0  ;;  %v5138_v48 = vpop.f32.mrf.mxu1 }
 0x3b7   : > { %2506 = vst [vmem:[%s4669_s25 + $0x130] sm:$0xff] %v5136_v17  ;;  %v2780_v44 = vmul.f32 %v5138_v48, %v5138_v48 }
 0x3b8   : > { %2507 = vst [vmem:[%s4669_s25 + $0x138] sm:$0xff] %v5138_v48 }
 0x3bb   : > { %v5144_v22 = vpop.f32.mrf.mxu3 }
 0x3bc   : > { %2560 = vst.msk [vmem:[%s4687_s23 + $0xe0] sm:$0xff] %vm285_vm0, %v5144_v22 }
 0x3bd   : > { %v5149_v21 = vpop.f32.mrf.mxu2 }
 0x3be   : > { %2551 = vst.msk [vmem:[%s4687_s23 + $0x98] sm:$0xff] %vm285_vm0, %v5149_v21  ;;  %v5154_v2 = vpop.f32.mrf.mxu0  ;;  %v5156_v47 = vpop.f32.mrf.mxu1 }
 0x3bf   : > { %2508 = vst [vmem:[%s4669_s25 + $0x140] sm:$0xff] %v5154_v2  ;;  %v2782_v49 = vmul.f32 %v5154_v2, %v5154_v2 }
 0x3c0   : > { %2509 = vst [vmem:[%s4669_s25 + $0x148] sm:$0xff] %v5156_v47 }
 0x3c3   : > { %v5162_v60 = vpop.f32.mrf.mxu3 }
 0x3c4   : > { %5580 = vst [vmem:[#allocation17_spill] sm:$0xff] %v5162_v60 }
 0x3c5   : > { %2561 = vst.msk [vmem:[%s4687_s23 + $0xe8] sm:$0xff] %vm285_vm0, %v5162_v60  ;;  %v5167_v56 = vpop.f32.mrf.mxu2  ;;  %v2924_v60 = vadd.f32 %v2923_v9, %v5079_v26  ;;  %v2617_v26 = vadd.f32 %v5082_v7, %v5097_v58  ;;  %v2779_v7 = vmul.f32 %v5136_v17, %v5136_v17  ;;  %v2672_v58 = vadd.f32 %v2671_v3, %v2670_v16 }
 0x3c6   : > { %2552 = vst.msk [vmem:[%s4687_s23 + $0xa0] sm:$0xff] %vm285_vm0, %v5167_v56  ;;  %v2673_v3 = vsel %vm285_vm0, %v5126_v30, 0.0  ;;  %v2927_v30 = vsel %vm285_vm0, %v2778_v29, 0.0 }
 0x3c7   : > { %v2618_v28 = vadd.f32 %v2617_v26, %v5120_v31  ;;  %v2926_v4 = vadd.f32 %v2925_v41, %v2924_v60 }
 0x3c9   : > { %v2619_v31 = vadd.f32 %v2618_v28, %v5138_v48 }
 0x3cb   : > { %v5172_v55 = vpop.f32.mrf.mxu3  ;;  %v2620_v60 = vadd.f32 %v2619_v31, %v5156_v47 }
 0x3cc   : > { %5581 = vst [vmem:[#allocation15_spill] sm:$0xff] %v5172_v55  ;;  %v5177_v36 = vpop.f32.mrf.mxu0  ;;  %v5179_v6 = vpop.f32.mrf.mxu1 }
 0x3cd   : > { %2562 = vst.msk [vmem:[%s4687_s23 + $0xf0] sm:$0xff] %vm285_vm0, %v5172_v55  ;;  %v2799_v55 = vmul.f32 %v5103_v19, %v5103_v19  ;;  %v2581_v19 = vadd.f32 %v2580_v1, %v5118_v40  ;;  %v2621_v28 = vadd.f32 %v2620_v60, %v5179_v6 }
 0x3ce   : > { %2510 = vst [vmem:[%s4669_s25 + $0x150] sm:$0xff] %v5177_v36 }
 0x3cf   : > { %2511 = vst [vmem:[%s4669_s25 + $0x158] sm:$0xff] %v5179_v6  ;;  %v5300_v9 = vsel %vm285_vm0, %v2799_v55, 0.0  ;;  %v2835_v55 = vadd.f32 %v2834_v35, %v2776_v15  ;;  %v2582_v40 = vadd.f32 %v2581_v19, %v5136_v17  ;;  %v2785_v15 = vmul.f32 %v5177_v36, %v5177_v36 }
 0x3d0   : > { %5589 = vst [vmem:[#allocation23_spill] sm:$0xff] %v5300_v9  ;;  %v2783_v9 = vmul.f32 %v5156_v47, %v5156_v47  ;;  %v2781_v17 = vmul.f32 %v5149_v21, %v5149_v21  ;;  %v2784_v47 = vmul.f32 %v5167_v56, %v5167_v56 }
 0x3d1   : > { %v2836_v1 = vadd.f32 %v2835_v55, %v2779_v7  ;;  %v2583_v48 = vadd.f32 %v2582_v40, %v5154_v2  ;;  %v5339_v7 = vsel %vm285_vm0, %v5113_v25, 0.0  ;;  %v2928_v2 = vadd.f32 %v2927_v30, %v2926_v4 }
 0x3d2   : > { %v2675_v55 = vsel %vm285_vm0, %v5149_v21, 0.0 }
 0x3d3   : > { %v5273_v52 = vpop.f32.mrf.mxu2  ;;  %v5275_v45 = vpop.f32.mrf.mxu3  ;;  %v2584_v19 = vadd.f32 %v2583_v48, %v5177_v36  ;;  %v2677_v36 = vsel %vm285_vm0, %v5167_v56, 0.0  ;;  %v2931_v56 = vsel %vm285_vm0, %v2784_v47, 0.0 }
 0x3d4   : > { %5588 = vst [vmem:[#allocation22_spill] sm:$0xff] %v5275_v45 }
 0x3d5   : > { %2553 = vst.msk [vmem:[%s4687_s23 + $0xa8] sm:$0xff] %vm285_vm0, %v5273_v52  ;;  %v2212_v33 = vpop.f32.mrf.mxu0  ;;  %v2325_v8 = vpop.f32.mrf.mxu1 }
 0x3d6   : > { %2563 = vst.msk [vmem:[%s4687_s23 + $0xf8] sm:$0xff] %vm285_vm0, %v5275_v45  ;;  %v2872_v45 = vadd.f32 %v2871_v59, %v2777_v62  ;;  %v2786_v62 = vmul.f32 %v5179_v6, %v5179_v6  ;;  %v2788_v26 = vmul.f32 %v2212_v33, %v2212_v33  ;;  %v2789_v59 = vmul.f32 %v2325_v8, %v2325_v8 }
 0x3d7   : > { %2512 = vst [vmem:[%s4669_s25 + $0x160] sm:$0xff] %v2212_v33  ;;  %v2787_v6 = vmul.f32 %v5273_v52, %v5273_v52 }
 0x3d8   : > { %2513 = vst [vmem:[%s4669_s25 + $0x168] sm:$0xff] %v2325_v8  ;;  %v2873_v16 = vadd.f32 %v2872_v45, %v2780_v44  ;;  %v2837_v45 = vadd.f32 %v2836_v1, %v2782_v49  ;;  %v2674_v44 = vadd.f32 %v2673_v3, %v2672_v58  ;;  %v2929_v49 = vsel %vm285_vm0, %v2781_v17, 0.0 }
 0x3d9   : > { %v2585_v58 = vadd.f32 %v2584_v19, %v2212_v33  ;;  %v2622_v3 = vadd.f32 %v2621_v28, %v2325_v8 }
 0x3da   : > { %v2874_v35 = vadd.f32 %v2873_v16, %v2783_v9  ;;  %v2838_v9 = vadd.f32 %v2837_v45, %v2785_v15  ;;  %v2676_v15 = vadd.f32 %v2675_v55, %v2674_v44 }
 0x3dc   : > { %v2438_v41 = vpop.f32.mrf.mxu2  ;;  %v2875_v29 = vadd.f32 %v2874_v35, %v2786_v62  ;;  %v2839_v4 = vadd.f32 %v2838_v9, %v2788_v26  ;;  %v2679_v62 = vsel %vm285_vm0, %v5273_v52, 0.0 }
 0x3dd   : > { %2554 = vst.msk [vmem:[%s4687_s23 + $0xb0] sm:$0xff] %vm285_vm0, %v2438_v41  ;;  %v2790_v30 = vmul.f32 %v2438_v41, %v2438_v41 }
 0x3de   : > { %v2876_v40 = vadd.f32 %v2875_v29, %v2789_v59 }
 0x3e0   : > { %v2215_v31 = vpop.f32.mrf.mxu0  ;;  %v2328_v1 = vpop.f32.mrf.mxu1 }
 0x3e1   : > { %2514 = vst [vmem:[%s4669_s25 + $0x170] sm:$0xff] %v2215_v31  ;;  %v2586_v21 = vadd.f32 %v2585_v58, %v2215_v31  ;;  %v2791_v33 = vmul.f32 %v2215_v31, %v2215_v31  ;;  %v2623_v8 = vadd.f32 %v2622_v3, %v2328_v1  ;;  %v2792_v16 = vmul.f32 %v2328_v1, %v2328_v1 }
 0x3e2   : > { %2515 = vst [vmem:[%s4669_s25 + $0x178] sm:$0xff] %v2328_v1 }
 0x3e3   : > { %v2587_v17 = vadd.f32 %v5182_v46, %v2586_v21  ;;  %v2840_v48 = vadd.f32 %v2839_v4, %v2791_v33  ;;  %v2624_v60 = vadd.f32 %v2623_v8, %v5004_v57  ;;  %v2877_v45 = vadd.f32 %v2876_v40, %v2792_v16 }
 0x3e4   : > { %3413 = shalt.err (!%p3410_p3)
}
 0x3e5   : > { %s3519_s7 = smov 256   ;;  %v2930_v57 = vadd.f32 %v2929_v49, %v2928_v2  ;;  %v2678_v52 = vadd.f32 %v2677_v36, %v2676_v15  ;;  %v2933_v46 = vsel %vm285_vm0, %v2787_v6, 0.0  ;;  %v2681_v35 = vsel %vm285_vm0, %v2438_v41, 0.0  ;;  %v5590_v16 = vld [vmem:[#allocation18_spill] sm:$0xff]  ;;  %s3434_s15 = scalar_lea.hbm %s5528_s4, 6 }
 0x3e6   : > { %3325 = dma.vmem_to_hbm [thread:$0]  (%p3590_p5), %s5351_s16, 8192, %s5357_s17, %s2971_s8, %s3519_s7, %s3519_s7, %s3512_s11   ;;  %v2588_v26 = vadd.f32 %v2587_v17, %v4774_v12  ;;  %v2841_v59 = vadd.f32 %v2840_v48, %v5186_v32  ;;  %v2625_v44 = vadd.f32 %v2624_v60, %v5015_v54  ;;  %v2878_v19 = vadd.f32 %v2877_v45, %v5222_v50  ;;  %v5594_v48 = vld [vmem:[#allocation23_spill] sm:$0xff]  ;;  %v5595_v60 = vld [vmem:[#allocation13_spill] sm:$0xff]  ;;  %v5596_v45 = vld [vmem:[#allocation14_spill] sm:$0xff] }
 0x3e7   : > { %v2802_v28 = vmul.f32 %v5113_v25, %v5113_v25  ;;  %v2932_v47 = vadd.f32 %v2931_v56, %v2930_v57  ;;  %v2680_v9 = vadd.f32 %v2679_v62, %v2678_v52  ;;  %v2935_v2 = vsel %vm285_vm0, %v2790_v30, 0.0  ;;  %v2441_v32 = vpop.f32.mrf.mxu2  ;;  %v5597_v57 = vld [vmem:[#allocation11_spill] sm:$0xff]  ;;  %s3322_s11 = smul.u32 3, %s4655_s13  ;;  %s2980_s17 = sand.u32 1, %s3571_s22  }
 0x3e8   : > { %v2589_v29 = vadd.f32 %v2588_v26, %v4823_v63  ;;  %v2842_v41 = vadd.f32 %v2841_v59, %v5190_v42  ;;  %v2626_v55 = vadd.f32 %v2625_v44, %v5026_v51  ;;  %v2879_v12 = vadd.f32 %v2878_v19, %v5226_v11  ;;  %2555 = vst.msk [vmem:[%s4687_s23 + $0xb8] sm:$0xff] %vm285_vm0, %v2441_v32  ;;  %v5599_v19 = vld [vmem:[#allocation19_spill] sm:$0xff]  ;;  %s3323_s23 = smul.u32 3, %s3571_s22  ;;  %s5475_s7 = scalar_lea.sflag [#allocation7], %s2980_s17 }
 0x3e9   : > { %v2934_v49 = vadd.f32 %v2933_v46, %v2932_v47  ;;  %v2682_v54 = vadd.f32 %v2681_v35, %v2680_v9  ;;  %v2683_v50 = vsel %vm285_vm0, %v2441_v32, 0.0  ;;  %v2793_v25 = vmul.f32 %v2441_v32, %v2441_v32  ;;  %v5598_v46 = vld [vmem:[#allocation20_spill] sm:$0xff]  ;;  %s235_s12 = scalar_lea.vmem [#allocation6], %s3322_s11  ;;  %s242_s22 = scalar_lea.vmem [#allocation8], %s3322_s11 }
 0x3ea   : > { %v2590_v58 = vadd.f32 %v2589_v29, %v4866_v43  ;;  %v2843_v3 = vadd.f32 %v2842_v41, %v5194_v10  ;;  %v2627_v63 = vadd.f32 %v2626_v55, %v5032_v24  ;;  %v2880_v42 = vadd.f32 %v2879_v12, %v5232_v34  ;;  %v5601_v41 = vld [vmem:[#allocation15_spill] sm:$0xff]  ;;  %s3016_s16 = scalar_lea.hbm %s5528_s4, %s3323_s23  ;;  %s3030_s10 = scalar_lea.hbm %s5529_s5, %s3323_s23 }
 0x3eb   : > { %v2805_v51 = vmul.f32 %v5128_v37, %v5128_v37  ;;  %v2936_v11 = vadd.f32 %v2935_v2, %v2934_v49  ;;  %v2684_v36 = vadd.f32 %v2683_v50, %v2682_v54  ;;  %v2937_v6 = vsel %vm285_vm0, %v2793_v25, 0.0  ;;  %s3018_s26 = sshll.u32 %s235_s12, 4  ;;  %s3020_s30 = sshll.u32 %s3016_s16, 4  ;;  %s3019_s26 = int_to_ptr.vmem [resolvable:$true] %s3018_s26  ;;  %s3021_s30 = int_to_ptr.hbm [resolvable:$true] %s3020_s30 }
 0x3ec   : > { %v2591_v4 = vadd.f32 %v2590_v58, %v4898_v23  ;;  %v2844_v40 = vadd.f32 %v2843_v3, %v5200_v5  ;;  %v2628_v31 = vadd.f32 %v2627_v63, %v5042_v39  ;;  %v2881_v43 = vadd.f32 %v2880_v42, %v5236_v61  ;;  %v5602_v3 = vld [vmem:[#allocation22_spill] sm:$0xff]  ;;  %s3032_s6 = sshll.u32 %s242_s22, 4  ;;  %s3034_s25 = sshll.u32 %s3030_s10, 4  ;;  %s5471_s6 = int_to_ptr.vmem [resolvable:$true] %s3032_s6  ;;  %s5473_s25 = int_to_ptr.hbm [resolvable:$true] %s3034_s25 }
 0x3ed   : > { %v2943_v10 = vsel %vm285_vm0, %v2802_v28, 0.0  ;;  %v2691_v24 = vsel %vm285_vm0, %v5128_v37, 0.0  ;;  %v2686_v34 = vadd.f32 %v5266_v38, %v2684_v36  ;;  %v2938_v1 = vadd.f32 %v2937_v6, %v2936_v11  ;;  %s3428_s23 = sshra.s32 %s3021_s30, 4  ;;  %s3429_s23 = int_to_ptr.hbm [resolvable:$true] %s3428_s23 }
 0x3ee   : > { %v2592_v21 = vadd.f32 %v2591_v4, %v4929_v53  ;;  %v2845_v33 = vadd.f32 %v2844_v40, %v5204_v0  ;;  %v2629_v23 = vadd.f32 %v2628_v31, %v5052_v14  ;;  %v2882_v5 = vadd.f32 %v2881_v43, %v5242_v13  ;;  %v5591_v53 = vld [vmem:[#allocation12_spill] sm:$0xff]  ;;  %v5593_v13 = vld [vmem:[#allocation17_spill] sm:$0xff]  ;;  %s3430_s13 = scalar_lea.hbm %s3429_s23, 3  ;;  %p3435_p9 = scmp.lt.s32.totalorder %s3429_s23, %s5528_s4 }
 0x3ef   : > { %v2945_v39 = vsel %vm285_vm0, %v2805_v51, 0.0  ;;  %v2808_v61 = vmul.f32 %v5144_v22, %v5144_v22  ;;  %v2688_v8 = vadd.f32 %v5294_v27, %v2686_v34  ;;  %v2940_v37 = vadd.f32 %v5269_v18, %v2938_v1  ;;  %v5592_v0 = vld [vmem:[#allocation16_spill] sm:$0xff]  ;;  %p3431_p4 = scmp.ne.s32.totalorder %s3429_s23, %s3430_s13  ;;  %p3436_p10 = scmp.lt.s32.totalorder %s3434_s15, %s3430_s13 }
 0x3f0   : > { %v2593_v38 = vadd.f32 %v2592_v21, %v4962_v20  ;;  %v2846_v15 = vadd.f32 %v2845_v33, %v5590_v16  ;;  %v2630_v56 = vadd.f32 %v2629_v23, %v5591_v53  ;;  %v2883_v62 = vadd.f32 %v2882_v5, %v5592_v0 }
 0x3f1   : > { %v2693_v14 = vsel %vm285_vm0, %v5144_v22, 0.0  ;;  %v2811_v30 = vmul.f32 %v5593_v13, %v5593_v13  ;;  %v2690_v17 = vadd.f32 %v5339_v7, %v2688_v8  ;;  %v2942_v27 = vadd.f32 %v5594_v48, %v2940_v37  ;;  %v5600_v7 = vld [vmem:[#allocation21_spill] sm:$0xff]  ;;  %p3432_p7 = pnand %p3431_p4, %p3590_p5  ;;  %p3437_p11 = por %p3436_p10, %p3435_p9 }
 0x3f2   : > { %v2594_v18 = vadd.f32 %v2593_v38, %v5595_v60  ;;  %v2847_v20 = vadd.f32 %v2846_v15, %v5596_v45  ;;  %v2631_v52 = vadd.f32 %v2630_v56, %v5597_v57  ;;  %v2884_v35 = vadd.f32 %v2883_v62, %v5598_v46 }
 0x3f3   : > { %v2947_v26 = vsel %vm285_vm0, %v2808_v61, 0.0  ;;  %v2695_v22 = vsel %vm285_vm0, %v5593_v13, 0.0  ;;  %v2692_v59 = vadd.f32 %v2691_v24, %v2690_v17  ;;  %v2944_v44 = vadd.f32 %v2943_v10, %v2942_v27  ;;  %p3433_p8 = pneg %p3432_p7 }
 0x3f4   : > { %v2848_v28 = vadd.f32 %v2847_v20, %v5599_v19  ;;  %v2885_v47 = vadd.f32 %v2884_v35, %v5600_v7  ;;  %v2595_v9 = vrot.slane %v2594_v18, 4  ;;  %v2632_v2 = vrot.slane %v2631_v52, 4 }
 0x3f5   : > { %v2949_v29 = vsel %vm285_vm0, %v2811_v30, 0.0  ;;  %v2814_v55 = vmul.f32 %v5601_v41, %v5601_v41  ;;  %v2694_v12 = vadd.f32 %v2693_v14, %v2692_v59  ;;  %v2946_v32 = vadd.f32 %v2945_v39, %v2944_v44  ;;  %p3438_p12 = pnand %p3437_p11, %p3433_p8 }
 0x3f6   : > { %v2596_v49 = vadd.f32 %v2595_v9, %v2594_v18  ;;  %v2633_v54 = vadd.f32 %v2632_v2, %v2631_v52  ;;  %v2849_v50 = vrot.slane %v2848_v28, 4  ;;  %v2886_v25 = vrot.slane %v2885_v47, 4 }
 0x3f7   : > { %v2697_v58 = vsel %vm285_vm0, %v5601_v41, 0.0  ;;  %v2817_v63 = vmul.f32 %v5602_v3, %v5602_v3  ;;  %v2696_v42 = vadd.f32 %v2695_v22, %v2694_v12  ;;  %v2948_v51 = vadd.f32 %v2947_v26, %v2946_v32 }
 0x3f8   : > { %v2597_v11 = vrot.slane %v2596_v49, 2  ;;  %v2634_v36 = vrot.slane %v2633_v54, 2  ;;  %v2850_v6 = vadd.f32 %v2849_v50, %v2848_v28  ;;  %v2887_v4 = vadd.f32 %v2886_v25, %v2885_v47 }
 0x3f9   : > { %v2951_v40 = vsel %vm285_vm0, %v2814_v55, 0.0  ;;  %v2699_v31 = vsel %vm285_vm0, %v5602_v3, 0.0  ;;  %v2698_v43 = vadd.f32 %v2697_v58, %v2696_v42  ;;  %v2950_v10 = vadd.f32 %v2949_v29, %v2948_v51 }
 0x3fa   : > { %v2598_v24 = vadd.f32 %v2597_v11, %v2596_v49  ;;  %v2635_v34 = vadd.f32 %v2634_v36, %v2633_v54  ;;  %v2851_v1 = vrot.slane %v2850_v6, 2  ;;  %v2888_v21 = vrot.slane %v2887_v4, 2 }
 0x3fb   : > { %v2953_v33 = vsel %vm285_vm0, %v2817_v63, 0.0  ;;  %v2952_v23 = vadd.f32 %v2951_v40, %v2950_v10  ;;  %v2700_v5 = vadd.f32 %v2699_v31, %v2698_v43  ;;  %vm2712_vm12 = vcmask 1040384  }
 0x3fc   : > { %v2599_v39 = vrot.slane %v2598_v24, 1  ;;  %v2636_v61 = vrot.slane %v2635_v34, 1  ;;  %v2852_v8 = vadd.f32 %v2851_v1, %v2850_v6  ;;  %v2889_v37 = vadd.f32 %v2888_v21, %v2887_v4 }
 0x3fd   : > { %v2701_v38 = vrot.slane %v2700_v5, 4  ;;  %v2954_v16 = vadd.f32 %v2953_v33, %v2952_v23  ;;  %v2717_v46 = vlaneseq  ;;  %vm2714_vm13 = vcmask 1041408  }
 0x3fe   : > { %v2637_v15 = vadd.f32 %v2636_v61, %v2635_v34  ;;  %v2853_v53 = vrot.slane %v2852_v8, 1  ;;  %v2890_v56 = vrot.slane %v2889_v37, 1  ;;  %v2600_v14 = vadd.f32 %v2599_v39, %v2598_v24 }
 0x3ff   : > { %v2702_v0 = vadd.f32 %v2701_v38, %v2700_v5  ;;  %v2955_v62 = vrot.slane %v2954_v16, 4  ;;  %vm5462_vm14 = vcmp.lt.s32.totalorder %v2717_v46, 264 }
 0x400   : > { %v2710_v13 = vrot.slane %v2637_v15, 7  ;;  %v2891_v30 = vadd.f32 %v2890_v56, %v2889_v37  ;;  %v2854_v60 = vadd.f32 %v2853_v53, %v2852_v8 }
 0x401   : > { %v2703_v17 = vrot.slane %v2702_v0, 2  ;;  %v2956_v48 = vadd.f32 %v2955_v62, %v2954_v16 }
 0x402   : > { %v2713_v27 = vsel %vm2712_vm12, %v2600_v14, %v2710_v13  ;;  %v2964_v18 = vrot.slane %v2891_v30, 7 }
 0x403   : > { %v2704_v45 = vadd.f32 %v2703_v17, %v2702_v0  ;;  %v2957_v20 = vrot.slane %v2956_v48, 2 }
 0x404   : > { %v2966_v57 = vsel %vm2712_vm12, %v2854_v60, %v2964_v18 }
 0x405   : > { %v2705_v52 = vrot.slane %v2704_v45, 1  ;;  %v2958_v35 = vadd.f32 %v2957_v20, %v2956_v48 }
 0x407   : > { %v2706_v26 = vadd.f32 %v2705_v52, %v2704_v45  ;;  %v2959_v22 = vrot.slane %v2958_v35, 1 }
 0x409   : > { %v2711_v59 = vrot.slane %v2706_v26, 6  ;;  %v2960_v19 = vadd.f32 %v2959_v22, %v2958_v35 }
 0x40b   : > { %v2715_v28 = vsel %vm2714_vm13, %v2713_v27, %v2711_v59  ;;  %v2965_v7 = vrot.slane %v2960_v19, 6 }
 0x40c   : > { %2721 = vst.msk [vmem:[%s235_s12] sm:$0x7] %vm5462_vm14, %v2715_v28 }
 0x40d   : > { %3441 = shalt.err (!%p3438_p12)
}
 0x40e   : > { %3326 = dma.vmem_to_hbm [thread:$0]  (%p3590_p5), %s3019_s26, 48, %s3021_s30, %s5475_s7   ;;  %v2967_v47 = vsel %vm2714_vm13, %v2966_v57, %v2965_v7 }
 0x40f   : > { %2969 = vst.msk [vmem:[%s242_s22] sm:$0x7] %vm5462_vm14, %v2967_v47  ;;  %s3456_s17 = sshra.s32 %s5473_s25, 4  ;;  %s3462_s23 = scalar_lea.hbm %s5529_s5, 6  ;;  %s3457_s17 = int_to_ptr.hbm [resolvable:$true] %s3456_s17 }
 0x410   : > { %s3458_s9 = scalar_lea.hbm %s3457_s17, 3  ;;  %p3463_p2 = scmp.lt.s32.totalorder %s3457_s17, %s5529_s5 }
 0x411   : > { %p3459_p13 = scmp.ne.s32.totalorder %s3457_s17, %s3458_s9  ;;  %p3464_p3 = scmp.lt.s32.totalorder %s3462_s23, %s3458_s9 }
 0x413   : > { %p3460_p0 = pnand %p3459_p13, %p3590_p5  ;;  %p3465_p4 = por %p3464_p3, %p3463_p2 }
 0x415   : > { %p3461_p1 = pneg %p3460_p0 }
 0x417   : > { %p3466_p7 = pnand %p3465_p4, %p3461_p1 }
 0x419   : > { %3469 = shalt.err (!%p3466_p7)
}
 0x41a   : > { %3327 = dma.vmem_to_hbm [thread:$0]  (%p3590_p5), %s5471_s6, 48, %s5473_s25, %s5475_s7  }
 0x41b PF: > { %p3341_p8 = scmp.ge.s32.totalorder %s3508_s21, 2  ;;  %s3046_s26 = sand.u32 1, %s3496_s18  }
 0x41c   : > { %s3047_s30 = scalar_lea.sflag [#allocation5], %s3046_s26 }
 0x41d   : > { %p3332_p9 = pnand %p3341_p8, %p3594_p6 }
 0x41f   : > { %p3333_p10 = pneg %p3332_p9 }
 0x421   : > { %3487 = dma.done.wait (%p3333_p10), %s3047_s30, 8192  }
 0x422   : > { %3489 = vsyncadd (%p3333_p10), %s3047_s30, 4294959104  ;;  %s5605_s22 = sadd.s32 4294967294, %s3508_s21  }
 0x423   : > { %s3064_s14 = sand.u32 1, %s5605_s22  }
 0x424   : > { %s3065_s28 = scalar_lea.sflag [#allocation7], %s3064_s14 }
 0x425   : > { %3491 = dma.done.wait (%p3333_p10), %s3065_s28, 96  }
 0x426   : > { %3493 = vsyncadd (%p3333_p10), %s3065_s28, 4294967200  ;;  %p19_p5 = scmp.ge.s32.totalorder %s3575_s24, 4   ;;  %s5606_s18 = smov %s3500_s19 }
 0x427   : > { %s5607_s19 = smov %s3504_s20  ;;  %s5608_s20 = smov %s3588_s27 }
 0x428   : > { %s5609_s21 = smov %s3575_s24  ;;  %21 = sbr.rel (!%p19_p5) target bundleno = 5 (0x5), region = 110 }
 0x42d   :  { %3081 = vsyncpa [#allocation5], 1 }
 0x42e   :  { %3083 = vsyncpa [#allocation5 + $0x1], 1 }
 0x42f   :  { %3084 = vsyncpa [#allocation7], 1 }
 0x430   :  { %3086 = vsyncpa [#allocation7 + $0x1], 1 }

</bundles_post_ra>
